<compile_context>
chip_gen: v7x
topology: tpu7x:2x2x1
jax: 0.10.0
libtpu: 0.0.40
codegen_flags: <defaults>
</compile_context>

<pallas_src>
import jax
import jax.numpy as jnp
from jax import lax
from jax.experimental import pallas as pl
from jax.experimental.pallas import tpu as pltpu


# ------------------------------ small helpers --------------------------------

def _round_up(n, m):
    return ((n + m - 1) // m) * m


def _lane_pad(n):   # last dim pads to 128 lanes in VMEM
    return _round_up(max(int(n), 1), 128)


def _sub_pad(n):    # second-to-last dim pads to 8 sublanes
    return _round_up(max(int(n), 1), 8)


def _vmem_capacity_bytes():
    """Physical VMEM per TensorCore; conservative 64 MiB (v7x) if unknown."""
    try:
        info = pltpu.get_tpu_info()
        for name in ("vmem_capacity_bytes", "vmem_bytes", "vmem_size_bytes"):
            v = getattr(info, name, None)
            if v:
                return int(v)
    except Exception:
        pass
    return 64 * 1024 * 1024


def _num_tensorcores():
    """TensorCores per chip (2 on v7x, 1 on v5e/v6e); default 1 if unknown."""
    try:
        info = pltpu.get_tpu_info()
        for name in ("num_cores", "num_tensorcores", "tensorcores_per_chip",
                     "cores_per_chip"):
            v = getattr(info, name, None)
            if v:
                return int(v)
    except Exception:
        pass
    try:
        if "v7" in jax.devices()[0].device_kind.lower():
            return 2
    except Exception:
        pass
    return 1


def _default_compute_dtype():
    """bf16 matmul operands on v6e/v7x (native bf16 VPU/MXU); f32 on v5e/older."""
    try:
        kind = jax.devices()[0].device_kind.lower()
        if "v6" in kind or "v7" in kind:
            return jnp.bfloat16
    except Exception:
        pass
    return jnp.float32


def _footprint_bytes(time_tile, batch_tile, D, H, c_pad, num_layers,
                     comp_isz, weight_bufs=2):
    """Layout-aware VMEM bytes for one grid step (lanes->128, sublanes->8)."""
    rows = time_tile * batch_tile
    f = 0
    # x input block + classifier output block (pipeline double-buffers both).
    f += 2 * time_tile * _sub_pad(batch_tile) * _lane_pad(D) * comp_isz
    f += 2 * time_tile * _sub_pad(batch_tile) * _lane_pad(c_pad) * 4
    # Ping-pong activation slabs (compute_dtype) + per-layer recurrent state (f32).
    f += 2 * _sub_pad(rows) * _lane_pad(H) * comp_isz
    f += num_layers * _sub_pad(batch_tile) * _lane_pad(H) * 4
    # Weights (constant block index; conservatively assume `weight_bufs` buffers).
    for l in range(num_layers):
        din = D if l == 0 else H
        f += weight_bufs * (_sub_pad(din) * _lane_pad(H) * comp_isz      # w_ih^T
                            + _sub_pad(H) * _lane_pad(H) * comp_isz      # w_hh^T
                            + _sub_pad(1) * _lane_pad(H) * 4)            # bias
    f += weight_bufs * (_sub_pad(H) * _lane_pad(c_pad) * comp_isz        # w_cls^T
                        + _sub_pad(1) * _lane_pad(c_pad) * 4)            # b_cls
    return f


def _choose_tiles(T, b_pad, D, H, c_pad, num_layers, comp_isz, n_tc, vmem_cap):
    """Biggest (time_tile, batch_tile) whose footprint fits ~60% of physical VMEM.

    Prefers batch_tile == b_pad (free leading-dim merge of the x block) except
    on multi-TensorCore chips, where >= 2 batch tiles are preferred so the
    'parallel' batch grid axis feeds both cores.
    """
    budget = max(int(0.6 * vmem_cap), 1)

    bt_all = [d for d in range(b_pad, 7, -1) if b_pad % d == 0 and d % 8 == 0]
    if n_tc >= 2 and b_pad >= 16:
        split = [d for d in bt_all if d <= b_pad // 2]
        bt_cands = split + [d for d in bt_all if d > b_pad // 2]
    else:
        bt_cands = bt_all
    tt_cands = [d for d in range(T, 0, -1) if T % d == 0]

    for bt in bt_cands:
        for tt in tt_cands:
            if _footprint_bytes(tt, bt, D, H, c_pad, num_layers, comp_isz) <= budget:
                return tt, bt
    return 1, 8


# ----------------------------- fused kernel ---------------------------------

def _make_fused_kernel(num_layers, time_tile, batch_tile, n_chains, unroll,
                       compute_dtype):
    rows = time_tile * batch_tile
    chain = batch_tile // n_chains

    def kernel(*refs):
        x_ref = refs[0]
        lrefs = refs[1:1 + 3 * num_layers]          # per layer: w_ih^T, w_hh^T, bias
        wc_ref = refs[1 + 3 * num_layers]           # (H, c_pad) contraction-ready
        bc_ref = refs[2 + 3 * num_layers]           # (1, c_pad)
        out_ref = refs[3 + 3 * num_layers]          # (time_tile, batch_tile, c_pad)
        slab_a = refs[4 + 3 * num_layers]           # (rows, H) compute_dtype scratch
        slab_b = refs[5 + 3 * num_layers]
        h_refs = refs[6 + 3 * num_layers:]          # num_layers x (batch_tile, H) f32
        slabs = (slab_a, slab_b)

        # Recurrence carry: grid is (batch "parallel", time "arbitrary"); for
        # every batch tile the time axis iterates 0..nt-1 in order, so h only
        # needs a reset at the first time tile.  This is load-bearing: do NOT
        # reorder the grid axes or change the time-tile index map.
        @pl.when(pl.program_id(1) == 0)
        def _():
            for h_ref in h_refs:
                h_ref[...] = jnp.zeros_like(h_ref)

        din0 = x_ref.shape[-1]
        # Leading-dim merge of the (tt, bt, D) block is layout-free (bt % 8 == 0).
        cur = x_ref[...].reshape(rows, din0)
        if cur.dtype != compute_dtype:
            cur = cur.astype(compute_dtype)

        for layer in range(num_layers):
            wih_t = lrefs[3 * layer][...]       # (Din_l, H), pre-transposed
            whh_t = lrefs[3 * layer + 1][...]   # (H, H),     pre-transposed
            bias = lrefs[3 * layer + 2][...]    # (1, H) f32, b_ih + b_hh pre-summed
            dst = slabs[layer % 2]
            h_ref = h_refs[layer]

            # Hoisted input projection: ONE MXU matmul for the whole time tile,
            # f32 accumulate, stored in compute_dtype (bf16 slab on v6e/v7x).
            dst[...] = (jnp.dot(cur, wih_t, preferred_element_type=jnp.float32)
                        + bias).astype(dst.dtype)

            def step(s, carry, _dst=dst, _h=h_ref, _whh=whh_t):
                # n_chains independent batch sub-chains per timestep: their
                # (chain, H) x (H, H) matmuls / relu / stores have no mutual
                # dependency, so the scheduler can fill the MXU pipeline
                # instead of serialising on push->pop latency.
                for c in range(n_chains):
                    row0 = pl.multiple_of(s * batch_tile + c * chain, chain)
                    row_sl = pl.ds(row0, chain)
                    h_sl = pl.ds(c * chain, chain)
                    h_prev = _h[h_sl, :]                               # (chain, H) f32
                    pre = (_dst[row_sl, :]
                           + jnp.dot(h_prev.astype(compute_dtype), _whh,
                                     preferred_element_type=jnp.float32))
                    h_new = jnp.maximum(pre, 0.0)                      # relu (f32)
                    _h[h_sl, :] = h_new
                    # Overwrite the already-consumed projection rows in place.
                    _dst[row_sl, :] = h_new.astype(_dst.dtype)
                return carry

            # Partial unroll: enough for matmul/VPU/store co-issue without the
            # code bloat of fully unrolling a serially-dependent loop.
            lax.fori_loop(0, time_tile, step, 0, unroll=unroll)

            cur = dst[...]                        # feeds next layer / classifier
            if cur.dtype != compute_dtype:
                cur = cur.astype(compute_dtype)
            # TODO(synk): nn.RNN's inter-layer dropout(p=0.1) is training-only;
            # the inference forward pass is identity, so nothing is applied here.

        # Fused classifier; c_pad (=8) equals the output block's full last dim
        # (legal), a masked store but 16x less padded HBM writeback than 128.
        logits = (jnp.dot(cur, wc_ref[...], preferred_element_type=jnp.float32)
                  + bc_ref[...])
        out_ref[...] = logits.reshape(time_tile, batch_tile, -1).astype(out_ref.dtype)

    return kernel


# ------------------------------- wrapper ------------------------------------

def torch_model_forward(params, x_tokens, *, compute_dtype=None):
    """Equivalent of TorchModel.forward(x) (inference path, y=None).

    Returns (B, T, 2) float32 logits.  compute_dtype controls the matmul
    operand dtype (None = auto: bf16 on v6e/v7x, f32 on v5e/older); recurrent
    state, accumulation and outputs stay f32, so bf16 drift is bounded to
    operand rounding (~1e-2 relative).
    NOTE: with hidden_size=32 the per-step HxH matmul fills <1/8 of the MXU;
    hidden_size multiples of 128 (v5e) / 256 (v6e/v7x) are needed to approach
    MXU roofline — the sub-chain interleaving below is the main lever at H=32.
    """
    if compute_dtype is None:
        compute_dtype = _default_compute_dtype()

    # Embedding lookup (gather) is wrapper glue; the RNN/linear hot path is Pallas.
    emb = params['embedding'][x_tokens]              # (B, T, char_dim) f32
    B, T, D = emb.shape
    num_layers = len(params['rnn_layers'])
    H = params['rnn_layers'][0]['w_hh'].shape[0]
    C = params['w_classify'].shape[0]

    # Time-major layout; pad batch to a sublane multiple (8).
    b_pad = _round_up(B, 8)
    x_tm = jnp.transpose(emb, (1, 0, 2))             # (T, B, D)
    if b_pad != B:
        x_tm = jnp.pad(x_tm, ((0, 0), (0, b_pad - B), (0, 0)))
    x_tm = x_tm.astype(compute_dtype)

    # Class padding: 8 (== block's full last dim) instead of 128 lanes ->
    # 16x less padded HBM writeback; the store is masked, but the kernel is
    # recurrence-latency-bound so writeback stays off the critical path.
    c_pad = _round_up(C, 8)

    comp_isz = jnp.dtype(compute_dtype).itemsize
    vmem_cap = _vmem_capacity_bytes()
    n_tc = _num_tensorcores()
    time_tile, batch_tile = _choose_tiles(T, b_pad, D, H, c_pad, num_layers,
                                          comp_isz, n_tc, vmem_cap)
    grid = (b_pad // batch_tile, T // time_tile)

    # Independent batch sub-chains per timestep (each must keep >= 8 sublanes).
    n_chains = next(n for n in (4, 2, 1) if batch_tile % (8 * n) == 0)
    # Partial unroll: largest divisor of time_tile that is <= 8.
    unroll = max(d for d in range(1, min(8, time_tile) + 1) if time_tile % d == 0)

    # ---- inputs (weights pre-transposed / biases pre-summed wrapper-side) ----
    flat_inputs = [x_tm]
    weight_shapes = []
    for layer in params['rnn_layers']:
        wih_t = layer['w_ih'].T.astype(compute_dtype)            # (Din, H)
        whh_t = layer['w_hh'].T.astype(compute_dtype)            # (H, H)
        bias = (layer['b_ih'] + layer['b_hh']).reshape(1, H).astype(jnp.float32)
        flat_inputs += [wih_t, whh_t, bias]
        weight_shapes += [wih_t.shape, whh_t.shape, bias.shape]

    wc_t = jnp.zeros((H, c_pad), compute_dtype).at[:, :C].set(
        params['w_classify'].T.astype(compute_dtype))
    bc = jnp.zeros((1, c_pad), jnp.float32).at[0, :C].set(
        params['b_classify'].astype(jnp.float32))
    flat_inputs += [wc_t, bc]
    weight_shapes += [wc_t.shape, bc.shape]

    x_spec = pl.BlockSpec((time_tile, batch_tile, D), lambda b, t: (t, b, 0))
    out_shape = jax.ShapeDtypeStruct((T, b_pad, c_pad), jnp.float32)
    out_spec = pl.BlockSpec((time_tile, batch_tile, c_pad), lambda b, t: (t, b, 0))

    rows = time_tile * batch_tile
    scratch_shapes = (
        [pltpu.VMEM((rows, H), compute_dtype),        # slab A (proj / hidden, in place)
         pltpu.VMEM((rows, H), compute_dtype)]        # slab B (ping-pong between layers)
        + [pltpu.VMEM((batch_tile, H), jnp.float32)   # per-layer recurrent state h_{t-1}
           for _ in range(num_layers)]
    )

    # Layout-aware VMEM budget: actual footprint + headroom, clamped to physical.
    footprint = _footprint_bytes(time_tile, batch_tile, D, H, c_pad, num_layers,
                                 comp_isz)
    vmem_limit = int(min(vmem_cap,
                         max(int(footprint * 1.25) + (4 << 20), 16 << 20)))

    kernel = _make_fused_kernel(num_layers, time_tile, batch_tile, n_chains,
                                unroll, compute_dtype)
    compiler_params = pltpu.CompilerParams(
        # Grid order (batch, time) with time innermost is load-bearing: the
        # recurrent state is carried in VMEM scratch across time tiles and
        # reset at program_id(1) == 0.  Do not reorder / re-mark these axes.
        dimension_semantics=("parallel", "arbitrary"),
        vmem_limit_bytes=vmem_limit)

    def _run(weight_pipeline_mode):
        def wspec(shape):
            idx = lambda b, t: (0,) * len(shape)
            if weight_pipeline_mode is None:
                return pl.BlockSpec(shape, idx)
            return pl.BlockSpec(shape, idx, pipeline_mode=weight_pipeline_mode)
        in_specs = [x_spec] + [wspec(s) for s in weight_shapes]
        return pl.pallas_call(
            kernel,
            out_shape=out_shape,
            grid=grid,
            in_specs=in_specs,
            out_specs=out_spec,
            scratch_shapes=scratch_shapes,
            compiler_params=compiler_params,
        )(*flat_inputs)

    try:
        # Constant-index weight blocks never change: a single VMEM buffer each.
        out = _run(pl.Buffered(1))
    except Exception:
        # Stricter Pallas builds: fall back to default double-buffering.
        out = _run(None)

    logits = out[:, :B, :C]                       # drop batch / class padding
    return jnp.transpose(logits, (1, 0, 2))       # (B, T, 2) like y_pred


# --------------------------- reference & params ------------------------------

def _reference_forward(params, x_tokens):
    """Pure-JAX reference for TorchModel.forward (inference path)."""
    emb = params['embedding'][x_tokens]              # (B, T, D)
    h_seq = jnp.transpose(emb, (1, 0, 2))            # (T, B, Din)
    B = x_tokens.shape[0]
    for layer in params['rnn_layers']:
        wih, whh = layer['w_ih'], layer['w_hh']
        bias = layer['b_ih'] + layer['b_hh']
        H = whh.shape[0]

        def step(h_prev, x_t):
            h = jax.nn.relu(x_t @ wih.T + h_prev @ whh.T + bias)
            return h, h

        _, h_seq = lax.scan(step, jnp.zeros((B, H), jnp.float32), h_seq)
    logits = h_seq @ params['w_classify'].T + params['b_classify']
    return jnp.transpose(logits, (1, 0, 2))          # (B, T, 2)


def init_params(config, key):
    vocab_size = config['vocab_size']
    char_dim = config['char_dim']
    hidden = config['hidden_size']
    num_layers = config['num_rnn_layers']

    keys = jax.random.split(key, 2 + 4 * num_layers + 2)
    ki = iter(range(len(keys)))

    def unif(k, shape, bound):
        return jax.random.uniform(keys[k], shape, jnp.float32, -bound, bound)

    params = {}
    # nn.Embedding(vocab_size + 1, char_dim) ~ N(0, 1)
    params['embedding'] = jax.random.normal(
        keys[next(ki)], (vocab_size + 1, char_dim), jnp.float32)

    # nn.RNN weights (PyTorch init: U(-1/sqrt(H), 1/sqrt(H)))
    bound = 1.0 / float(jnp.sqrt(jnp.float32(hidden)))
    layers = []
    for l in range(num_layers):
        din = char_dim if l == 0 else hidden
        layers.append({
            'w_ih': unif(next(ki), (hidden, din), bound),
            'w_hh': unif(next(ki), (hidden, hidden), bound),
            'b_ih': unif(next(ki), (hidden,), bound),
            'b_hh': unif(next(ki), (hidden,), bound),
        })
    params['rnn_layers'] = layers

    # nn.Linear(hidden_size, 2)
    params['w_classify'] = unif(next(ki), (2, hidden), bound)
    params['b_classify'] = unif(next(ki), (2,), bound)
    return params


# ---------------------------------- main -------------------------------------

if __name__ == "__main__":
    config = {
        'vocab_size': 20,
        'char_dim': 32,
        'hidden_size': 32,
        'num_rnn_layers': 2,
    }
    B, T = 2, 8

    key = jax.random.PRNGKey(0)
    k_params, k_tokens = jax.random.split(key)
    params = init_params(config, k_params)

    x_tokens = jax.random.randint(
        k_tokens, (B, T), 0, config['vocab_size'] + 1, dtype=jnp.int32)

    y_ref = _reference_forward(params, x_tokens)

    # f32 matmul-operand path (matches PyTorch numerics up to TPU matmul
    # precision / accumulation-order differences).
    y_f32 = torch_model_forward(params, x_tokens, compute_dtype=jnp.float32)
    jax.block_until_ready(y_f32)
    assert y_f32.shape == (B, T, 2) and y_f32.dtype == jnp.float32
    assert bool(jnp.allclose(y_f32, y_ref, atol=3e-2, rtol=3e-2)), (
        "f32 Pallas path disagrees with the pure-JAX reference")

    # bf16 matmul-operand path (v6e/v7x default; f32 state / accumulation / output).
    y_bf16 = torch_model_forward(params, x_tokens, compute_dtype=jnp.bfloat16)
    jax.block_until_ready(y_bf16)
    assert y_bf16.shape == (B, T, 2) and y_bf16.dtype == jnp.float32
    assert bool(jnp.all(jnp.isfinite(y_bf16)))

    # Generation-aware default (bf16 on v6e/v7x, f32 on v5e and older).
    y_auto = torch_model_forward(params, x_tokens)
    jax.block_until_ready(y_auto)
    assert y_auto.shape == (B, T, 2)

    print("KERNEL_OK")
</pallas_src>

<mosaic_0001>
module attributes {stable_mosaic.version = 11 : i64} {
  func.func @kernel(%arg0: i32, %arg1: i32, %arg2: memref<8x8x32xf32, #tpu.memory_space<vmem>>, %arg3: memref<32x32xf32, #tpu.memory_space<vmem>>, %arg4: memref<32x32xf32, #tpu.memory_space<vmem>>, %arg5: memref<1x32xf32, #tpu.memory_space<vmem>>, %arg6: memref<32x32xf32, #tpu.memory_space<vmem>>, %arg7: memref<32x32xf32, #tpu.memory_space<vmem>>, %arg8: memref<1x32xf32, #tpu.memory_space<vmem>>, %arg9: memref<32x8xf32, #tpu.memory_space<vmem>>, %arg10: memref<1x8xf32, #tpu.memory_space<vmem>>, %arg11: memref<8x8x8xf32, #tpu.memory_space<vmem>>, %arg12: memref<64x32xf32, #tpu.memory_space<vmem>>, %arg13: memref<64x32xf32, #tpu.memory_space<vmem>>, %arg14: memref<8x32xf32, #tpu.memory_space<vmem>>, %arg15: memref<8x32xf32, #tpu.memory_space<vmem>>) attributes {dimension_semantics = [#tpu.dimension_semantics<parallel>, #tpu.dimension_semantics<arbitrary>], iteration_bounds = array<i64: 1, 1>, scalar_prefetch = 0 : i64, scratch_operands = 4 : i64, tpu.core_type = #tpu.core_type<tc>, window_params = [{transform_indices = @transform_0, window_bounds = array<i64: 8, 8, 32>}, {pipeline_mode = #tpu.pipeline_mode<synchronous>, transform_indices = @transform_1, window_bounds = array<i64: 32, 32>}, {pipeline_mode = #tpu.pipeline_mode<synchronous>, transform_indices = @transform_2, window_bounds = array<i64: 32, 32>}, {pipeline_mode = #tpu.pipeline_mode<synchronous>, transform_indices = @transform_3, window_bounds = array<i64: 1, 32>}, {pipeline_mode = #tpu.pipeline_mode<synchronous>, transform_indices = @transform_4, window_bounds = array<i64: 32, 32>}, {pipeline_mode = #tpu.pipeline_mode<synchronous>, transform_indices = @transform_5, window_bounds = array<i64: 32, 32>}, {pipeline_mode = #tpu.pipeline_mode<synchronous>, transform_indices = @transform_6, window_bounds = array<i64: 1, 32>}, {pipeline_mode = #tpu.pipeline_mode<synchronous>, transform_indices = @transform_7, window_bounds = array<i64: 32, 8>}, {pipeline_mode = #tpu.pipeline_mode<synchronous>, transform_indices = @transform_8, window_bounds = array<i64: 1, 8>}, {transform_indices = @transform_9, window_bounds = array<i64: 8, 8, 8>}]} {
    %c0_i32 = arith.constant 0 : i32
    %0 = arith.cmpi eq, %arg1, %c0_i32 : i32
    %1 = arith.extui %0 : i1 to i32
    %c0_i32_0 = arith.constant 0 : i32
    %2 = arith.cmpi ne, %1, %c0_i32_0 : i32
    scf.if %2 {
      %cst_202 = arith.constant 0.000000e+00 : f32
      %236 = vector.broadcast %cst_202 : f32 to vector<8x32xf32>
      %c0_203 = arith.constant 0 : index
      %c0_204 = arith.constant 0 : index
      %237 = vector.load %arg14[%c0_203, %c0_204] : memref<8x32xf32, #tpu.memory_space<vmem>>, vector<8x32xf32>
      tpu.vector_store %arg14[%c0_203, %c0_204], %236 {strides = array<i32>} : memref<8x32xf32, #tpu.memory_space<vmem>>, vector<8x32xf32>,
      %cst_205 = arith.constant 0.000000e+00 : f32
      %238 = vector.broadcast %cst_205 : f32 to vector<8x32xf32>
      %c0_206 = arith.constant 0 : index
      %c0_207 = arith.constant 0 : index
      %239 = vector.load %arg15[%c0_206, %c0_207] : memref<8x32xf32, #tpu.memory_space<vmem>>, vector<8x32xf32>
      tpu.vector_store %arg15[%c0_206, %c0_207], %238 {strides = array<i32>} : memref<8x32xf32, #tpu.memory_space<vmem>>, vector<8x32xf32>,
    } else {
    }
    %c0 = arith.constant 0 : index
    %c0_1 = arith.constant 0 : index
    %c0_2 = arith.constant 0 : index
    %3 = vector.load %arg2[%c0, %c0_1, %c0_2] : memref<8x8x32xf32, #tpu.memory_space<vmem>>, vector<8x8x32xf32>
    %4 = vector.shape_cast %3 : vector<8x8x32xf32> to vector<64x32xf32>
    %c0_3 = arith.constant 0 : index
    %c0_4 = arith.constant 0 : index
    %5 = vector.load %arg3[%c0_3, %c0_4] : memref<32x32xf32, #tpu.memory_space<vmem>>, vector<32x32xf32>
    %c0_5 = arith.constant 0 : index
    %c0_6 = arith.constant 0 : index
    %6 = vector.load %arg4[%c0_5, %c0_6] : memref<32x32xf32, #tpu.memory_space<vmem>>, vector<32x32xf32>
    %c0_7 = arith.constant 0 : index
    %c0_8 = arith.constant 0 : index
    %7 = vector.load %arg5[%c0_7, %c0_8] : memref<1x32xf32, #tpu.memory_space<vmem>>, vector<1x32xf32>
    %cst = arith.constant dense<0.000000e+00> : vector<64x32xf32>
    %8 = tpu.matmul %4, %5, %cst {dimension_numbers = #tpu.dot_dimension_numbers<[1], [0], [0], [1], [0, 0, 1, 1], [], []>} : vector<64x32xf32>, vector<32x32xf32>, vector<64x32xf32> -> vector<64x32xf32>
    %9 = vector.broadcast %7 : vector<1x32xf32> to vector<64x32xf32>
    %10 = arith.addf %8, %9 : vector<64x32xf32>
    %c0_9 = arith.constant 0 : index
    %c0_10 = arith.constant 0 : index
    %11 = vector.load %arg12[%c0_9, %c0_10] : memref<64x32xf32, #tpu.memory_space<vmem>>, vector<64x32xf32>
    tpu.vector_store %arg12[%c0_9, %c0_10], %10 {strides = array<i32>} : memref<64x32xf32, #tpu.memory_space<vmem>>, vector<64x32xf32>,
    %c0_i32_11 = arith.constant 0 : i32
    %c8_i32 = arith.constant 8 : i32
    %12 = arith.muli %c0_i32_11, %c8_i32 : i32
    %c0_i32_12 = arith.constant 0 : i32
    %13 = arith.addi %12, %c0_i32_12 : i32
    %14 = tpu.assume_multiple %13, 8 : i32
    %c0_13 = arith.constant 0 : index
    %c0_14 = arith.constant 0 : index
    %15 = vector.load %arg14[%c0_13, %c0_14] : memref<8x32xf32, #tpu.memory_space<vmem>>, vector<8x32xf32>
    %16 = arith.index_cast %14 : i32 to index
    %c0_15 = arith.constant 0 : index
    %17 = vector.load %arg12[%16, %c0_15] : memref<64x32xf32, #tpu.memory_space<vmem>>, vector<8x32xf32>
    %cst_16 = arith.constant dense<0.000000e+00> : vector<8x32xf32>
    %18 = tpu.matmul %15, %6, %cst_16 {dimension_numbers = #tpu.dot_dimension_numbers<[1], [0], [0], [1], [0, 0, 1, 1], [], []>} : vector<8x32xf32>, vector<32x32xf32>, vector<8x32xf32> -> vector<8x32xf32>
    %19 = arith.addf %17, %18 : vector<8x32xf32>
    %cst_17 = arith.constant 0.000000e+00 : f32
    %20 = vector.broadcast %cst_17 : f32 to vector<8x32xf32>
    %21 = arith.maximumf %19, %20 : vector<8x32xf32>
    %c0_18 = arith.constant 0 : index
    %c0_19 = arith.constant 0 : index
    %22 = vector.load %arg14[%c0_18, %c0_19] : memref<8x32xf32, #tpu.memory_space<vmem>>, vector<8x32xf32>
    tpu.vector_store %arg14[%c0_18, %c0_19], %21 {strides = array<i32>} : memref<8x32xf32, #tpu.memory_space<vmem>>, vector<8x32xf32>,
    %23 = arith.index_cast %14 : i32 to index
    %c0_20 = arith.constant 0 : index
    %24 = vector.load %arg12[%23, %c0_20] : memref<64x32xf32, #tpu.memory_space<vmem>>, vector<8x32xf32>
    tpu.vector_store %arg12[%23, %c0_20], %21 {strides = array<i32>} : memref<64x32xf32, #tpu.memory_space<vmem>>, vector<8x32xf32>,
    %c1_i32 = arith.constant 1 : i32
    %c8_i32_21 = arith.constant 8 : i32
    %25 = arith.muli %c1_i32, %c8_i32_21 : i32
    %c0_i32_22 = arith.constant 0 : i32
    %26 = arith.addi %25, %c0_i32_22 : i32
    %27 = tpu.assume_multiple %26, 8 : i32
    %c0_23 = arith.constant 0 : index
    %c0_24 = arith.constant 0 : index
    %28 = vector.load %arg14[%c0_23, %c0_24] : memref<8x32xf32, #tpu.memory_space<vmem>>, vector<8x32xf32>
    %29 = arith.index_cast %27 : i32 to index
    %c0_25 = arith.constant 0 : index
    %30 = vector.load %arg12[%29, %c0_25] : memref<64x32xf32, #tpu.memory_space<vmem>>, vector<8x32xf32>
    %cst_26 = arith.constant dense<0.000000e+00> : vector<8x32xf32>
    %31 = tpu.matmul %28, %6, %cst_26 {dimension_numbers = #tpu.dot_dimension_numbers<[1], [0], [0], [1], [0, 0, 1, 1], [], []>} : vector<8x32xf32>, vector<32x32xf32>, vector<8x32xf32> -> vector<8x32xf32>
    %32 = arith.addf %30, %31 : vector<8x32xf32>
    %cst_27 = arith.constant 0.000000e+00 : f32
    %33 = vector.broadcast %cst_27 : f32 to vector<8x32xf32>
    %34 = arith.maximumf %32, %33 : vector<8x32xf32>
    %c0_28 = arith.constant 0 : index
    %c0_29 = arith.constant 0 : index
    %35 = vector.load %arg14[%c0_28, %c0_29] : memref<8x32xf32, #tpu.memory_space<vmem>>, vector<8x32xf32>
    tpu.vector_store %arg14[%c0_28, %c0_29], %34 {strides = array<i32>} : memref<8x32xf32, #tpu.memory_space<vmem>>, vector<8x32xf32>,
    %36 = arith.index_cast %27 : i32 to index
    %c0_30 = arith.constant 0 : index
    %37 = vector.load %arg12[%36, %c0_30] : memref<64x32xf32, #tpu.memory_space<vmem>>, vector<8x32xf32>
    tpu.vector_store %arg12[%36, %c0_30], %34 {strides = array<i32>} : memref<64x32xf32, #tpu.memory_space<vmem>>, vector<8x32xf32>,
    %c2_i32 = arith.constant 2 : i32
    %c8_i32_31 = arith.constant 8 : i32
    %38 = arith.muli %c2_i32, %c8_i32_31 : i32
    %c0_i32_32 = arith.constant 0 : i32
    %39 = arith.addi %38, %c0_i32_32 : i32
    %40 = tpu.assume_multiple %39, 8 : i32
    %c0_33 = arith.constant 0 : index
    %c0_34 = arith.constant 0 : index
    %41 = vector.load %arg14[%c0_33, %c0_34] : memref<8x32xf32, #tpu.memory_space<vmem>>, vector<8x32xf32>
    %42 = arith.index_cast %40 : i32 to index
    %c0_35 = arith.constant 0 : index
    %43 = vector.load %arg12[%42, %c0_35] : memref<64x32xf32, #tpu.memory_space<vmem>>, vector<8x32xf32>
    %cst_36 = arith.constant dense<0.000000e+00> : vector<8x32xf32>
    %44 = tpu.matmul %41, %6, %cst_36 {dimension_numbers = #tpu.dot_dimension_numbers<[1], [0], [0], [1], [0, 0, 1, 1], [], []>} : vector<8x32xf32>, vector<32x32xf32>, vector<8x32xf32> -> vector<8x32xf32>
    %45 = arith.addf %43, %44 : vector<8x32xf32>
    %cst_37 = arith.constant 0.000000e+00 : f32
    %46 = vector.broadcast %cst_37 : f32 to vector<8x32xf32>
    %47 = arith.maximumf %45, %46 : vector<8x32xf32>
    %c0_38 = arith.constant 0 : index
    %c0_39 = arith.constant 0 : index
    %48 = vector.load %arg14[%c0_38, %c0_39] : memref<8x32xf32, #tpu.memory_space<vmem>>, vector<8x32xf32>
    tpu.vector_store %arg14[%c0_38, %c0_39], %47 {strides = array<i32>} : memref<8x32xf32, #tpu.memory_space<vmem>>, vector<8x32xf32>,
    %49 = arith.index_cast %40 : i32 to index
    %c0_40 = arith.constant 0 : index
    %50 = vector.load %arg12[%49, %c0_40] : memref<64x32xf32, #tpu.memory_space<vmem>>, vector<8x32xf32>
    tpu.vector_store %arg12[%49, %c0_40], %47 {strides = array<i32>} : memref<64x32xf32, #tpu.memory_space<vmem>>, vector<8x32xf32>,
    %c3_i32 = arith.constant 3 : i32
    %c8_i32_41 = arith.constant 8 : i32
    %51 = arith.muli %c3_i32, %c8_i32_41 : i32
    %c0_i32_42 = arith.constant 0 : i32
    %52 = arith.addi %51, %c0_i32_42 : i32
    %53 = tpu.assume_multiple %52, 8 : i32
    %c0_43 = arith.constant 0 : index
    %c0_44 = arith.constant 0 : index
    %54 = vector.load %arg14[%c0_43, %c0_44] : memref<8x32xf32, #tpu.memory_space<vmem>>, vector<8x32xf32>
    %55 = arith.index_cast %53 : i32 to index
    %c0_45 = arith.constant 0 : index
    %56 = vector.load %arg12[%55, %c0_45] : memref<64x32xf32, #tpu.memory_space<vmem>>, vector<8x32xf32>
    %cst_46 = arith.constant dense<0.000000e+00> : vector<8x32xf32>
    %57 = tpu.matmul %54, %6, %cst_46 {dimension_numbers = #tpu.dot_dimension_numbers<[1], [0], [0], [1], [0, 0, 1, 1], [], []>} : vector<8x32xf32>, vector<32x32xf32>, vector<8x32xf32> -> vector<8x32xf32>
    %58 = arith.addf %56, %57 : vector<8x32xf32>
    %cst_47 = arith.constant 0.000000e+00 : f32
    %59 = vector.broadcast %cst_47 : f32 to vector<8x32xf32>
    %60 = arith.maximumf %58, %59 : vector<8x32xf32>
    %c0_48 = arith.constant 0 : index
    %c0_49 = arith.constant 0 : index
    %61 = vector.load %arg14[%c0_48, %c0_49] : memref<8x32xf32, #tpu.memory_space<vmem>>, vector<8x32xf32>
    tpu.vector_store %arg14[%c0_48, %c0_49], %60 {strides = array<i32>} : memref<8x32xf32, #tpu.memory_space<vmem>>, vector<8x32xf32>,
    %62 = arith.index_cast %53 : i32 to index
    %c0_50 = arith.constant 0 : index
    %63 = vector.load %arg12[%62, %c0_50] : memref<64x32xf32, #tpu.memory_space<vmem>>, vector<8x32xf32>
    tpu.vector_store %arg12[%62, %c0_50], %60 {strides = array<i32>} : memref<64x32xf32, #tpu.memory_space<vmem>>, vector<8x32xf32>,
    %c4_i32 = arith.constant 4 : i32
    %c8_i32_51 = arith.constant 8 : i32
    %64 = arith.muli %c4_i32, %c8_i32_51 : i32
    %c0_i32_52 = arith.constant 0 : i32
    %65 = arith.addi %64, %c0_i32_52 : i32
    %66 = tpu.assume_multiple %65, 8 : i32
    %c0_53 = arith.constant 0 : index
    %c0_54 = arith.constant 0 : index
    %67 = vector.load %arg14[%c0_53, %c0_54] : memref<8x32xf32, #tpu.memory_space<vmem>>, vector<8x32xf32>
    %68 = arith.index_cast %66 : i32 to index
    %c0_55 = arith.constant 0 : index
    %69 = vector.load %arg12[%68, %c0_55] : memref<64x32xf32, #tpu.memory_space<vmem>>, vector<8x32xf32>
    %cst_56 = arith.constant dense<0.000000e+00> : vector<8x32xf32>
    %70 = tpu.matmul %67, %6, %cst_56 {dimension_numbers = #tpu.dot_dimension_numbers<[1], [0], [0], [1], [0, 0, 1, 1], [], []>} : vector<8x32xf32>, vector<32x32xf32>, vector<8x32xf32> -> vector<8x32xf32>
    %71 = arith.addf %69, %70 : vector<8x32xf32>
    %cst_57 = arith.constant 0.000000e+00 : f32
    %72 = vector.broadcast %cst_57 : f32 to vector<8x32xf32>
    %73 = arith.maximumf %71, %72 : vector<8x32xf32>
    %c0_58 = arith.constant 0 : index
    %c0_59 = arith.constant 0 : index
    %74 = vector.load %arg14[%c0_58, %c0_59] : memref<8x32xf32, #tpu.memory_space<vmem>>, vector<8x32xf32>
    tpu.vector_store %arg14[%c0_58, %c0_59], %73 {strides = array<i32>} : memref<8x32xf32, #tpu.memory_space<vmem>>, vector<8x32xf32>,
    %75 = arith.index_cast %66 : i32 to index
    %c0_60 = arith.constant 0 : index
    %76 = vector.load %arg12[%75, %c0_60] : memref<64x32xf32, #tpu.memory_space<vmem>>, vector<8x32xf32>
    tpu.vector_store %arg12[%75, %c0_60], %73 {strides = array<i32>} : memref<64x32xf32, #tpu.memory_space<vmem>>, vector<8x32xf32>,
    %c5_i32 = arith.constant 5 : i32
    %c8_i32_61 = arith.constant 8 : i32
    %77 = arith.muli %c5_i32, %c8_i32_61 : i32
    %c0_i32_62 = arith.constant 0 : i32
    %78 = arith.addi %77, %c0_i32_62 : i32
    %79 = tpu.assume_multiple %78, 8 : i32
    %c0_63 = arith.constant 0 : index
    %c0_64 = arith.constant 0 : index
    %80 = vector.load %arg14[%c0_63, %c0_64] : memref<8x32xf32, #tpu.memory_space<vmem>>, vector<8x32xf32>
    %81 = arith.index_cast %79 : i32 to index
    %c0_65 = arith.constant 0 : index
    %82 = vector.load %arg12[%81, %c0_65] : memref<64x32xf32, #tpu.memory_space<vmem>>, vector<8x32xf32>
    %cst_66 = arith.constant dense<0.000000e+00> : vector<8x32xf32>
    %83 = tpu.matmul %80, %6, %cst_66 {dimension_numbers = #tpu.dot_dimension_numbers<[1], [0], [0], [1], [0, 0, 1, 1], [], []>} : vector<8x32xf32>, vector<32x32xf32>, vector<8x32xf32> -> vector<8x32xf32>
    %84 = arith.addf %82, %83 : vector<8x32xf32>
    %cst_67 = arith.constant 0.000000e+00 : f32
    %85 = vector.broadcast %cst_67 : f32 to vector<8x32xf32>
    %86 = arith.maximumf %84, %85 : vector<8x32xf32>
    %c0_68 = arith.constant 0 : index
    %c0_69 = arith.constant 0 : index
    %87 = vector.load %arg14[%c0_68, %c0_69] : memref<8x32xf32, #tpu.memory_space<vmem>>, vector<8x32xf32>
    tpu.vector_store %arg14[%c0_68, %c0_69], %86 {strides = array<i32>} : memref<8x32xf32, #tpu.memory_space<vmem>>, vector<8x32xf32>,
    %88 = arith.index_cast %79 : i32 to index
    %c0_70 = arith.constant 0 : index
    %89 = vector.load %arg12[%88, %c0_70] : memref<64x32xf32, #tpu.memory_space<vmem>>, vector<8x32xf32>
    tpu.vector_store %arg12[%88, %c0_70], %86 {strides = array<i32>} : memref<64x32xf32, #tpu.memory_space<vmem>>, vector<8x32xf32>,
    %c6_i32 = arith.constant 6 : i32
    %c8_i32_71 = arith.constant 8 : i32
    %90 = arith.muli %c6_i32, %c8_i32_71 : i32
    %c0_i32_72 = arith.constant 0 : i32
    %91 = arith.addi %90, %c0_i32_72 : i32
    %92 = tpu.assume_multiple %91, 8 : i32
    %c0_73 = arith.constant 0 : index
    %c0_74 = arith.constant 0 : index
    %93 = vector.load %arg14[%c0_73, %c0_74] : memref<8x32xf32, #tpu.memory_space<vmem>>, vector<8x32xf32>
    %94 = arith.index_cast %92 : i32 to index
    %c0_75 = arith.constant 0 : index
    %95 = vector.load %arg12[%94, %c0_75] : memref<64x32xf32, #tpu.memory_space<vmem>>, vector<8x32xf32>
    %cst_76 = arith.constant dense<0.000000e+00> : vector<8x32xf32>
    %96 = tpu.matmul %93, %6, %cst_76 {dimension_numbers = #tpu.dot_dimension_numbers<[1], [0], [0], [1], [0, 0, 1, 1], [], []>} : vector<8x32xf32>, vector<32x32xf32>, vector<8x32xf32> -> vector<8x32xf32>
    %97 = arith.addf %95, %96 : vector<8x32xf32>
    %cst_77 = arith.constant 0.000000e+00 : f32
    %98 = vector.broadcast %cst_77 : f32 to vector<8x32xf32>
    %99 = arith.maximumf %97, %98 : vector<8x32xf32>
    %c0_78 = arith.constant 0 : index
    %c0_79 = arith.constant 0 : index
    %100 = vector.load %arg14[%c0_78, %c0_79] : memref<8x32xf32, #tpu.memory_space<vmem>>, vector<8x32xf32>
    tpu.vector_store %arg14[%c0_78, %c0_79], %99 {strides = array<i32>} : memref<8x32xf32, #tpu.memory_space<vmem>>, vector<8x32xf32>,
    %101 = arith.index_cast %92 : i32 to index
    %c0_80 = arith.constant 0 : index
    %102 = vector.load %arg12[%101, %c0_80] : memref<64x32xf32, #tpu.memory_space<vmem>>, vector<8x32xf32>
    tpu.vector_store %arg12[%101, %c0_80], %99 {strides = array<i32>} : memref<64x32xf32, #tpu.memory_space<vmem>>, vector<8x32xf32>,
    %c7_i32 = arith.constant 7 : i32
    %c8_i32_81 = arith.constant 8 : i32
    %103 = arith.muli %c7_i32, %c8_i32_81 : i32
    %c0_i32_82 = arith.constant 0 : i32
    %104 = arith.addi %103, %c0_i32_82 : i32
    %105 = tpu.assume_multiple %104, 8 : i32
    %c0_83 = arith.constant 0 : index
    %c0_84 = arith.constant 0 : index
    %106 = vector.load %arg14[%c0_83, %c0_84] : memref<8x32xf32, #tpu.memory_space<vmem>>, vector<8x32xf32>
    %107 = arith.index_cast %105 : i32 to index
    %c0_85 = arith.constant 0 : index
    %108 = vector.load %arg12[%107, %c0_85] : memref<64x32xf32, #tpu.memory_space<vmem>>, vector<8x32xf32>
    %cst_86 = arith.constant dense<0.000000e+00> : vector<8x32xf32>
    %109 = tpu.matmul %106, %6, %cst_86 {dimension_numbers = #tpu.dot_dimension_numbers<[1], [0], [0], [1], [0, 0, 1, 1], [], []>} : vector<8x32xf32>, vector<32x32xf32>, vector<8x32xf32> -> vector<8x32xf32>
    %110 = arith.addf %108, %109 : vector<8x32xf32>
    %cst_87 = arith.constant 0.000000e+00 : f32
    %111 = vector.broadcast %cst_87 : f32 to vector<8x32xf32>
    %112 = arith.maximumf %110, %111 : vector<8x32xf32>
    %c0_88 = arith.constant 0 : index
    %c0_89 = arith.constant 0 : index
    %113 = vector.load %arg14[%c0_88, %c0_89] : memref<8x32xf32, #tpu.memory_space<vmem>>, vector<8x32xf32>
    tpu.vector_store %arg14[%c0_88, %c0_89], %112 {strides = array<i32>} : memref<8x32xf32, #tpu.memory_space<vmem>>, vector<8x32xf32>,
    %114 = arith.index_cast %105 : i32 to index
    %c0_90 = arith.constant 0 : index
    %115 = vector.load %arg12[%114, %c0_90] : memref<64x32xf32, #tpu.memory_space<vmem>>, vector<8x32xf32>
    tpu.vector_store %arg12[%114, %c0_90], %112 {strides = array<i32>} : memref<64x32xf32, #tpu.memory_space<vmem>>, vector<8x32xf32>,
    %c8_i32_91 = arith.constant 8 : i32
    %c0_92 = arith.constant 0 : index
    %c0_93 = arith.constant 0 : index
    %116 = vector.load %arg12[%c0_92, %c0_93] : memref<64x32xf32, #tpu.memory_space<vmem>>, vector<64x32xf32>
    %c0_94 = arith.constant 0 : index
    %c0_95 = arith.constant 0 : index
    %117 = vector.load %arg6[%c0_94, %c0_95] : memref<32x32xf32, #tpu.memory_space<vmem>>, vector<32x32xf32>
    %c0_96 = arith.constant 0 : index
    %c0_97 = arith.constant 0 : index
    %118 = vector.load %arg7[%c0_96, %c0_97] : memref<32x32xf32, #tpu.memory_space<vmem>>, vector<32x32xf32>
    %c0_98 = arith.constant 0 : index
    %c0_99 = arith.constant 0 : index
    %119 = vector.load %arg8[%c0_98, %c0_99] : memref<1x32xf32, #tpu.memory_space<vmem>>, vector<1x32xf32>
    %cst_100 = arith.constant dense<0.000000e+00> : vector<64x32xf32>
    %120 = tpu.matmul %116, %117, %cst_100 {dimension_numbers = #tpu.dot_dimension_numbers<[1], [0], [0], [1], [0, 0, 1, 1], [], []>} : vector<64x32xf32>, vector<32x32xf32>, vector<64x32xf32> -> vector<64x32xf32>
    %121 = vector.broadcast %119 : vector<1x32xf32> to vector<64x32xf32>
    %122 = arith.addf %120, %121 : vector<64x32xf32>
    %c0_101 = arith.constant 0 : index
    %c0_102 = arith.constant 0 : index
    %123 = vector.load %arg13[%c0_101, %c0_102] : memref<64x32xf32, #tpu.memory_space<vmem>>, vector<64x32xf32>
    tpu.vector_store %arg13[%c0_101, %c0_102], %122 {strides = array<i32>} : memref<64x32xf32, #tpu.memory_space<vmem>>, vector<64x32xf32>,
    %c0_i32_103 = arith.constant 0 : i32
    %c8_i32_104 = arith.constant 8 : i32
    %124 = arith.muli %c0_i32_103, %c8_i32_104 : i32
    %c0_i32_105 = arith.constant 0 : i32
    %125 = arith.addi %124, %c0_i32_105 : i32
    %126 = tpu.assume_multiple %125, 8 : i32
    %c0_106 = arith.constant 0 : index
    %c0_107 = arith.constant 0 : index
    %127 = vector.load %arg15[%c0_106, %c0_107] : memref<8x32xf32, #tpu.memory_space<vmem>>, vector<8x32xf32>
    %128 = arith.index_cast %126 : i32 to index
    %c0_108 = arith.constant 0 : index
    %129 = vector.load %arg13[%128, %c0_108] : memref<64x32xf32, #tpu.memory_space<vmem>>, vector<8x32xf32>
    %cst_109 = arith.constant dense<0.000000e+00> : vector<8x32xf32>
    %130 = tpu.matmul %127, %118, %cst_109 {dimension_numbers = #tpu.dot_dimension_numbers<[1], [0], [0], [1], [0, 0, 1, 1], [], []>} : vector<8x32xf32>, vector<32x32xf32>, vector<8x32xf32> -> vector<8x32xf32>
    %131 = arith.addf %129, %130 : vector<8x32xf32>
    %cst_110 = arith.constant 0.000000e+00 : f32
    %132 = vector.broadcast %cst_110 : f32 to vector<8x32xf32>
    %133 = arith.maximumf %131, %132 : vector<8x32xf32>
    %c0_111 = arith.constant 0 : index
    %c0_112 = arith.constant 0 : index
    %134 = vector.load %arg15[%c0_111, %c0_112] : memref<8x32xf32, #tpu.memory_space<vmem>>, vector<8x32xf32>
    tpu.vector_store %arg15[%c0_111, %c0_112], %133 {strides = array<i32>} : memref<8x32xf32, #tpu.memory_space<vmem>>, vector<8x32xf32>,
    %135 = arith.index_cast %126 : i32 to index
    %c0_113 = arith.constant 0 : index
    %136 = vector.load %arg13[%135, %c0_113] : memref<64x32xf32, #tpu.memory_space<vmem>>, vector<8x32xf32>
    tpu.vector_store %arg13[%135, %c0_113], %133 {strides = array<i32>} : memref<64x32xf32, #tpu.memory_space<vmem>>, vector<8x32xf32>,
    %c1_i32_114 = arith.constant 1 : i32
    %c8_i32_115 = arith.constant 8 : i32
    %137 = arith.muli %c1_i32_114, %c8_i32_115 : i32
    %c0_i32_116 = arith.constant 0 : i32
    %138 = arith.addi %137, %c0_i32_116 : i32
    %139 = tpu.assume_multiple %138, 8 : i32
    %c0_117 = arith.constant 0 : index
    %c0_118 = arith.constant 0 : index
    %140 = vector.load %arg15[%c0_117, %c0_118] : memref<8x32xf32, #tpu.memory_space<vmem>>, vector<8x32xf32>
    %141 = arith.index_cast %139 : i32 to index
    %c0_119 = arith.constant 0 : index
    %142 = vector.load %arg13[%141, %c0_119] : memref<64x32xf32, #tpu.memory_space<vmem>>, vector<8x32xf32>
    %cst_120 = arith.constant dense<0.000000e+00> : vector<8x32xf32>
    %143 = tpu.matmul %140, %118, %cst_120 {dimension_numbers = #tpu.dot_dimension_numbers<[1], [0], [0], [1], [0, 0, 1, 1], [], []>} : vector<8x32xf32>, vector<32x32xf32>, vector<8x32xf32> -> vector<8x32xf32>
    %144 = arith.addf %142, %143 : vector<8x32xf32>
    %cst_121 = arith.constant 0.000000e+00 : f32
    %145 = vector.broadcast %cst_121 : f32 to vector<8x32xf32>
    %146 = arith.maximumf %144, %145 : vector<8x32xf32>
    %c0_122 = arith.constant 0 : index
    %c0_123 = arith.constant 0 : index
    %147 = vector.load %arg15[%c0_122, %c0_123] : memref<8x32xf32, #tpu.memory_space<vmem>>, vector<8x32xf32>
    tpu.vector_store %arg15[%c0_122, %c0_123], %146 {strides = array<i32>} : memref<8x32xf32, #tpu.memory_space<vmem>>, vector<8x32xf32>,
    %148 = arith.index_cast %139 : i32 to index
    %c0_124 = arith.constant 0 : index
    %149 = vector.load %arg13[%148, %c0_124] : memref<64x32xf32, #tpu.memory_space<vmem>>, vector<8x32xf32>
    tpu.vector_store %arg13[%148, %c0_124], %146 {strides = array<i32>} : memref<64x32xf32, #tpu.memory_space<vmem>>, vector<8x32xf32>,
    %c2_i32_125 = arith.constant 2 : i32
    %c8_i32_126 = arith.constant 8 : i32
    %150 = arith.muli %c2_i32_125, %c8_i32_126 : i32
    %c0_i32_127 = arith.constant 0 : i32
    %151 = arith.addi %150, %c0_i32_127 : i32
    %152 = tpu.assume_multiple %151, 8 : i32
    %c0_128 = arith.constant 0 : index
    %c0_129 = arith.constant 0 : index
    %153 = vector.load %arg15[%c0_128, %c0_129] : memref<8x32xf32, #tpu.memory_space<vmem>>, vector<8x32xf32>
    %154 = arith.index_cast %152 : i32 to index
    %c0_130 = arith.constant 0 : index
    %155 = vector.load %arg13[%154, %c0_130] : memref<64x32xf32, #tpu.memory_space<vmem>>, vector<8x32xf32>
    %cst_131 = arith.constant dense<0.000000e+00> : vector<8x32xf32>
    %156 = tpu.matmul %153, %118, %cst_131 {dimension_numbers = #tpu.dot_dimension_numbers<[1], [0], [0], [1], [0, 0, 1, 1], [], []>} : vector<8x32xf32>, vector<32x32xf32>, vector<8x32xf32> -> vector<8x32xf32>
    %157 = arith.addf %155, %156 : vector<8x32xf32>
    %cst_132 = arith.constant 0.000000e+00 : f32
    %158 = vector.broadcast %cst_132 : f32 to vector<8x32xf32>
    %159 = arith.maximumf %157, %158 : vector<8x32xf32>
    %c0_133 = arith.constant 0 : index
    %c0_134 = arith.constant 0 : index
    %160 = vector.load %arg15[%c0_133, %c0_134] : memref<8x32xf32, #tpu.memory_space<vmem>>, vector<8x32xf32>
    tpu.vector_store %arg15[%c0_133, %c0_134], %159 {strides = array<i32>} : memref<8x32xf32, #tpu.memory_space<vmem>>, vector<8x32xf32>,
    %161 = arith.index_cast %152 : i32 to index
    %c0_135 = arith.constant 0 : index
    %162 = vector.load %arg13[%161, %c0_135] : memref<64x32xf32, #tpu.memory_space<vmem>>, vector<8x32xf32>
    tpu.vector_store %arg13[%161, %c0_135], %159 {strides = array<i32>} : memref<64x32xf32, #tpu.memory_space<vmem>>, vector<8x32xf32>,
    %c3_i32_136 = arith.constant 3 : i32
    %c8_i32_137 = arith.constant 8 : i32
    %163 = arith.muli %c3_i32_136, %c8_i32_137 : i32
    %c0_i32_138 = arith.constant 0 : i32
    %164 = arith.addi %163, %c0_i32_138 : i32
    %165 = tpu.assume_multiple %164, 8 : i32
    %c0_139 = arith.constant 0 : index
    %c0_140 = arith.constant 0 : index
    %166 = vector.load %arg15[%c0_139, %c0_140] : memref<8x32xf32, #tpu.memory_space<vmem>>, vector<8x32xf32>
    %167 = arith.index_cast %165 : i32 to index
    %c0_141 = arith.constant 0 : index
    %168 = vector.load %arg13[%167, %c0_141] : memref<64x32xf32, #tpu.memory_space<vmem>>, vector<8x32xf32>
    %cst_142 = arith.constant dense<0.000000e+00> : vector<8x32xf32>
    %169 = tpu.matmul %166, %118, %cst_142 {dimension_numbers = #tpu.dot_dimension_numbers<[1], [0], [0], [1], [0, 0, 1, 1], [], []>} : vector<8x32xf32>, vector<32x32xf32>, vector<8x32xf32> -> vector<8x32xf32>
    %170 = arith.addf %168, %169 : vector<8x32xf32>
    %cst_143 = arith.constant 0.000000e+00 : f32
    %171 = vector.broadcast %cst_143 : f32 to vector<8x32xf32>
    %172 = arith.maximumf %170, %171 : vector<8x32xf32>
    %c0_144 = arith.constant 0 : index
    %c0_145 = arith.constant 0 : index
    %173 = vector.load %arg15[%c0_144, %c0_145] : memref<8x32xf32, #tpu.memory_space<vmem>>, vector<8x32xf32>
    tpu.vector_store %arg15[%c0_144, %c0_145], %172 {strides = array<i32>} : memref<8x32xf32, #tpu.memory_space<vmem>>, vector<8x32xf32>,
    %174 = arith.index_cast %165 : i32 to index
    %c0_146 = arith.constant 0 : index
    %175 = vector.load %arg13[%174, %c0_146] : memref<64x32xf32, #tpu.memory_space<vmem>>, vector<8x32xf32>
    tpu.vector_store %arg13[%174, %c0_146], %172 {strides = array<i32>} : memref<64x32xf32, #tpu.memory_space<vmem>>, vector<8x32xf32>,
    %c4_i32_147 = arith.constant 4 : i32
    %c8_i32_148 = arith.constant 8 : i32
    %176 = arith.muli %c4_i32_147, %c8_i32_148 : i32
    %c0_i32_149 = arith.constant 0 : i32
    %177 = arith.addi %176, %c0_i32_149 : i32
    %178 = tpu.assume_multiple %177, 8 : i32
    %c0_150 = arith.constant 0 : index
    %c0_151 = arith.constant 0 : index
    %179 = vector.load %arg15[%c0_150, %c0_151] : memref<8x32xf32, #tpu.memory_space<vmem>>, vector<8x32xf32>
    %180 = arith.index_cast %178 : i32 to index
    %c0_152 = arith.constant 0 : index
    %181 = vector.load %arg13[%180, %c0_152] : memref<64x32xf32, #tpu.memory_space<vmem>>, vector<8x32xf32>
    %cst_153 = arith.constant dense<0.000000e+00> : vector<8x32xf32>
    %182 = tpu.matmul %179, %118, %cst_153 {dimension_numbers = #tpu.dot_dimension_numbers<[1], [0], [0], [1], [0, 0, 1, 1], [], []>} : vector<8x32xf32>, vector<32x32xf32>, vector<8x32xf32> -> vector<8x32xf32>
    %183 = arith.addf %181, %182 : vector<8x32xf32>
    %cst_154 = arith.constant 0.000000e+00 : f32
    %184 = vector.broadcast %cst_154 : f32 to vector<8x32xf32>
    %185 = arith.maximumf %183, %184 : vector<8x32xf32>
    %c0_155 = arith.constant 0 : index
    %c0_156 = arith.constant 0 : index
    %186 = vector.load %arg15[%c0_155, %c0_156] : memref<8x32xf32, #tpu.memory_space<vmem>>, vector<8x32xf32>
    tpu.vector_store %arg15[%c0_155, %c0_156], %185 {strides = array<i32>} : memref<8x32xf32, #tpu.memory_space<vmem>>, vector<8x32xf32>,
    %187 = arith.index_cast %178 : i32 to index
    %c0_157 = arith.constant 0 : index
    %188 = vector.load %arg13[%187, %c0_157] : memref<64x32xf32, #tpu.memory_space<vmem>>, vector<8x32xf32>
    tpu.vector_store %arg13[%187, %c0_157], %185 {strides = array<i32>} : memref<64x32xf32, #tpu.memory_space<vmem>>, vector<8x32xf32>,
    %c5_i32_158 = arith.constant 5 : i32
    %c8_i32_159 = arith.constant 8 : i32
    %189 = arith.muli %c5_i32_158, %c8_i32_159 : i32
    %c0_i32_160 = arith.constant 0 : i32
    %190 = arith.addi %189, %c0_i32_160 : i32
    %191 = tpu.assume_multiple %190, 8 : i32
    %c0_161 = arith.constant 0 : index
    %c0_162 = arith.constant 0 : index
    %192 = vector.load %arg15[%c0_161, %c0_162] : memref<8x32xf32, #tpu.memory_space<vmem>>, vector<8x32xf32>
    %193 = arith.index_cast %191 : i32 to index
    %c0_163 = arith.constant 0 : index
    %194 = vector.load %arg13[%193, %c0_163] : memref<64x32xf32, #tpu.memory_space<vmem>>, vector<8x32xf32>
    %cst_164 = arith.constant dense<0.000000e+00> : vector<8x32xf32>
    %195 = tpu.matmul %192, %118, %cst_164 {dimension_numbers = #tpu.dot_dimension_numbers<[1], [0], [0], [1], [0, 0, 1, 1], [], []>} : vector<8x32xf32>, vector<32x32xf32>, vector<8x32xf32> -> vector<8x32xf32>
    %196 = arith.addf %194, %195 : vector<8x32xf32>
    %cst_165 = arith.constant 0.000000e+00 : f32
    %197 = vector.broadcast %cst_165 : f32 to vector<8x32xf32>
    %198 = arith.maximumf %196, %197 : vector<8x32xf32>
    %c0_166 = arith.constant 0 : index
    %c0_167 = arith.constant 0 : index
    %199 = vector.load %arg15[%c0_166, %c0_167] : memref<8x32xf32, #tpu.memory_space<vmem>>, vector<8x32xf32>
    tpu.vector_store %arg15[%c0_166, %c0_167], %198 {strides = array<i32>} : memref<8x32xf32, #tpu.memory_space<vmem>>, vector<8x32xf32>,
    %200 = arith.index_cast %191 : i32 to index
    %c0_168 = arith.constant 0 : index
    %201 = vector.load %arg13[%200, %c0_168] : memref<64x32xf32, #tpu.memory_space<vmem>>, vector<8x32xf32>
    tpu.vector_store %arg13[%200, %c0_168], %198 {strides = array<i32>} : memref<64x32xf32, #tpu.memory_space<vmem>>, vector<8x32xf32>,
    %c6_i32_169 = arith.constant 6 : i32
    %c8_i32_170 = arith.constant 8 : i32
    %202 = arith.muli %c6_i32_169, %c8_i32_170 : i32
    %c0_i32_171 = arith.constant 0 : i32
    %203 = arith.addi %202, %c0_i32_171 : i32
    %204 = tpu.assume_multiple %203, 8 : i32
    %c0_172 = arith.constant 0 : index
    %c0_173 = arith.constant 0 : index
    %205 = vector.load %arg15[%c0_172, %c0_173] : memref<8x32xf32, #tpu.memory_space<vmem>>, vector<8x32xf32>
    %206 = arith.index_cast %204 : i32 to index
    %c0_174 = arith.constant 0 : index
    %207 = vector.load %arg13[%206, %c0_174] : memref<64x32xf32, #tpu.memory_space<vmem>>, vector<8x32xf32>
    %cst_175 = arith.constant dense<0.000000e+00> : vector<8x32xf32>
    %208 = tpu.matmul %205, %118, %cst_175 {dimension_numbers = #tpu.dot_dimension_numbers<[1], [0], [0], [1], [0, 0, 1, 1], [], []>} : vector<8x32xf32>, vector<32x32xf32>, vector<8x32xf32> -> vector<8x32xf32>
    %209 = arith.addf %207, %208 : vector<8x32xf32>
    %cst_176 = arith.constant 0.000000e+00 : f32
    %210 = vector.broadcast %cst_176 : f32 to vector<8x32xf32>
    %211 = arith.maximumf %209, %210 : vector<8x32xf32>
    %c0_177 = arith.constant 0 : index
    %c0_178 = arith.constant 0 : index
    %212 = vector.load %arg15[%c0_177, %c0_178] : memref<8x32xf32, #tpu.memory_space<vmem>>, vector<8x32xf32>
    tpu.vector_store %arg15[%c0_177, %c0_178], %211 {strides = array<i32>} : memref<8x32xf32, #tpu.memory_space<vmem>>, vector<8x32xf32>,
    %213 = arith.index_cast %204 : i32 to index
    %c0_179 = arith.constant 0 : index
    %214 = vector.load %arg13[%213, %c0_179] : memref<64x32xf32, #tpu.memory_space<vmem>>, vector<8x32xf32>
    tpu.vector_store %arg13[%213, %c0_179], %211 {strides = array<i32>} : memref<64x32xf32, #tpu.memory_space<vmem>>, vector<8x32xf32>,
    %c7_i32_180 = arith.constant 7 : i32
    %c8_i32_181 = arith.constant 8 : i32
    %215 = arith.muli %c7_i32_180, %c8_i32_181 : i32
    %c0_i32_182 = arith.constant 0 : i32
    %216 = arith.addi %215, %c0_i32_182 : i32
    %217 = tpu.assume_multiple %216, 8 : i32
    %c0_183 = arith.constant 0 : index
    %c0_184 = arith.constant 0 : index
    %218 = vector.load %arg15[%c0_183, %c0_184] : memref<8x32xf32, #tpu.memory_space<vmem>>, vector<8x32xf32>
    %219 = arith.index_cast %217 : i32 to index
    %c0_185 = arith.constant 0 : index
    %220 = vector.load %arg13[%219, %c0_185] : memref<64x32xf32, #tpu.memory_space<vmem>>, vector<8x32xf32>
    %cst_186 = arith.constant dense<0.000000e+00> : vector<8x32xf32>
    %221 = tpu.matmul %218, %118, %cst_186 {dimension_numbers = #tpu.dot_dimension_numbers<[1], [0], [0], [1], [0, 0, 1, 1], [], []>} : vector<8x32xf32>, vector<32x32xf32>, vector<8x32xf32> -> vector<8x32xf32>
    %222 = arith.addf %220, %221 : vector<8x32xf32>
    %cst_187 = arith.constant 0.000000e+00 : f32
    %223 = vector.broadcast %cst_187 : f32 to vector<8x32xf32>
    %224 = arith.maximumf %222, %223 : vector<8x32xf32>
    %c0_188 = arith.constant 0 : index
    %c0_189 = arith.constant 0 : index
    %225 = vector.load %arg15[%c0_188, %c0_189] : memref<8x32xf32, #tpu.memory_space<vmem>>, vector<8x32xf32>
    tpu.vector_store %arg15[%c0_188, %c0_189], %224 {strides = array<i32>} : memref<8x32xf32, #tpu.memory_space<vmem>>, vector<8x32xf32>,
    %226 = arith.index_cast %217 : i32 to index
    %c0_190 = arith.constant 0 : index
    %227 = vector.load %arg13[%226, %c0_190] : memref<64x32xf32, #tpu.memory_space<vmem>>, vector<8x32xf32>
    tpu.vector_store %arg13[%226, %c0_190], %224 {strides = array<i32>} : memref<64x32xf32, #tpu.memory_space<vmem>>, vector<8x32xf32>,
    %c8_i32_191 = arith.constant 8 : i32
    %c0_192 = arith.constant 0 : index
    %c0_193 = arith.constant 0 : index
    %228 = vector.load %arg13[%c0_192, %c0_193] : memref<64x32xf32, #tpu.memory_space<vmem>>, vector<64x32xf32>
    %c0_194 = arith.constant 0 : index
    %c0_195 = arith.constant 0 : index
    %229 = vector.load %arg9[%c0_194, %c0_195] : memref<32x8xf32, #tpu.memory_space<vmem>>, vector<32x8xf32>
    %cst_196 = arith.constant dense<0.000000e+00> : vector<64x8xf32>
    %230 = tpu.matmul %228, %229, %cst_196 {dimension_numbers = #tpu.dot_dimension_numbers<[1], [0], [0], [1], [0, 0, 1, 1], [], []>} : vector<64x32xf32>, vector<32x8xf32>, vector<64x8xf32> -> vector<64x8xf32>
    %c0_197 = arith.constant 0 : index
    %c0_198 = arith.constant 0 : index
    %231 = vector.load %arg10[%c0_197, %c0_198] : memref<1x8xf32, #tpu.memory_space<vmem>>, vector<1x8xf32>
    %232 = vector.broadcast %231 : vector<1x8xf32> to vector<64x8xf32>
    %233 = arith.addf %230, %232 : vector<64x8xf32>
    %234 = vector.shape_cast %233 : vector<64x8xf32> to vector<8x8x8xf32>
    %c0_199 = arith.constant 0 : index
    %c0_200 = arith.constant 0 : index
    %c0_201 = arith.constant 0 : index
    %235 = vector.load %arg11[%c0_199, %c0_200, %c0_201] : memref<8x8x8xf32, #tpu.memory_space<vmem>>, vector<8x8x8xf32>
    tpu.vector_store %arg11[%c0_199, %c0_200, %c0_201], %234 {strides = array<i32>} : memref<8x8x8xf32, #tpu.memory_space<vmem>>, vector<8x8x8xf32>,
    return
  }
  func.func @transform_0(%arg0: i32, %arg1: i32) -> (i32, i32, i32) {
    %c0_i32 = arith.constant 0 : i32
    %c0_i32_0 = arith.constant 0 : i32
    return %arg1, %arg0, %c0_i32 : i32, i32, i32
  }
  func.func @transform_1(%arg0: i32, %arg1: i32) -> (i32, i32) {
    %c0_i32 = arith.constant 0 : i32
    %c0_i32_0 = arith.constant 0 : i32
    %c0_i32_1 = arith.constant 0 : i32
    return %c0_i32, %c0_i32_0 : i32, i32
  }
  func.func @transform_2(%arg0: i32, %arg1: i32) -> (i32, i32) {
    %c0_i32 = arith.constant 0 : i32
    %c0_i32_0 = arith.constant 0 : i32
    %c0_i32_1 = arith.constant 0 : i32
    return %c0_i32, %c0_i32_0 : i32, i32
  }
  func.func @transform_3(%arg0: i32, %arg1: i32) -> (i32, i32) {
    %c0_i32 = arith.constant 0 : i32
    %c0_i32_0 = arith.constant 0 : i32
    %c0_i32_1 = arith.constant 0 : i32
    return %c0_i32, %c0_i32_0 : i32, i32
  }
  func.func @transform_4(%arg0: i32, %arg1: i32) -> (i32, i32) {
    %c0_i32 = arith.constant 0 : i32
    %c0_i32_0 = arith.constant 0 : i32
    %c0_i32_1 = arith.constant 0 : i32
    return %c0_i32, %c0_i32_0 : i32, i32
  }
  func.func @transform_5(%arg0: i32, %arg1: i32) -> (i32, i32) {
    %c0_i32 = arith.constant 0 : i32
    %c0_i32_0 = arith.constant 0 : i32
    %c0_i32_1 = arith.constant 0 : i32
    return %c0_i32, %c0_i32_0 : i32, i32
  }
  func.func @transform_6(%arg0: i32, %arg1: i32) -> (i32, i32) {
    %c0_i32 = arith.constant 0 : i32
    %c0_i32_0 = arith.constant 0 : i32
    %c0_i32_1 = arith.constant 0 : i32
    return %c0_i32, %c0_i32_0 : i32, i32
  }
  func.func @transform_7(%arg0: i32, %arg1: i32) -> (i32, i32) {
    %c0_i32 = arith.constant 0 : i32
    %c0_i32_0 = arith.constant 0 : i32
    %c0_i32_1 = arith.constant 0 : i32
    return %c0_i32, %c0_i32_0 : i32, i32
  }
  func.func @transform_8(%arg0: i32, %arg1: i32) -> (i32, i32) {
    %c0_i32 = arith.constant 0 : i32
    %c0_i32_0 = arith.constant 0 : i32
    %c0_i32_1 = arith.constant 0 : i32
    return %c0_i32, %c0_i32_0 : i32, i32
  }
  func.func @transform_9(%arg0: i32, %arg1: i32) -> (i32, i32, i32) {
    %c0_i32 = arith.constant 0 : i32
    %c0_i32_0 = arith.constant 0 : i32
    return %arg1, %arg0, %c0_i32 : i32, i32, i32
  }
}

module attributes {stable_mosaic.version = 11 : i64} {
  func.func @kernel(%arg0: i32, %arg1: i32, %arg2: memref<8x8x32xf32, #tpu.memory_space<vmem>>, %arg3: memref<32x32xf32, #tpu.memory_space<vmem>>, %arg4: memref<32x32xf32, #tpu.memory_space<vmem>>, %arg5: memref<1x32xf32, #tpu.memory_space<vmem>>, %arg6: memref<32x32xf32, #tpu.memory_space<vmem>>, %arg7: memref<32x32xf32, #tpu.memory_space<vmem>>, %arg8: memref<1x32xf32, #tpu.memory_space<vmem>>, %arg9: memref<32x8xf32, #tpu.memory_space<vmem>>, %arg10: memref<1x8xf32, #tpu.memory_space<vmem>>, %arg11: memref<8x8x8xf32, #tpu.memory_space<vmem>>, %arg12: memref<64x32xf32, #tpu.memory_space<vmem>>, %arg13: memref<64x32xf32, #tpu.memory_space<vmem>>, %arg14: memref<8x32xf32, #tpu.memory_space<vmem>>, %arg15: memref<8x32xf32, #tpu.memory_space<vmem>>) attributes {dimension_semantics = [#tpu.dimension_semantics<parallel>, #tpu.dimension_semantics<arbitrary>], iteration_bounds = array<i64: 1, 1>, scalar_prefetch = 0 : i64, scratch_operands = 4 : i64, tpu.core_type = #tpu.core_type<tc>, window_params = [{transform_indices = @transform_0, window_bounds = array<i64: 8, 8, 32>}, {pipeline_mode = #tpu.pipeline_mode<synchronous>, transform_indices = @transform_1, window_bounds = array<i64: 32, 32>}, {pipeline_mode = #tpu.pipeline_mode<synchronous>, transform_indices = @transform_2, window_bounds = array<i64: 32, 32>}, {pipeline_mode = #tpu.pipeline_mode<synchronous>, transform_indices = @transform_3, window_bounds = array<i64: 1, 32>}, {pipeline_mode = #tpu.pipeline_mode<synchronous>, transform_indices = @transform_4, window_bounds = array<i64: 32, 32>}, {pipeline_mode = #tpu.pipeline_mode<synchronous>, transform_indices = @transform_5, window_bounds = array<i64: 32, 32>}, {pipeline_mode = #tpu.pipeline_mode<synchronous>, transform_indices = @transform_6, window_bounds = array<i64: 1, 32>}, {pipeline_mode = #tpu.pipeline_mode<synchronous>, transform_indices = @transform_7, window_bounds = array<i64: 32, 8>}, {pipeline_mode = #tpu.pipeline_mode<synchronous>, transform_indices = @transform_8, window_bounds = array<i64: 1, 8>}, {transform_indices = @transform_9, window_bounds = array<i64: 8, 8, 8>}]} {
    %c0_i32 = arith.constant 0 : i32
    %0 = arith.cmpi eq, %arg1, %c0_i32 : i32
    %1 = arith.extui %0 : i1 to i32
    %c0_i32_0 = arith.constant 0 : i32
    %2 = arith.cmpi ne, %1, %c0_i32_0 : i32
    scf.if %2 {
      %cst_202 = arith.constant 0.000000e+00 : f32
      %236 = vector.broadcast %cst_202 : f32 to vector<8x32xf32>
      %c0_203 = arith.constant 0 : index
      %c0_204 = arith.constant 0 : index
      %237 = vector.load %arg14[%c0_203, %c0_204] : memref<8x32xf32, #tpu.memory_space<vmem>>, vector<8x32xf32>
      tpu.vector_store %arg14[%c0_203, %c0_204], %236 {strides = array<i32>} : memref<8x32xf32, #tpu.memory_space<vmem>>, vector<8x32xf32>,
      %cst_205 = arith.constant 0.000000e+00 : f32
      %238 = vector.broadcast %cst_205 : f32 to vector<8x32xf32>
      %c0_206 = arith.constant 0 : index
      %c0_207 = arith.constant 0 : index
      %239 = vector.load %arg15[%c0_206, %c0_207] : memref<8x32xf32, #tpu.memory_space<vmem>>, vector<8x32xf32>
      tpu.vector_store %arg15[%c0_206, %c0_207], %238 {strides = array<i32>} : memref<8x32xf32, #tpu.memory_space<vmem>>, vector<8x32xf32>,
    } else {
    }
    %c0 = arith.constant 0 : index
    %c0_1 = arith.constant 0 : index
    %c0_2 = arith.constant 0 : index
    %3 = vector.load %arg2[%c0, %c0_1, %c0_2] : memref<8x8x32xf32, #tpu.memory_space<vmem>>, vector<8x8x32xf32>
    %4 = vector.shape_cast %3 : vector<8x8x32xf32> to vector<64x32xf32>
    %c0_3 = arith.constant 0 : index
    %c0_4 = arith.constant 0 : index
    %5 = vector.load %arg3[%c0_3, %c0_4] : memref<32x32xf32, #tpu.memory_space<vmem>>, vector<32x32xf32>
    %c0_5 = arith.constant 0 : index
    %c0_6 = arith.constant 0 : index
    %6 = vector.load %arg4[%c0_5, %c0_6] : memref<32x32xf32, #tpu.memory_space<vmem>>, vector<32x32xf32>
    %c0_7 = arith.constant 0 : index
    %c0_8 = arith.constant 0 : index
    %7 = vector.load %arg5[%c0_7, %c0_8] : memref<1x32xf32, #tpu.memory_space<vmem>>, vector<1x32xf32>
    %cst = arith.constant dense<0.000000e+00> : vector<64x32xf32>
    %8 = tpu.matmul %4, %5, %cst {dimension_numbers = #tpu.dot_dimension_numbers<[1], [0], [0], [1], [0, 0, 1, 1], [], []>} : vector<64x32xf32>, vector<32x32xf32>, vector<64x32xf32> -> vector<64x32xf32>
    %9 = vector.broadcast %7 : vector<1x32xf32> to vector<64x32xf32>
    %10 = arith.addf %8, %9 : vector<64x32xf32>
    %c0_9 = arith.constant 0 : index
    %c0_10 = arith.constant 0 : index
    %11 = vector.load %arg12[%c0_9, %c0_10] : memref<64x32xf32, #tpu.memory_space<vmem>>, vector<64x32xf32>
    tpu.vector_store %arg12[%c0_9, %c0_10], %10 {strides = array<i32>} : memref<64x32xf32, #tpu.memory_space<vmem>>, vector<64x32xf32>,
    %c0_i32_11 = arith.constant 0 : i32
    %c8_i32 = arith.constant 8 : i32
    %12 = arith.muli %c0_i32_11, %c8_i32 : i32
    %c0_i32_12 = arith.constant 0 : i32
    %13 = arith.addi %12, %c0_i32_12 : i32
    %14 = tpu.assume_multiple %13, 8 : i32
    %c0_13 = arith.constant 0 : index
    %c0_14 = arith.constant 0 : index
    %15 = vector.load %arg14[%c0_13, %c0_14] : memref<8x32xf32, #tpu.memory_space<vmem>>, vector<8x32xf32>
    %16 = arith.index_cast %14 : i32 to index
    %c0_15 = arith.constant 0 : index
    %17 = vector.load %arg12[%16, %c0_15] : memref<64x32xf32, #tpu.memory_space<vmem>>, vector<8x32xf32>
    %cst_16 = arith.constant dense<0.000000e+00> : vector<8x32xf32>
    %18 = tpu.matmul %15, %6, %cst_16 {dimension_numbers = #tpu.dot_dimension_numbers<[1], [0], [0], [1], [0, 0, 1, 1], [], []>} : vector<8x32xf32>, vector<32x32xf32>, vector<8x32xf32> -> vector<8x32xf32>
    %19 = arith.addf %17, %18 : vector<8x32xf32>
    %cst_17 = arith.constant 0.000000e+00 : f32
    %20 = vector.broadcast %cst_17 : f32 to vector<8x32xf32>
    %21 = arith.maximumf %19, %20 : vector<8x32xf32>
    %c0_18 = arith.constant 0 : index
    %c0_19 = arith.constant 0 : index
    %22 = vector.load %arg14[%c0_18, %c0_19] : memref<8x32xf32, #tpu.memory_space<vmem>>, vector<8x32xf32>
    tpu.vector_store %arg14[%c0_18, %c0_19], %21 {strides = array<i32>} : memref<8x32xf32, #tpu.memory_space<vmem>>, vector<8x32xf32>,
    %23 = arith.index_cast %14 : i32 to index
    %c0_20 = arith.constant 0 : index
    %24 = vector.load %arg12[%23, %c0_20] : memref<64x32xf32, #tpu.memory_space<vmem>>, vector<8x32xf32>
    tpu.vector_store %arg12[%23, %c0_20], %21 {strides = array<i32>} : memref<64x32xf32, #tpu.memory_space<vmem>>, vector<8x32xf32>,
    %c1_i32 = arith.constant 1 : i32
    %c8_i32_21 = arith.constant 8 : i32
    %25 = arith.muli %c1_i32, %c8_i32_21 : i32
    %c0_i32_22 = arith.constant 0 : i32
    %26 = arith.addi %25, %c0_i32_22 : i32
    %27 = tpu.assume_multiple %26, 8 : i32
    %c0_23 = arith.constant 0 : index
    %c0_24 = arith.constant 0 : index
    %28 = vector.load %arg14[%c0_23, %c0_24] : memref<8x32xf32, #tpu.memory_space<vmem>>, vector<8x32xf32>
    %29 = arith.index_cast %27 : i32 to index
    %c0_25 = arith.constant 0 : index
    %30 = vector.load %arg12[%29, %c0_25] : memref<64x32xf32, #tpu.memory_space<vmem>>, vector<8x32xf32>
    %cst_26 = arith.constant dense<0.000000e+00> : vector<8x32xf32>
    %31 = tpu.matmul %28, %6, %cst_26 {dimension_numbers = #tpu.dot_dimension_numbers<[1], [0], [0], [1], [0, 0, 1, 1], [], []>} : vector<8x32xf32>, vector<32x32xf32>, vector<8x32xf32> -> vector<8x32xf32>
    %32 = arith.addf %30, %31 : vector<8x32xf32>
    %cst_27 = arith.constant 0.000000e+00 : f32
    %33 = vector.broadcast %cst_27 : f32 to vector<8x32xf32>
    %34 = arith.maximumf %32, %33 : vector<8x32xf32>
    %c0_28 = arith.constant 0 : index
    %c0_29 = arith.constant 0 : index
    %35 = vector.load %arg14[%c0_28, %c0_29] : memref<8x32xf32, #tpu.memory_space<vmem>>, vector<8x32xf32>
    tpu.vector_store %arg14[%c0_28, %c0_29], %34 {strides = array<i32>} : memref<8x32xf32, #tpu.memory_space<vmem>>, vector<8x32xf32>,
    %36 = arith.index_cast %27 : i32 to index
    %c0_30 = arith.constant 0 : index
    %37 = vector.load %arg12[%36, %c0_30] : memref<64x32xf32, #tpu.memory_space<vmem>>, vector<8x32xf32>
    tpu.vector_store %arg12[%36, %c0_30], %34 {strides = array<i32>} : memref<64x32xf32, #tpu.memory_space<vmem>>, vector<8x32xf32>,
    %c2_i32 = arith.constant 2 : i32
    %c8_i32_31 = arith.constant 8 : i32
    %38 = arith.muli %c2_i32, %c8_i32_31 : i32
    %c0_i32_32 = arith.constant 0 : i32
    %39 = arith.addi %38, %c0_i32_32 : i32
    %40 = tpu.assume_multiple %39, 8 : i32
    %c0_33 = arith.constant 0 : index
    %c0_34 = arith.constant 0 : index
    %41 = vector.load %arg14[%c0_33, %c0_34] : memref<8x32xf32, #tpu.memory_space<vmem>>, vector<8x32xf32>
    %42 = arith.index_cast %40 : i32 to index
    %c0_35 = arith.constant 0 : index
    %43 = vector.load %arg12[%42, %c0_35] : memref<64x32xf32, #tpu.memory_space<vmem>>, vector<8x32xf32>
    %cst_36 = arith.constant dense<0.000000e+00> : vector<8x32xf32>
    %44 = tpu.matmul %41, %6, %cst_36 {dimension_numbers = #tpu.dot_dimension_numbers<[1], [0], [0], [1], [0, 0, 1, 1], [], []>} : vector<8x32xf32>, vector<32x32xf32>, vector<8x32xf32> -> vector<8x32xf32>
    %45 = arith.addf %43, %44 : vector<8x32xf32>
    %cst_37 = arith.constant 0.000000e+00 : f32
    %46 = vector.broadcast %cst_37 : f32 to vector<8x32xf32>
    %47 = arith.maximumf %45, %46 : vector<8x32xf32>
    %c0_38 = arith.constant 0 : index
    %c0_39 = arith.constant 0 : index
    %48 = vector.load %arg14[%c0_38, %c0_39] : memref<8x32xf32, #tpu.memory_space<vmem>>, vector<8x32xf32>
    tpu.vector_store %arg14[%c0_38, %c0_39], %47 {strides = array<i32>} : memref<8x32xf32, #tpu.memory_space<vmem>>, vector<8x32xf32>,
    %49 = arith.index_cast %40 : i32 to index
    %c0_40 = arith.constant 0 : index
    %50 = vector.load %arg12[%49, %c0_40] : memref<64x32xf32, #tpu.memory_space<vmem>>, vector<8x32xf32>
    tpu.vector_store %arg12[%49, %c0_40], %47 {strides = array<i32>} : memref<64x32xf32, #tpu.memory_space<vmem>>, vector<8x32xf32>,
    %c3_i32 = arith.constant 3 : i32
    %c8_i32_41 = arith.constant 8 : i32
    %51 = arith.muli %c3_i32, %c8_i32_41 : i32
    %c0_i32_42 = arith.constant 0 : i32
    %52 = arith.addi %51, %c0_i32_42 : i32
    %53 = tpu.assume_multiple %52, 8 : i32
    %c0_43 = arith.constant 0 : index
    %c0_44 = arith.constant 0 : index
    %54 = vector.load %arg14[%c0_43, %c0_44] : memref<8x32xf32, #tpu.memory_space<vmem>>, vector<8x32xf32>
    %55 = arith.index_cast %53 : i32 to index
    %c0_45 = arith.constant 0 : index
    %56 = vector.load %arg12[%55, %c0_45] : memref<64x32xf32, #tpu.memory_space<vmem>>, vector<8x32xf32>
    %cst_46 = arith.constant dense<0.000000e+00> : vector<8x32xf32>
    %57 = tpu.matmul %54, %6, %cst_46 {dimension_numbers = #tpu.dot_dimension_numbers<[1], [0], [0], [1], [0, 0, 1, 1], [], []>} : vector<8x32xf32>, vector<32x32xf32>, vector<8x32xf32> -> vector<8x32xf32>
    %58 = arith.addf %56, %57 : vector<8x32xf32>
    %cst_47 = arith.constant 0.000000e+00 : f32
    %59 = vector.broadcast %cst_47 : f32 to vector<8x32xf32>
    %60 = arith.maximumf %58, %59 : vector<8x32xf32>
    %c0_48 = arith.constant 0 : index
    %c0_49 = arith.constant 0 : index
    %61 = vector.load %arg14[%c0_48, %c0_49] : memref<8x32xf32, #tpu.memory_space<vmem>>, vector<8x32xf32>
    tpu.vector_store %arg14[%c0_48, %c0_49], %60 {strides = array<i32>} : memref<8x32xf32, #tpu.memory_space<vmem>>, vector<8x32xf32>,
    %62 = arith.index_cast %53 : i32 to index
    %c0_50 = arith.constant 0 : index
    %63 = vector.load %arg12[%62, %c0_50] : memref<64x32xf32, #tpu.memory_space<vmem>>, vector<8x32xf32>
    tpu.vector_store %arg12[%62, %c0_50], %60 {strides = array<i32>} : memref<64x32xf32, #tpu.memory_space<vmem>>, vector<8x32xf32>,
    %c4_i32 = arith.constant 4 : i32
    %c8_i32_51 = arith.constant 8 : i32
    %64 = arith.muli %c4_i32, %c8_i32_51 : i32
    %c0_i32_52 = arith.constant 0 : i32
    %65 = arith.addi %64, %c0_i32_52 : i32
    %66 = tpu.assume_multiple %65, 8 : i32
    %c0_53 = arith.constant 0 : index
    %c0_54 = arith.constant 0 : index
    %67 = vector.load %arg14[%c0_53, %c0_54] : memref<8x32xf32, #tpu.memory_space<vmem>>, vector<8x32xf32>
    %68 = arith.index_cast %66 : i32 to index
    %c0_55 = arith.constant 0 : index
    %69 = vector.load %arg12[%68, %c0_55] : memref<64x32xf32, #tpu.memory_space<vmem>>, vector<8x32xf32>
    %cst_56 = arith.constant dense<0.000000e+00> : vector<8x32xf32>
    %70 = tpu.matmul %67, %6, %cst_56 {dimension_numbers = #tpu.dot_dimension_numbers<[1], [0], [0], [1], [0, 0, 1, 1], [], []>} : vector<8x32xf32>, vector<32x32xf32>, vector<8x32xf32> -> vector<8x32xf32>
    %71 = arith.addf %69, %70 : vector<8x32xf32>
    %cst_57 = arith.constant 0.000000e+00 : f32
    %72 = vector.broadcast %cst_57 : f32 to vector<8x32xf32>
    %73 = arith.maximumf %71, %72 : vector<8x32xf32>
    %c0_58 = arith.constant 0 : index
    %c0_59 = arith.constant 0 : index
    %74 = vector.load %arg14[%c0_58, %c0_59] : memref<8x32xf32, #tpu.memory_space<vmem>>, vector<8x32xf32>
    tpu.vector_store %arg14[%c0_58, %c0_59], %73 {strides = array<i32>} : memref<8x32xf32, #tpu.memory_space<vmem>>, vector<8x32xf32>,
    %75 = arith.index_cast %66 : i32 to index
    %c0_60 = arith.constant 0 : index
    %76 = vector.load %arg12[%75, %c0_60] : memref<64x32xf32, #tpu.memory_space<vmem>>, vector<8x32xf32>
    tpu.vector_store %arg12[%75, %c0_60], %73 {strides = array<i32>} : memref<64x32xf32, #tpu.memory_space<vmem>>, vector<8x32xf32>,
    %c5_i32 = arith.constant 5 : i32
    %c8_i32_61 = arith.constant 8 : i32
    %77 = arith.muli %c5_i32, %c8_i32_61 : i32
    %c0_i32_62 = arith.constant 0 : i32
    %78 = arith.addi %77, %c0_i32_62 : i32
    %79 = tpu.assume_multiple %78, 8 : i32
    %c0_63 = arith.constant 0 : index
    %c0_64 = arith.constant 0 : index
    %80 = vector.load %arg14[%c0_63, %c0_64] : memref<8x32xf32, #tpu.memory_space<vmem>>, vector<8x32xf32>
    %81 = arith.index_cast %79 : i32 to index
    %c0_65 = arith.constant 0 : index
    %82 = vector.load %arg12[%81, %c0_65] : memref<64x32xf32, #tpu.memory_space<vmem>>, vector<8x32xf32>
    %cst_66 = arith.constant dense<0.000000e+00> : vector<8x32xf32>
    %83 = tpu.matmul %80, %6, %cst_66 {dimension_numbers = #tpu.dot_dimension_numbers<[1], [0], [0], [1], [0, 0, 1, 1], [], []>} : vector<8x32xf32>, vector<32x32xf32>, vector<8x32xf32> -> vector<8x32xf32>
    %84 = arith.addf %82, %83 : vector<8x32xf32>
    %cst_67 = arith.constant 0.000000e+00 : f32
    %85 = vector.broadcast %cst_67 : f32 to vector<8x32xf32>
    %86 = arith.maximumf %84, %85 : vector<8x32xf32>
    %c0_68 = arith.constant 0 : index
    %c0_69 = arith.constant 0 : index
    %87 = vector.load %arg14[%c0_68, %c0_69] : memref<8x32xf32, #tpu.memory_space<vmem>>, vector<8x32xf32>
    tpu.vector_store %arg14[%c0_68, %c0_69], %86 {strides = array<i32>} : memref<8x32xf32, #tpu.memory_space<vmem>>, vector<8x32xf32>,
    %88 = arith.index_cast %79 : i32 to index
    %c0_70 = arith.constant 0 : index
    %89 = vector.load %arg12[%88, %c0_70] : memref<64x32xf32, #tpu.memory_space<vmem>>, vector<8x32xf32>
    tpu.vector_store %arg12[%88, %c0_70], %86 {strides = array<i32>} : memref<64x32xf32, #tpu.memory_space<vmem>>, vector<8x32xf32>,
    %c6_i32 = arith.constant 6 : i32
    %c8_i32_71 = arith.constant 8 : i32
    %90 = arith.muli %c6_i32, %c8_i32_71 : i32
    %c0_i32_72 = arith.constant 0 : i32
    %91 = arith.addi %90, %c0_i32_72 : i32
    %92 = tpu.assume_multiple %91, 8 : i32
    %c0_73 = arith.constant 0 : index
    %c0_74 = arith.constant 0 : index
    %93 = vector.load %arg14[%c0_73, %c0_74] : memref<8x32xf32, #tpu.memory_space<vmem>>, vector<8x32xf32>
    %94 = arith.index_cast %92 : i32 to index
    %c0_75 = arith.constant 0 : index
    %95 = vector.load %arg12[%94, %c0_75] : memref<64x32xf32, #tpu.memory_space<vmem>>, vector<8x32xf32>
    %cst_76 = arith.constant dense<0.000000e+00> : vector<8x32xf32>
    %96 = tpu.matmul %93, %6, %cst_76 {dimension_numbers = #tpu.dot_dimension_numbers<[1], [0], [0], [1], [0, 0, 1, 1], [], []>} : vector<8x32xf32>, vector<32x32xf32>, vector<8x32xf32> -> vector<8x32xf32>
    %97 = arith.addf %95, %96 : vector<8x32xf32>
    %cst_77 = arith.constant 0.000000e+00 : f32
    %98 = vector.broadcast %cst_77 : f32 to vector<8x32xf32>
    %99 = arith.maximumf %97, %98 : vector<8x32xf32>
    %c0_78 = arith.constant 0 : index
    %c0_79 = arith.constant 0 : index
    %100 = vector.load %arg14[%c0_78, %c0_79] : memref<8x32xf32, #tpu.memory_space<vmem>>, vector<8x32xf32>
    tpu.vector_store %arg14[%c0_78, %c0_79], %99 {strides = array<i32>} : memref<8x32xf32, #tpu.memory_space<vmem>>, vector<8x32xf32>,
    %101 = arith.index_cast %92 : i32 to index
    %c0_80 = arith.constant 0 : index
    %102 = vector.load %arg12[%101, %c0_80] : memref<64x32xf32, #tpu.memory_space<vmem>>, vector<8x32xf32>
    tpu.vector_store %arg12[%101, %c0_80], %99 {strides = array<i32>} : memref<64x32xf32, #tpu.memory_space<vmem>>, vector<8x32xf32>,
    %c7_i32 = arith.constant 7 : i32
    %c8_i32_81 = arith.constant 8 : i32
    %103 = arith.muli %c7_i32, %c8_i32_81 : i32
    %c0_i32_82 = arith.constant 0 : i32
    %104 = arith.addi %103, %c0_i32_82 : i32
    %105 = tpu.assume_multiple %104, 8 : i32
    %c0_83 = arith.constant 0 : index
    %c0_84 = arith.constant 0 : index
    %106 = vector.load %arg14[%c0_83, %c0_84] : memref<8x32xf32, #tpu.memory_space<vmem>>, vector<8x32xf32>
    %107 = arith.index_cast %105 : i32 to index
    %c0_85 = arith.constant 0 : index
    %108 = vector.load %arg12[%107, %c0_85] : memref<64x32xf32, #tpu.memory_space<vmem>>, vector<8x32xf32>
    %cst_86 = arith.constant dense<0.000000e+00> : vector<8x32xf32>
    %109 = tpu.matmul %106, %6, %cst_86 {dimension_numbers = #tpu.dot_dimension_numbers<[1], [0], [0], [1], [0, 0, 1, 1], [], []>} : vector<8x32xf32>, vector<32x32xf32>, vector<8x32xf32> -> vector<8x32xf32>
    %110 = arith.addf %108, %109 : vector<8x32xf32>
    %cst_87 = arith.constant 0.000000e+00 : f32
    %111 = vector.broadcast %cst_87 : f32 to vector<8x32xf32>
    %112 = arith.maximumf %110, %111 : vector<8x32xf32>
    %c0_88 = arith.constant 0 : index
    %c0_89 = arith.constant 0 : index
    %113 = vector.load %arg14[%c0_88, %c0_89] : memref<8x32xf32, #tpu.memory_space<vmem>>, vector<8x32xf32>
    tpu.vector_store %arg14[%c0_88, %c0_89], %112 {strides = array<i32>} : memref<8x32xf32, #tpu.memory_space<vmem>>, vector<8x32xf32>,
    %114 = arith.index_cast %105 : i32 to index
    %c0_90 = arith.constant 0 : index
    %115 = vector.load %arg12[%114, %c0_90] : memref<64x32xf32, #tpu.memory_space<vmem>>, vector<8x32xf32>
    tpu.vector_store %arg12[%114, %c0_90], %112 {strides = array<i32>} : memref<64x32xf32, #tpu.memory_space<vmem>>, vector<8x32xf32>,
    %c8_i32_91 = arith.constant 8 : i32
    %c0_92 = arith.constant 0 : index
    %c0_93 = arith.constant 0 : index
    %116 = vector.load %arg12[%c0_92, %c0_93] : memref<64x32xf32, #tpu.memory_space<vmem>>, vector<64x32xf32>
    %c0_94 = arith.constant 0 : index
    %c0_95 = arith.constant 0 : index
    %117 = vector.load %arg6[%c0_94, %c0_95] : memref<32x32xf32, #tpu.memory_space<vmem>>, vector<32x32xf32>
    %c0_96 = arith.constant 0 : index
    %c0_97 = arith.constant 0 : index
    %118 = vector.load %arg7[%c0_96, %c0_97] : memref<32x32xf32, #tpu.memory_space<vmem>>, vector<32x32xf32>
    %c0_98 = arith.constant 0 : index
    %c0_99 = arith.constant 0 : index
    %119 = vector.load %arg8[%c0_98, %c0_99] : memref<1x32xf32, #tpu.memory_space<vmem>>, vector<1x32xf32>
    %cst_100 = arith.constant dense<0.000000e+00> : vector<64x32xf32>
    %120 = tpu.matmul %116, %117, %cst_100 {dimension_numbers = #tpu.dot_dimension_numbers<[1], [0], [0], [1], [0, 0, 1, 1], [], []>} : vector<64x32xf32>, vector<32x32xf32>, vector<64x32xf32> -> vector<64x32xf32>
    %121 = vector.broadcast %119 : vector<1x32xf32> to vector<64x32xf32>
    %122 = arith.addf %120, %121 : vector<64x32xf32>
    %c0_101 = arith.constant 0 : index
    %c0_102 = arith.constant 0 : index
    %123 = vector.load %arg13[%c0_101, %c0_102] : memref<64x32xf32, #tpu.memory_space<vmem>>, vector<64x32xf32>
    tpu.vector_store %arg13[%c0_101, %c0_102], %122 {strides = array<i32>} : memref<64x32xf32, #tpu.memory_space<vmem>>, vector<64x32xf32>,
    %c0_i32_103 = arith.constant 0 : i32
    %c8_i32_104 = arith.constant 8 : i32
    %124 = arith.muli %c0_i32_103, %c8_i32_104 : i32
    %c0_i32_105 = arith.constant 0 : i32
    %125 = arith.addi %124, %c0_i32_105 : i32
    %126 = tpu.assume_multiple %125, 8 : i32
    %c0_106 = arith.constant 0 : index
    %c0_107 = arith.constant 0 : index
    %127 = vector.load %arg15[%c0_106, %c0_107] : memref<8x32xf32, #tpu.memory_space<vmem>>, vector<8x32xf32>
    %128 = arith.index_cast %126 : i32 to index
    %c0_108 = arith.constant 0 : index
    %129 = vector.load %arg13[%128, %c0_108] : memref<64x32xf32, #tpu.memory_space<vmem>>, vector<8x32xf32>
    %cst_109 = arith.constant dense<0.000000e+00> : vector<8x32xf32>
    %130 = tpu.matmul %127, %118, %cst_109 {dimension_numbers = #tpu.dot_dimension_numbers<[1], [0], [0], [1], [0, 0, 1, 1], [], []>} : vector<8x32xf32>, vector<32x32xf32>, vector<8x32xf32> -> vector<8x32xf32>
    %131 = arith.addf %129, %130 : vector<8x32xf32>
    %cst_110 = arith.constant 0.000000e+00 : f32
    %132 = vector.broadcast %cst_110 : f32 to vector<8x32xf32>
    %133 = arith.maximumf %131, %132 : vector<8x32xf32>
    %c0_111 = arith.constant 0 : index
    %c0_112 = arith.constant 0 : index
    %134 = vector.load %arg15[%c0_111, %c0_112] : memref<8x32xf32, #tpu.memory_space<vmem>>, vector<8x32xf32>
    tpu.vector_store %arg15[%c0_111, %c0_112], %133 {strides = array<i32>} : memref<8x32xf32, #tpu.memory_space<vmem>>, vector<8x32xf32>,
    %135 = arith.index_cast %126 : i32 to index
    %c0_113 = arith.constant 0 : index
    %136 = vector.load %arg13[%135, %c0_113] : memref<64x32xf32, #tpu.memory_space<vmem>>, vector<8x32xf32>
    tpu.vector_store %arg13[%135, %c0_113], %133 {strides = array<i32>} : memref<64x32xf32, #tpu.memory_space<vmem>>, vector<8x32xf32>,
    %c1_i32_114 = arith.constant 1 : i32
    %c8_i32_115 = arith.constant 8 : i32
    %137 = arith.muli %c1_i32_114, %c8_i32_115 : i32
    %c0_i32_116 = arith.constant 0 : i32
    %138 = arith.addi %137, %c0_i32_116 : i32
    %139 = tpu.assume_multiple %138, 8 : i32
    %c0_117 = arith.constant 0 : index
    %c0_118 = arith.constant 0 : index
    %140 = vector.load %arg15[%c0_117, %c0_118] : memref<8x32xf32, #tpu.memory_space<vmem>>, vector<8x32xf32>
    %141 = arith.index_cast %139 : i32 to index
    %c0_119 = arith.constant 0 : index
    %142 = vector.load %arg13[%141, %c0_119] : memref<64x32xf32, #tpu.memory_space<vmem>>, vector<8x32xf32>
    %cst_120 = arith.constant dense<0.000000e+00> : vector<8x32xf32>
    %143 = tpu.matmul %140, %118, %cst_120 {dimension_numbers = #tpu.dot_dimension_numbers<[1], [0], [0], [1], [0, 0, 1, 1], [], []>} : vector<8x32xf32>, vector<32x32xf32>, vector<8x32xf32> -> vector<8x32xf32>
    %144 = arith.addf %142, %143 : vector<8x32xf32>
    %cst_121 = arith.constant 0.000000e+00 : f32
    %145 = vector.broadcast %cst_121 : f32 to vector<8x32xf32>
    %146 = arith.maximumf %144, %145 : vector<8x32xf32>
    %c0_122 = arith.constant 0 : index
    %c0_123 = arith.constant 0 : index
    %147 = vector.load %arg15[%c0_122, %c0_123] : memref<8x32xf32, #tpu.memory_space<vmem>>, vector<8x32xf32>
    tpu.vector_store %arg15[%c0_122, %c0_123], %146 {strides = array<i32>} : memref<8x32xf32, #tpu.memory_space<vmem>>, vector<8x32xf32>,
    %148 = arith.index_cast %139 : i32 to index
    %c0_124 = arith.constant 0 : index
    %149 = vector.load %arg13[%148, %c0_124] : memref<64x32xf32, #tpu.memory_space<vmem>>, vector<8x32xf32>
    tpu.vector_store %arg13[%148, %c0_124], %146 {strides = array<i32>} : memref<64x32xf32, #tpu.memory_space<vmem>>, vector<8x32xf32>,
    %c2_i32_125 = arith.constant 2 : i32
    %c8_i32_126 = arith.constant 8 : i32
    %150 = arith.muli %c2_i32_125, %c8_i32_126 : i32
    %c0_i32_127 = arith.constant 0 : i32
    %151 = arith.addi %150, %c0_i32_127 : i32
    %152 = tpu.assume_multiple %151, 8 : i32
    %c0_128 = arith.constant 0 : index
    %c0_129 = arith.constant 0 : index
    %153 = vector.load %arg15[%c0_128, %c0_129] : memref<8x32xf32, #tpu.memory_space<vmem>>, vector<8x32xf32>
    %154 = arith.index_cast %152 : i32 to index
    %c0_130 = arith.constant 0 : index
    %155 = vector.load %arg13[%154, %c0_130] : memref<64x32xf32, #tpu.memory_space<vmem>>, vector<8x32xf32>
    %cst_131 = arith.constant dense<0.000000e+00> : vector<8x32xf32>
    %156 = tpu.matmul %153, %118, %cst_131 {dimension_numbers = #tpu.dot_dimension_numbers<[1], [0], [0], [1], [0, 0, 1, 1], [], []>} : vector<8x32xf32>, vector<32x32xf32>, vector<8x32xf32> -> vector<8x32xf32>
    %157 = arith.addf %155, %156 : vector<8x32xf32>
    %cst_132 = arith.constant 0.000000e+00 : f32
    %158 = vector.broadcast %cst_132 : f32 to vector<8x32xf32>
    %159 = arith.maximumf %157, %158 : vector<8x32xf32>
    %c0_133 = arith.constant 0 : index
    %c0_134 = arith.constant 0 : index
    %160 = vector.load %arg15[%c0_133, %c0_134] : memref<8x32xf32, #tpu.memory_space<vmem>>, vector<8x32xf32>
    tpu.vector_store %arg15[%c0_133, %c0_134], %159 {strides = array<i32>} : memref<8x32xf32, #tpu.memory_space<vmem>>, vector<8x32xf32>,
    %161 = arith.index_cast %152 : i32 to index
    %c0_135 = arith.constant 0 : index
    %162 = vector.load %arg13[%161, %c0_135] : memref<64x32xf32, #tpu.memory_space<vmem>>, vector<8x32xf32>
    tpu.vector_store %arg13[%161, %c0_135], %159 {strides = array<i32>} : memref<64x32xf32, #tpu.memory_space<vmem>>, vector<8x32xf32>,
    %c3_i32_136 = arith.constant 3 : i32
    %c8_i32_137 = arith.constant 8 : i32
    %163 = arith.muli %c3_i32_136, %c8_i32_137 : i32
    %c0_i32_138 = arith.constant 0 : i32
    %164 = arith.addi %163, %c0_i32_138 : i32
    %165 = tpu.assume_multiple %164, 8 : i32
    %c0_139 = arith.constant 0 : index
    %c0_140 = arith.constant 0 : index
    %166 = vector.load %arg15[%c0_139, %c0_140] : memref<8x32xf32, #tpu.memory_space<vmem>>, vector<8x32xf32>
    %167 = arith.index_cast %165 : i32 to index
    %c0_141 = arith.constant 0 : index
    %168 = vector.load %arg13[%167, %c0_141] : memref<64x32xf32, #tpu.memory_space<vmem>>, vector<8x32xf32>
    %cst_142 = arith.constant dense<0.000000e+00> : vector<8x32xf32>
    %169 = tpu.matmul %166, %118, %cst_142 {dimension_numbers = #tpu.dot_dimension_numbers<[1], [0], [0], [1], [0, 0, 1, 1], [], []>} : vector<8x32xf32>, vector<32x32xf32>, vector<8x32xf32> -> vector<8x32xf32>
    %170 = arith.addf %168, %169 : vector<8x32xf32>
    %cst_143 = arith.constant 0.000000e+00 : f32
    %171 = vector.broadcast %cst_143 : f32 to vector<8x32xf32>
    %172 = arith.maximumf %170, %171 : vector<8x32xf32>
    %c0_144 = arith.constant 0 : index
    %c0_145 = arith.constant 0 : index
    %173 = vector.load %arg15[%c0_144, %c0_145] : memref<8x32xf32, #tpu.memory_space<vmem>>, vector<8x32xf32>
    tpu.vector_store %arg15[%c0_144, %c0_145], %172 {strides = array<i32>} : memref<8x32xf32, #tpu.memory_space<vmem>>, vector<8x32xf32>,
    %174 = arith.index_cast %165 : i32 to index
    %c0_146 = arith.constant 0 : index
    %175 = vector.load %arg13[%174, %c0_146] : memref<64x32xf32, #tpu.memory_space<vmem>>, vector<8x32xf32>
    tpu.vector_store %arg13[%174, %c0_146], %172 {strides = array<i32>} : memref<64x32xf32, #tpu.memory_space<vmem>>, vector<8x32xf32>,
    %c4_i32_147 = arith.constant 4 : i32
    %c8_i32_148 = arith.constant 8 : i32
    %176 = arith.muli %c4_i32_147, %c8_i32_148 : i32
    %c0_i32_149 = arith.constant 0 : i32
    %177 = arith.addi %176, %c0_i32_149 : i32
    %178 = tpu.assume_multiple %177, 8 : i32
    %c0_150 = arith.constant 0 : index
    %c0_151 = arith.constant 0 : index
    %179 = vector.load %arg15[%c0_150, %c0_151] : memref<8x32xf32, #tpu.memory_space<vmem>>, vector<8x32xf32>
    %180 = arith.index_cast %178 : i32 to index
    %c0_152 = arith.constant 0 : index
    %181 = vector.load %arg13[%180, %c0_152] : memref<64x32xf32, #tpu.memory_space<vmem>>, vector<8x32xf32>
    %cst_153 = arith.constant dense<0.000000e+00> : vector<8x32xf32>
    %182 = tpu.matmul %179, %118, %cst_153 {dimension_numbers = #tpu.dot_dimension_numbers<[1], [0], [0], [1], [0, 0, 1, 1], [], []>} : vector<8x32xf32>, vector<32x32xf32>, vector<8x32xf32> -> vector<8x32xf32>
    %183 = arith.addf %181, %182 : vector<8x32xf32>
    %cst_154 = arith.constant 0.000000e+00 : f32
    %184 = vector.broadcast %cst_154 : f32 to vector<8x32xf32>
    %185 = arith.maximumf %183, %184 : vector<8x32xf32>
    %c0_155 = arith.constant 0 : index
    %c0_156 = arith.constant 0 : index
    %186 = vector.load %arg15[%c0_155, %c0_156] : memref<8x32xf32, #tpu.memory_space<vmem>>, vector<8x32xf32>
    tpu.vector_store %arg15[%c0_155, %c0_156], %185 {strides = array<i32>} : memref<8x32xf32, #tpu.memory_space<vmem>>, vector<8x32xf32>,
    %187 = arith.index_cast %178 : i32 to index
    %c0_157 = arith.constant 0 : index
    %188 = vector.load %arg13[%187, %c0_157] : memref<64x32xf32, #tpu.memory_space<vmem>>, vector<8x32xf32>
    tpu.vector_store %arg13[%187, %c0_157], %185 {strides = array<i32>} : memref<64x32xf32, #tpu.memory_space<vmem>>, vector<8x32xf32>,
    %c5_i32_158 = arith.constant 5 : i32
    %c8_i32_159 = arith.constant 8 : i32
    %189 = arith.muli %c5_i32_158, %c8_i32_159 : i32
    %c0_i32_160 = arith.constant 0 : i32
    %190 = arith.addi %189, %c0_i32_160 : i32
    %191 = tpu.assume_multiple %190, 8 : i32
    %c0_161 = arith.constant 0 : index
    %c0_162 = arith.constant 0 : index
    %192 = vector.load %arg15[%c0_161, %c0_162] : memref<8x32xf32, #tpu.memory_space<vmem>>, vector<8x32xf32>
    %193 = arith.index_cast %191 : i32 to index
    %c0_163 = arith.constant 0 : index
    %194 = vector.load %arg13[%193, %c0_163] : memref<64x32xf32, #tpu.memory_space<vmem>>, vector<8x32xf32>
    %cst_164 = arith.constant dense<0.000000e+00> : vector<8x32xf32>
    %195 = tpu.matmul %192, %118, %cst_164 {dimension_numbers = #tpu.dot_dimension_numbers<[1], [0], [0], [1], [0, 0, 1, 1], [], []>} : vector<8x32xf32>, vector<32x32xf32>, vector<8x32xf32> -> vector<8x32xf32>
    %196 = arith.addf %194, %195 : vector<8x32xf32>
    %cst_165 = arith.constant 0.000000e+00 : f32
    %197 = vector.broadcast %cst_165 : f32 to vector<8x32xf32>
    %198 = arith.maximumf %196, %197 : vector<8x32xf32>
    %c0_166 = arith.constant 0 : index
    %c0_167 = arith.constant 0 : index
    %199 = vector.load %arg15[%c0_166, %c0_167] : memref<8x32xf32, #tpu.memory_space<vmem>>, vector<8x32xf32>
    tpu.vector_store %arg15[%c0_166, %c0_167], %198 {strides = array<i32>} : memref<8x32xf32, #tpu.memory_space<vmem>>, vector<8x32xf32>,
    %200 = arith.index_cast %191 : i32 to index
    %c0_168 = arith.constant 0 : index
    %201 = vector.load %arg13[%200, %c0_168] : memref<64x32xf32, #tpu.memory_space<vmem>>, vector<8x32xf32>
    tpu.vector_store %arg13[%200, %c0_168], %198 {strides = array<i32>} : memref<64x32xf32, #tpu.memory_space<vmem>>, vector<8x32xf32>,
    %c6_i32_169 = arith.constant 6 : i32
    %c8_i32_170 = arith.constant 8 : i32
    %202 = arith.muli %c6_i32_169, %c8_i32_170 : i32
    %c0_i32_171 = arith.constant 0 : i32
    %203 = arith.addi %202, %c0_i32_171 : i32
    %204 = tpu.assume_multiple %203, 8 : i32
    %c0_172 = arith.constant 0 : index
    %c0_173 = arith.constant 0 : index
    %205 = vector.load %arg15[%c0_172, %c0_173] : memref<8x32xf32, #tpu.memory_space<vmem>>, vector<8x32xf32>
    %206 = arith.index_cast %204 : i32 to index
    %c0_174 = arith.constant 0 : index
    %207 = vector.load %arg13[%206, %c0_174] : memref<64x32xf32, #tpu.memory_space<vmem>>, vector<8x32xf32>
    %cst_175 = arith.constant dense<0.000000e+00> : vector<8x32xf32>
    %208 = tpu.matmul %205, %118, %cst_175 {dimension_numbers = #tpu.dot_dimension_numbers<[1], [0], [0], [1], [0, 0, 1, 1], [], []>} : vector<8x32xf32>, vector<32x32xf32>, vector<8x32xf32> -> vector<8x32xf32>
    %209 = arith.addf %207, %208 : vector<8x32xf32>
    %cst_176 = arith.constant 0.000000e+00 : f32
    %210 = vector.broadcast %cst_176 : f32 to vector<8x32xf32>
    %211 = arith.maximumf %209, %210 : vector<8x32xf32>
    %c0_177 = arith.constant 0 : index
    %c0_178 = arith.constant 0 : index
    %212 = vector.load %arg15[%c0_177, %c0_178] : memref<8x32xf32, #tpu.memory_space<vmem>>, vector<8x32xf32>
    tpu.vector_store %arg15[%c0_177, %c0_178], %211 {strides = array<i32>} : memref<8x32xf32, #tpu.memory_space<vmem>>, vector<8x32xf32>,
    %213 = arith.index_cast %204 : i32 to index
    %c0_179 = arith.constant 0 : index
    %214 = vector.load %arg13[%213, %c0_179] : memref<64x32xf32, #tpu.memory_space<vmem>>, vector<8x32xf32>
    tpu.vector_store %arg13[%213, %c0_179], %211 {strides = array<i32>} : memref<64x32xf32, #tpu.memory_space<vmem>>, vector<8x32xf32>,
    %c7_i32_180 = arith.constant 7 : i32
    %c8_i32_181 = arith.constant 8 : i32
    %215 = arith.muli %c7_i32_180, %c8_i32_181 : i32
    %c0_i32_182 = arith.constant 0 : i32
    %216 = arith.addi %215, %c0_i32_182 : i32
    %217 = tpu.assume_multiple %216, 8 : i32
    %c0_183 = arith.constant 0 : index
    %c0_184 = arith.constant 0 : index
    %218 = vector.load %arg15[%c0_183, %c0_184] : memref<8x32xf32, #tpu.memory_space<vmem>>, vector<8x32xf32>
    %219 = arith.index_cast %217 : i32 to index
    %c0_185 = arith.constant 0 : index
    %220 = vector.load %arg13[%219, %c0_185] : memref<64x32xf32, #tpu.memory_space<vmem>>, vector<8x32xf32>
    %cst_186 = arith.constant dense<0.000000e+00> : vector<8x32xf32>
    %221 = tpu.matmul %218, %118, %cst_186 {dimension_numbers = #tpu.dot_dimension_numbers<[1], [0], [0], [1], [0, 0, 1, 1], [], []>} : vector<8x32xf32>, vector<32x32xf32>, vector<8x32xf32> -> vector<8x32xf32>
    %222 = arith.addf %220, %221 : vector<8x32xf32>
    %cst_187 = arith.constant 0.000000e+00 : f32
    %223 = vector.broadcast %cst_187 : f32 to vector<8x32xf32>
    %224 = arith.maximumf %222, %223 : vector<8x32xf32>
    %c0_188 = arith.constant 0 : index
    %c0_189 = arith.constant 0 : index
    %225 = vector.load %arg15[%c0_188, %c0_189] : memref<8x32xf32, #tpu.memory_space<vmem>>, vector<8x32xf32>
    tpu.vector_store %arg15[%c0_188, %c0_189], %224 {strides = array<i32>} : memref<8x32xf32, #tpu.memory_space<vmem>>, vector<8x32xf32>,
    %226 = arith.index_cast %217 : i32 to index
    %c0_190 = arith.constant 0 : index
    %227 = vector.load %arg13[%226, %c0_190] : memref<64x32xf32, #tpu.memory_space<vmem>>, vector<8x32xf32>
    tpu.vector_store %arg13[%226, %c0_190], %224 {strides = array<i32>} : memref<64x32xf32, #tpu.memory_space<vmem>>, vector<8x32xf32>,
    %c8_i32_191 = arith.constant 8 : i32
    %c0_192 = arith.constant 0 : index
    %c0_193 = arith.constant 0 : index
    %228 = vector.load %arg13[%c0_192, %c0_193] : memref<64x32xf32, #tpu.memory_space<vmem>>, vector<64x32xf32>
    %c0_194 = arith.constant 0 : index
    %c0_195 = arith.constant 0 : index
    %229 = vector.load %arg9[%c0_194, %c0_195] : memref<32x8xf32, #tpu.memory_space<vmem>>, vector<32x8xf32>
    %cst_196 = arith.constant dense<0.000000e+00> : vector<64x8xf32>
    %230 = tpu.matmul %228, %229, %cst_196 {dimension_numbers = #tpu.dot_dimension_numbers<[1], [0], [0], [1], [0, 0, 1, 1], [], []>} : vector<64x32xf32>, vector<32x8xf32>, vector<64x8xf32> -> vector<64x8xf32>
    %c0_197 = arith.constant 0 : index
    %c0_198 = arith.constant 0 : index
    %231 = vector.load %arg10[%c0_197, %c0_198] : memref<1x8xf32, #tpu.memory_space<vmem>>, vector<1x8xf32>
    %232 = vector.broadcast %231 : vector<1x8xf32> to vector<64x8xf32>
    %233 = arith.addf %230, %232 : vector<64x8xf32>
    %234 = vector.shape_cast %233 : vector<64x8xf32> to vector<8x8x8xf32>
    %c0_199 = arith.constant 0 : index
    %c0_200 = arith.constant 0 : index
    %c0_201 = arith.constant 0 : index
    %235 = vector.load %arg11[%c0_199, %c0_200, %c0_201] : memref<8x8x8xf32, #tpu.memory_space<vmem>>, vector<8x8x8xf32>
    tpu.vector_store %arg11[%c0_199, %c0_200, %c0_201], %234 {strides = array<i32>} : memref<8x8x8xf32, #tpu.memory_space<vmem>>, vector<8x8x8xf32>,
    return
  }
  func.func @transform_0(%arg0: i32, %arg1: i32) -> (i32, i32, i32) {
    %c0_i32 = arith.constant 0 : i32
    %c0_i32_0 = arith.constant 0 : i32
    return %arg1, %arg0, %c0_i32 : i32, i32, i32
  }
  func.func @transform_1(%arg0: i32, %arg1: i32) -> (i32, i32) {
    %c0_i32 = arith.constant 0 : i32
    %c0_i32_0 = arith.constant 0 : i32
    %c0_i32_1 = arith.constant 0 : i32
    return %c0_i32, %c0_i32_0 : i32, i32
  }
  func.func @transform_2(%arg0: i32, %arg1: i32) -> (i32, i32) {
    %c0_i32 = arith.constant 0 : i32
    %c0_i32_0 = arith.constant 0 : i32
    %c0_i32_1 = arith.constant 0 : i32
    return %c0_i32, %c0_i32_0 : i32, i32
  }
  func.func @transform_3(%arg0: i32, %arg1: i32) -> (i32, i32) {
    %c0_i32 = arith.constant 0 : i32
    %c0_i32_0 = arith.constant 0 : i32
    %c0_i32_1 = arith.constant 0 : i32
    return %c0_i32, %c0_i32_0 : i32, i32
  }
  func.func @transform_4(%arg0: i32, %arg1: i32) -> (i32, i32) {
    %c0_i32 = arith.constant 0 : i32
    %c0_i32_0 = arith.constant 0 : i32
    %c0_i32_1 = arith.constant 0 : i32
    return %c0_i32, %c0_i32_0 : i32, i32
  }
  func.func @transform_5(%arg0: i32, %arg1: i32) -> (i32, i32) {
    %c0_i32 = arith.constant 0 : i32
    %c0_i32_0 = arith.constant 0 : i32
    %c0_i32_1 = arith.constant 0 : i32
    return %c0_i32, %c0_i32_0 : i32, i32
  }
  func.func @transform_6(%arg0: i32, %arg1: i32) -> (i32, i32) {
    %c0_i32 = arith.constant 0 : i32
    %c0_i32_0 = arith.constant 0 : i32
    %c0_i32_1 = arith.constant 0 : i32
    return %c0_i32, %c0_i32_0 : i32, i32
  }
  func.func @transform_7(%arg0: i32, %arg1: i32) -> (i32, i32) {
    %c0_i32 = arith.constant 0 : i32
    %c0_i32_0 = arith.constant 0 : i32
    %c0_i32_1 = arith.constant 0 : i32
    return %c0_i32, %c0_i32_0 : i32, i32
  }
  func.func @transform_8(%arg0: i32, %arg1: i32) -> (i32, i32) {
    %c0_i32 = arith.constant 0 : i32
    %c0_i32_0 = arith.constant 0 : i32
    %c0_i32_1 = arith.constant 0 : i32
    return %c0_i32, %c0_i32_0 : i32, i32
  }
  func.func @transform_9(%arg0: i32, %arg1: i32) -> (i32, i32, i32) {
    %c0_i32 = arith.constant 0 : i32
    %c0_i32_0 = arith.constant 0 : i32
    return %arg1, %arg0, %c0_i32 : i32, i32, i32
  }
}

</mosaic_0001>

<bundles_post_ra>
// kernel: tpu_custom_call.1
= control target key start
LH: loop header
LB: loop body
LE: loop exit
PB: predicated region body
PF: predicated region fallthrough
CT: control target
= control target key end

     0   :  { %14 = vsyncpa [#allocation7], 0  ;;  %s2903_s0 = inlined_call_operand.hbm [shape: f32[8,8,32], index: 0, kind: input, shape index: {}]   ;;  %s2904_s1 = inlined_call_operand.vmem [shape: f32[32,32], index: 1, kind: input, shape index: {}]   ;;  %s2905_s2 = inlined_call_operand.hbm [shape: f32[32,32], index: 2, kind: input, shape index: {}]   ;;  %s2906_s3 = inlined_call_operand.vmem [shape: f32[1,32], index: 3, kind: input, shape index: {}]   ;;  %s2907_s4 = inlined_call_operand.hbm [shape: f32[32,32], index: 4, kind: input, shape index: {}]   ;;  %s2908_s5 = inlined_call_operand.hbm [shape: f32[32,32], index: 5, kind: input, shape index: {}]   ;;  %s2909_s6 = inlined_call_operand.vmem [shape: f32[1,32], index: 6, kind: input, shape index: {}]   ;;  %s2910_s7 = inlined_call_operand.vmem [shape: f32[32,8], index: 7, kind: input, shape index: {}]   ;;  %s2911_s8 = inlined_call_operand.vmem [shape: f32[1,8], index: 8, kind: input, shape index: {}]   ;;  %s2912_s9 = inlined_call_operand.hbm [shape: f32[8,8,8], index: 9, kind: output, shape index: {}]  }
   0x1   :  { %15 = vsyncpa [#allocation10], 0 }
   0x2   :  { %16 = vsyncpa [#allocation13], 0 }
   0x3   :  { %17 = vsyncpa [#allocation8], 0  ;;  %s2517_s30 = smov [#allocation9]   ;;  %s2518_s11 = smov [#allocation6]  }
   0x4   :  { %s37_s10 = sshll.u32 %s2517_s30, 4  ;;  %s23_s12 = sshll.u32 %s2518_s11, 4  ;;  %s38_s10 = int_to_ptr.vmem [resolvable:$true] %s37_s10  ;;  %s2577_s12 = int_to_ptr.vmem [resolvable:$true] %s23_s12 }
   0x5   :  { %s2399_s15 = scalar_lea.hbm %s2905_s2, 512 }
   0x6   :  { %p2400_p0 = scmp.ne.s32.totalorder %s2905_s2, %s2399_s15  ;;  %p2403_p1 = scmp.lt.u32.totalorder %s2399_s15, %s2905_s2 }
   0x8   :  { %p2405_p2 = pnand %p2403_p1, %p2400_p0 }
   0xa   :  { %2408 = shalt.err (!%p2405_p2)
}
   0xb   :  { %s2409_s20 = scalar_lea.vmem %s38_s10, 512  ;;  %p2414_p4 = scmp.lt.s32.totalorder %s38_s10, %s38_s10 }
   0xc   :  { %p2410_p3 = scmp.ne.s32.totalorder %s38_s10, %s2409_s20  ;;  %p2415_p5 = scmp.lt.s32.totalorder %s2409_s20, %s2409_s20 }
   0xe   :  { %p2416_p6 = por %p2415_p5, %p2414_p4 }
  0x10   :  { %p2417_p7 = pnand %p2416_p6, %p2410_p3 }
  0x12   :  { %2420 = shalt.err (!%p2417_p7)
}
  0x13   :  { %s2519_s21 = smov 128   ;;  %s2520_s22 = smov 8  }
  0x14   :  { %43 = dma.hbm_to_vmem [thread:$0]  %s2905_s2, 512, %s38_s10, [#allocation10], %s2519_s21, %s2519_s21, %s2520_s22  }
  0x15   :  { %s2421_s27 = scalar_lea.hbm %s2903_s0, 1024 }
  0x16   :  { %p2422_p8 = scmp.ne.s32.totalorder %s2903_s0, %s2421_s27  ;;  %p2425_p9 = scmp.lt.u32.totalorder %s2421_s27, %s2903_s0 }
  0x18   :  { %p2427_p10 = pnand %p2425_p9, %p2422_p8 }
  0x1a   :  { %2430 = shalt.err (!%p2427_p10)
}
  0x1b   :  { %s2431_s13 = scalar_lea.vmem %s2577_s12, 1024  ;;  %p2436_p12 = scmp.lt.s32.totalorder %s2577_s12, %s2577_s12 }
  0x1c   :  { %p2432_p11 = scmp.ne.s32.totalorder %s2577_s12, %s2431_s13  ;;  %p2437_p13 = scmp.lt.s32.totalorder %s2431_s13, %s2431_s13 }
  0x1e   :  { %p2438_p0 = por %p2437_p13, %p2436_p12 }
  0x20   :  { %p2439_p1 = pnand %p2438_p0, %p2432_p11 }
  0x22   :  { %2442 = shalt.err (!%p2439_p1)
}
  0x23   :  { %29 = dma.hbm_to_vmem [thread:$0]  %s2903_s0, 1024, %s2577_s12, [#allocation7], %s2519_s21, %s2519_s21, %s2520_s22  }
  0x24   :  { %s2521_s14 = smov [#allocation11]   ;;  %s2522_s16 = smov [#allocation12]  }
  0x25   :  { %s51_s15 = sshll.u32 %s2521_s14, 4  ;;  %s63_s17 = sshll.u32 %s2522_s16, 4  ;;  %s52_s15 = int_to_ptr.vmem [resolvable:$true] %s51_s15  ;;  %s2614_s17 = int_to_ptr.vmem [resolvable:$true] %s63_s17 }
  0x26   :  { %s2443_s20 = scalar_lea.hbm %s2907_s4, 512 }
  0x27   :  { %p2444_p2 = scmp.ne.s32.totalorder %s2907_s4, %s2443_s20  ;;  %p2447_p3 = scmp.lt.u32.totalorder %s2443_s20, %s2907_s4 }
  0x29   :  { %p2449_p4 = pnand %p2447_p3, %p2444_p2 }
  0x2b   :  { %2452 = shalt.err (!%p2449_p4)
}
  0x2c   :  { %s2453_s0 = scalar_lea.vmem %s52_s15, 512  ;;  %p2458_p6 = scmp.lt.s32.totalorder %s52_s15, %s52_s15 }
  0x2d   :  { %p2454_p5 = scmp.ne.s32.totalorder %s52_s15, %s2453_s0  ;;  %p2459_p7 = scmp.lt.s32.totalorder %s2453_s0, %s2453_s0 }
  0x2f   :  { %p2460_p8 = por %p2459_p7, %p2458_p6 }
  0x31   :  { %p2461_p9 = pnand %p2460_p8, %p2454_p5 }
  0x33   :  { %2464 = shalt.err (!%p2461_p9)
}
  0x34   :  { %57 = dma.hbm_to_vmem [thread:$0]  %s2907_s4, 512, %s52_s15, [#allocation10], %s2519_s21, %s2519_s21, %s2520_s22  }
  0x35   :  { %s2465_s30 = scalar_lea.hbm %s2908_s5, 512 }
  0x36   :  { %p2466_p10 = scmp.ne.s32.totalorder %s2908_s5, %s2465_s30  ;;  %p2469_p11 = scmp.lt.u32.totalorder %s2465_s30, %s2908_s5 }
  0x38   :  { %p2471_p12 = pnand %p2469_p11, %p2466_p10 }
  0x3a   :  { %2474 = shalt.err (!%p2471_p12)
}
  0x3b   :  { %s2475_s14 = scalar_lea.vmem %s2614_s17, 512  ;;  %p2480_p0 = scmp.lt.s32.totalorder %s2614_s17, %s2614_s17 }
  0x3c   :  { %p2476_p13 = scmp.ne.s32.totalorder %s2614_s17, %s2475_s14  ;;  %p2481_p1 = scmp.lt.s32.totalorder %s2475_s14, %s2475_s14 }
  0x3e   :  { %p2482_p2 = por %p2481_p1, %p2480_p0 }
  0x40   :  { %p2483_p3 = pnand %p2482_p2, %p2476_p13 }
  0x42   :  { %2486 = shalt.err (!%p2483_p3)
}
  0x43   :  { %69 = dma.hbm_to_vmem [thread:$0]  %s2908_s5, 512, %s2614_s17, [#allocation13], %s2519_s21, %s2519_s21, %s2520_s22  }
  0x44   :  { %2509 = dma.done.wait [#allocation7], 1024  }
  0x45   :  { %2510 = vsyncadd [#allocation7], 4294966272 }
  0x46   :  { %2511 = dma.done.wait [#allocation10], 1024  }
  0x47   :  { %2512 = vsyncadd [#allocation10], 4294966272 }
  0x48   :  { %2513 = dma.done.wait [#allocation13], 512  }
  0x49   :  { %2514 = vsyncadd [#allocation13], 4294966784  ;;  %vm92_vm0 = vcmask 261120   ;;  %v2523_v0 = vmov 0.0   ;;  %v103_v1 = vld [vmem:[%s2904_s1] sm:$0xff]  ;;  %v104_v2 = vld [vmem:[%s2904_s1 + $0x8] sm:$0xff] }
  0x4a   :  { %93 = vst.msk [vmem:[#allocation4] sm:$0xff] %vm92_vm0, %v2523_v0  ;;  %94 = vst.msk [vmem:[#allocation5] sm:$0xff] %vm92_vm0, %v2523_v0  ;;  %v105_v3 = vld [vmem:[%s2904_s1 + $0x10] sm:$0xff]  ;;  %v2265_v4 = vpack.c.bf16 %v104_v2, %v103_v1  ;;  %v106_v5 = vld [vmem:[%s2904_s1 + $0x18] sm:$0xff]  ;;  %v2524_v14 = vmov 0.0|0.0   ;;  %vm2525_vm1 = vmmov 0  }
  0x4b   :  { %v95_v6 = vld [vmem:[#allocation6] sm:$0xff]  ;;  %v2269_v7 = vpack.c.bf16 %v106_v5, %v105_v3  ;;  %v108_v10 = vld [vmem:[#allocation9 + $0x8] sm:$0xff]  ;;  %v101_v15 = vld [vmem:[#allocation6 + $0x30] sm:$0xff]  ;;  %vm1842_vm2 = vcmask 64512  }
  0x4c   :  { %2037 = vmatprep.mubr.msk.f32.mxu0 %vm92_vm0, %v95_v6  ;;  %2266 = vmatprep.subr.bf16.mxu0 %v2265_v4  ;;  %v99_v8 = vld [vmem:[#allocation6 + $0x20] sm:$0xff]  ;;  %v96_v11 = vld [vmem:[#allocation6 + $0x8] sm:$0xff]  ;;  %v109_v16 = vld [vmem:[#allocation9 + $0x10] sm:$0xff] }
  0x4d   :  { %2385 = vmatprep.subr.bf16.mxu1 %v2265_v4  ;;  %2268 = vmatpush3.bf16.msra.mxu0 %v2265_v4  ;;  %v107_v9 = vld [vmem:[#allocation9] sm:$0xff]  ;;  %v100_v12 = vld [vmem:[#allocation6 + $0x28] sm:$0xff]  ;;  %v110_v17 = vld [vmem:[#allocation9 + $0x18] sm:$0xff] }
  0x4e   :  { %2387 = vmatpush3.bf16.msra.mxu1 %v2265_v4  ;;  %2270 = vmatprep.subr.bf16.mxu0 %v2269_v7  ;;  %v2669_v13 = vpack.c.bf16 %v108_v10, %v107_v9  ;;  %v102_v18 = vld [vmem:[#allocation6 + $0x38] sm:$0xff]  ;;  %v2677_v19 = vpack.c.bf16 %v110_v17, %v109_v16  ;;  %v97_v21 = vld [vmem:[#allocation6 + $0x10] sm:$0xff] }
  0x4f   :  { %2386 = vmatprep.subr.bf16.mxu1 %v2269_v7  ;;  %2043 = vmatprep.mubr.msk.f32.mxu1 %vm92_vm0, %v99_v8  ;;  %v1870_v22 = vld [vmem:[%s2906_s3] ss:$0 sm:$0xff]  ;;  %v98_v41 = vld [vmem:[#allocation6 + $0x18] sm:$0xff]  ;;  %v904_v8 = vld [vmem:[#allocation11 + $0x8] sm:$0xff] }
  0x50   :  { %v906_v17 = vld [vmem:[#allocation11 + $0x18] sm:$0xff] }
  0x51   :  { %2272 = vmatpush3.bf16.msra.mxu0 %v2269_v7  ;;  %v256_v20 = vld [vmem:[#allocation4] sm:$0xff] }
  0x52   :  { %2388 = vmatpush3.bf16.msra.mxu1 %v2269_v7  ;;  %2285 = vmatprep.subr.bf16.mxu0 %v2524_v14  ;;  %v903_v7 = vld [vmem:[#allocation11] sm:$0xff] }
  0x53   :  { %2273 = vmatprep.subr.bf16.mxu1 %v2524_v14  ;;  %v2321_v9 = vpack.c.bf16 %v904_v8, %v903_v7 }
  0x54   :  { %2038 = vmatmul.mubr.msk.f32.vlgmr.msra.gmra.mrb[0].mxu0 %vm92_vm0, %v96_v11 }
  0x55   :  { %2044 = vmatmul.mubr.msk.f32.vlgmr.msra.gmra.mrb[0].mxu1 %vm92_vm0, %v100_v12  ;;  %2287 = vmatpush3.bf16.msra.mxu0 %v2669_v13 }
  0x56   :  { %2275 = vmatpush3.bf16.msra.mxu1 %v2669_v13  ;;  %2046 = vmatprep.mubr.msk.f32.mxu1 %vm92_vm0, %v101_v15 }
  0x57   :  { %2276 = vmatprep.subr.bf16.mxu1 %v2524_v14  ;;  %2288 = vmatprep.subr.bf16.mxu0 %v2524_v14 }
  0x58   :  { %2040 = vmatprep.mubr.msk.f32.mxu0 %vm92_vm0, %v97_v21 }
  0x59   :  { %2047 = vmatmul.mubr.msk.f32.gmra.mrb[2].mxu1 %vm92_vm0, %v102_v18  ;;  %2290 = vmatpush3.bf16.msra.mxu0 %v2677_v19 }
  0x5a   :  { %2278 = vmatpush3.bf16.msra.mxu1 %v2677_v19  ;;  %2057 = vmatprep.mubr.msk.f32.mxu1 %vm2525_vm1, %v2523_v0 }
  0x5b   :  { %2279 = vmatprep.subr.bf16.mxu1 %v2524_v14  ;;  %2297 = vmatprep.subr.bf16.mxu0 %v2524_v14 }
  0x5c   :  { %2041 = vmatmul.mubr.msk.f32.gmra.mrb[2].mxu0 %vm92_vm0, %v98_v41 }
  0x5d   :  { %2058 = vmatmul.mubr.msk.f32.vlgmr.msra.gmra.mrb[4].mxu1 %vm92_vm0, %v256_v20  ;;  %2079 = vmatprep.mubr.msk.f32.mxu0 %vm2525_vm1, %v2523_v0 }
  0x5e   :  { %2281 = vmatpush3.bf16.msra.mxu1 %v2669_v13  ;;  %2068 = vmatprep.mubr.msk.f32.mxu1 %vm2525_vm1, %v2523_v0 }
  0x5f   :  { %2282 = vmatprep.subr.bf16.mxu1 %v2524_v14 }
  0x62   :  { %2284 = vmatpush3.bf16.msra.mxu1 %v2677_v19 }
  0x63   :  { %2291 = vmatprep.subr.bf16.mxu1 %v2524_v14 }
 0x127   :  { %v2039_v23 = vpop.f32.mrb[0].mxu0 }
 0x128   :  { %v2045_v24 = vpop.f32.mrb[0].mxu1  ;;  %v215_v25 = vadd.f32 %v2039_v23, %v1870_v22  ;;  %v209_v26 = vpop.f32.mrb[1].mxu0 }
 0x129   :  { %v235_v27 = vadd.f32 %v2045_v24, %v1870_v22  ;;  %v229_v28 = vpop.f32.mrb[1].mxu1  ;;  %v210_v29 = vadd.f32 %v1870_v22, %v209_v26  ;;  %v907_v26 = vld [vmem:[#allocation12] sm:$0xff] }
 0x12a   :  { %v230_v30 = vadd.f32 %v1870_v22, %v229_v28  ;;  %249 = vst.msk [vmem:[#allocation2 + $0x8] sm:$0xff] %vm92_vm0, %v215_v25 }
 0x12b   :  { %253 = vst.msk [vmem:[#allocation2 + $0x28] sm:$0xff] %vm92_vm0, %v235_v27  ;;  %248 = vst.msk [vmem:[#allocation2] sm:$0xff] %vm92_vm0, %v210_v29  ;;  %v908_v27 = vld [vmem:[#allocation12 + $0x8] sm:$0xff]  ;;  %v909_v29 = vld [vmem:[#allocation12 + $0x10] sm:$0xff] }
 0x12c   :  { %252 = vst.msk [vmem:[#allocation2 + $0x20] sm:$0xff] %vm92_vm0, %v230_v30  ;;  %v2048_v31 = vpop.f32.mrb[2].mxu1  ;;  %v2765_v28 = vpack.c.bf16 %v908_v27, %v907_v26  ;;  %v910_v30 = vld [vmem:[#allocation12 + $0x18] sm:$0xff] }
 0x12d   :  { %v245_v32 = vadd.f32 %v2048_v31, %v1870_v22  ;;  %v239_v33 = vpop.f32.mrb[3].mxu1  ;;  %v2769_v31 = vpack.c.bf16 %v910_v30, %v909_v29 }
 0x12e   :  { %v240_v34 = vadd.f32 %v1870_v22, %v239_v33 }
 0x12f   :  { %255 = vst.msk [vmem:[#allocation2 + $0x38] sm:$0xff] %vm92_vm0, %v245_v32  ;;  %v2042_v48 = vpop.f32.mrb[2].mxu0 }
 0x130   :  { %254 = vst.msk [vmem:[#allocation2 + $0x30] sm:$0xff] %vm92_vm0, %v240_v34  ;;  %v327_v35 = vpop.f32.mrb[4].mxu1  ;;  %v225_v49 = vadd.f32 %v2042_v48, %v1870_v22  ;;  %v219_v50 = vpop.f32.mrb[3].mxu0 }
 0x131   :  { %v2059_v36 = vpop.f32.mrb[5].mxu1  ;;  %v337_v42 = vld [vmem:[#allocation2 + $0x8] sm:$0xff]  ;;  %v220_v51 = vadd.f32 %v1870_v22, %v219_v50 }
 0x132   :  { %v257_v37 = vld [vmem:[#allocation2] sm:$0xff]  ;;  %251 = vst.msk [vmem:[#allocation2 + $0x18] sm:$0xff] %vm92_vm0, %v225_v49  ;;  %v657_v10 = vld [vmem:[#allocation2 + $0x28] sm:$0xff] }
 0x133   :  { %v331_v38 = vadd.f32 %v327_v35, %v257_v37  ;;  %250 = vst.msk [vmem:[#allocation2 + $0x10] sm:$0xff] %vm92_vm0, %v220_v51  ;;  %v577_v1 = vld [vmem:[#allocation2 + $0x20] sm:$0xff] }
 0x134   :  { %v1887_v37 = vld [vmem:[%s2909_s6] ss:$0 sm:$0xff] }
 0x135   :  { %v332_v39 = vmax.f32 %v331_v38, 0.0 }
 0x137   :  { %333 = vst.msk [vmem:[#allocation4] sm:$0xff] %vm92_vm0, %v332_v39  ;;  %334 = vst.msk [vmem:[#allocation2] sm:$0xff] %vm92_vm0, %v332_v39  ;;  %v737_v32 = vld [vmem:[#allocation2 + $0x30] sm:$0xff] }
 0x139   :  { %v497_v58 = vld [vmem:[#allocation2 + $0x18] sm:$0xff] }
 0x13a   :  { %v417_v52 = vld [vmem:[#allocation2 + $0x10] sm:$0xff] }
 0x13e   :  { %v335_v40 = vld [vmem:[#allocation4] sm:$0xff] }
 0x13f   :  { %2069 = vmatmul.mubr.msk.f32.vlgmr.msra.gmra.mrb[6].mxu1 %vm92_vm0, %v335_v40 }
 0x140   :  { %2293 = vmatpush3.bf16.msra.mxu1 %v2669_v13  ;;  %2090 = vmatprep.mubr.msk.f32.mxu1 %vm2525_vm1, %v2523_v0 }
 0x141   :  { %2294 = vmatprep.subr.bf16.mxu1 %v2524_v14 }
 0x144   :  { %2296 = vmatpush3.bf16.msra.mxu1 %v2677_v19 }
 0x145   :  { %2303 = vmatprep.subr.bf16.mxu1 %v2524_v14 }
 0x212   :  { %v407_v43 = vpop.f32.mrb[6].mxu1 }
 0x213   :  { %v411_v44 = vadd.f32 %v407_v43, %v337_v42  ;;  %v2070_v45 = vpop.f32.mrb[7].mxu1 }
 0x215   :  { %v412_v46 = vmax.f32 %v411_v44, 0.0 }
 0x217   :  { %413 = vst.msk [vmem:[#allocation4] sm:$0xff] %vm92_vm0, %v412_v46  ;;  %414 = vst.msk [vmem:[#allocation2 + $0x8] sm:$0xff] %vm92_vm0, %v412_v46 }
 0x21e   :  { %v415_v47 = vld [vmem:[#allocation4] sm:$0xff]  ;;  %v896_v21 = vld [vmem:[#allocation2 + $0x8] sm:$0xff] }
 0x21f   :  { %2080 = vmatmul.mubr.msk.f32.vlgmr.msra.gmra.mrb[4].mxu0 %vm92_vm0, %v415_v47 }
 0x220   :  { %2299 = vmatpush3.bf16.msra.mxu0 %v2669_v13  ;;  %2101 = vmatprep.mubr.msk.f32.mxu0 %vm2525_vm1, %v2523_v0 }
 0x221   :  { %2300 = vmatprep.subr.bf16.mxu0 %v2524_v14 }
 0x224   :  { %2302 = vmatpush3.bf16.msra.mxu0 %v2677_v19 }
 0x225   :  { %2309 = vmatprep.subr.bf16.mxu0 %v2524_v14 }
 0x2f2   :  { %v487_v53 = vpop.f32.mrb[4].mxu0 }
 0x2f3   :  { %v491_v54 = vadd.f32 %v487_v53, %v417_v52  ;;  %v2081_v55 = vpop.f32.mrb[5].mxu0  ;;  %v1055_v52 = vld [vmem:[#allocation5] sm:$0xff]  ;;  %v817_v53 = vld [vmem:[#allocation2 + $0x38] sm:$0xff] }
 0x2f5   :  { %v492_v56 = vmax.f32 %v491_v54, 0.0 }
 0x2f7   :  { %493 = vst.msk [vmem:[#allocation4] sm:$0xff] %vm92_vm0, %v492_v56  ;;  %494 = vst.msk [vmem:[#allocation2 + $0x10] sm:$0xff] %vm92_vm0, %v492_v56 }
 0x2fe   :  { %v495_v57 = vld [vmem:[#allocation4] sm:$0xff]  ;;  %v897_v22 = vld [vmem:[#allocation2 + $0x10] sm:$0xff] }
 0x2ff   :  { %2091 = vmatmul.mubr.msk.f32.vlgmr.msra.gmra.mrb[8].mxu1 %vm92_vm0, %v495_v57 }
 0x300   :  { %2305 = vmatpush3.bf16.msra.mxu1 %v2669_v13  ;;  %2112 = vmatprep.mubr.msk.f32.mxu1 %vm2525_vm1, %v2523_v0 }
 0x301   :  { %2306 = vmatprep.subr.bf16.mxu1 %v2524_v14 }
 0x304   :  { %2308 = vmatpush3.bf16.msra.mxu1 %v2677_v19 }
 0x305   :  { %2315 = vmatprep.subr.bf16.mxu1 %v2524_v14 }
 0x3d2   :  { %v567_v59 = vpop.f32.mrb[8].mxu1 }
 0x3d3   :  { %v571_v60 = vadd.f32 %v567_v59, %v497_v58  ;;  %v2092_v61 = vpop.f32.mrb[9].mxu1 }
 0x3d5   :  { %v572_v62 = vmax.f32 %v571_v60, 0.0 }
 0x3d7   :  { %573 = vst.msk [vmem:[#allocation4] sm:$0xff] %vm92_vm0, %v572_v62  ;;  %574 = vst.msk [vmem:[#allocation2 + $0x18] sm:$0xff] %vm92_vm0, %v572_v62 }
 0x3de   :  { %v575_v63 = vld [vmem:[#allocation4] sm:$0xff]  ;;  %v898_v23 = vld [vmem:[#allocation2 + $0x18] sm:$0xff] }
 0x3df   :  { %2102 = vmatmul.mubr.msk.f32.vlgmr.msra.gmra.mrb[6].mxu0 %vm92_vm0, %v575_v63 }
 0x3e0   :  { %2311 = vmatpush3.bf16.msra.mxu0 %v2669_v13  ;;  %2123 = vmatprep.mubr.msk.f32.mxu0 %vm2525_vm1, %v2523_v0 }
 0x3e1   :  { %2312 = vmatprep.subr.bf16.mxu0 %v2524_v14 }
 0x3e4   :  { %2314 = vmatpush3.bf16.msra.mxu0 %v2677_v19 }
 0x3e5   :  { %2322 = vmatprep.subr.bf16.mxu0 %v2321_v9 }
 0x4b2   :  { %v647_v2 = vpop.f32.mrb[6].mxu0 }
 0x4b3   :  { %v651_v3 = vadd.f32 %v647_v2, %v577_v1  ;;  %v2103_v4 = vpop.f32.mrb[7].mxu0 }
 0x4b5   :  { %v652_v5 = vmax.f32 %v651_v3, 0.0 }
 0x4b7   :  { %653 = vst.msk [vmem:[#allocation4] sm:$0xff] %vm92_vm0, %v652_v5  ;;  %654 = vst.msk [vmem:[#allocation2 + $0x20] sm:$0xff] %vm92_vm0, %v652_v5 }
 0x4be   :  { %v655_v6 = vld [vmem:[#allocation4] sm:$0xff] }
 0x4bf   :  { %2113 = vmatmul.mubr.msk.f32.vlgmr.msra.gmra.mrb[10].mxu1 %vm92_vm0, %v655_v6  ;;  %v899_v24 = vld [vmem:[#allocation2 + $0x20] sm:$0xff] }
 0x4c0   :  { %2317 = vmatpush3.bf16.msra.mxu1 %v2669_v13  ;;  %2134 = vmatprep.mubr.msk.f32.mxu1 %vm2525_vm1, %v2523_v0  ;;  %v905_v13 = vld [vmem:[#allocation11 + $0x10] sm:$0xff] }
 0x4c1   :  { %2318 = vmatprep.subr.bf16.mxu1 %v2524_v14  ;;  %v2325_v18 = vpack.c.bf16 %v906_v17, %v905_v13 }
 0x4c4   :  { %2320 = vmatpush3.bf16.msra.mxu1 %v2677_v19  ;;  %v895_v19 = vld [vmem:[#allocation2] sm:$0xff] }
 0x4c5   :  { %2329 = vmatprep.subr.bf16.mxu1 %v2524_v14 }
 0x592   :  { %v727_v11 = vpop.f32.mrb[10].mxu1 }
 0x593   :  { %v731_v12 = vadd.f32 %v727_v11, %v657_v10  ;;  %v2114_v15 = vpop.f32.mrb[11].mxu1 }
 0x595   :  { %v732_v16 = vmax.f32 %v731_v12, 0.0 }
 0x597   :  { %733 = vst.msk [vmem:[#allocation4] sm:$0xff] %vm92_vm0, %v732_v16  ;;  %734 = vst.msk [vmem:[#allocation2 + $0x28] sm:$0xff] %vm92_vm0, %v732_v16 }
 0x59e   :  { %v735_v20 = vld [vmem:[#allocation4] sm:$0xff]  ;;  %v900_v25 = vld [vmem:[#allocation2 + $0x28] sm:$0xff] }
 0x59f   :  { %2124 = vmatmul.mubr.msk.f32.vlgmr.msra.gmra.mrb[8].mxu0 %vm92_vm0, %v735_v20 }
 0x5a0   :  { %2324 = vmatpush3.bf16.msra.mxu0 %v2321_v9  ;;  %2145 = vmatprep.mubr.msk.f32.mxu0 %vm92_vm0, %v895_v19 }
 0x5a1   :  { %2326 = vmatprep.subr.bf16.mxu0 %v2325_v18 }
 0x5a4   :  { %2328 = vmatpush3.bf16.msra.mxu0 %v2325_v18 }
 0x5a5   :  { %2341 = vmatprep.subr.bf16.mxu0 %v2524_v14 }
 0x5a7   :  { %2146 = vmatmul.mubr.msk.f32.vlgmr.msra.gmra.mrb[10].mxu0 %vm92_vm0, %v896_v21 }
 0x5a8   :  { %2148 = vmatprep.mubr.msk.f32.mxu0 %vm92_vm0, %v897_v22  ;;  %2343 = vmatpush3.bf16.msra.mxu0 %v2765_v28 }
 0x5a9   :  { %2344 = vmatprep.subr.bf16.mxu0 %v2524_v14 }
 0x5ab   :  { %2149 = vmatmul.mubr.msk.f32.gmra.mrb[12].mxu0 %vm92_vm0, %v898_v23 }
 0x5ac   :  { %2151 = vmatprep.mubr.msk.f32.mxu0 %vm92_vm0, %v899_v24  ;;  %2346 = vmatpush3.bf16.msra.mxu0 %v2769_v31 }
 0x5ad   :  { %2353 = vmatprep.subr.bf16.mxu0 %v2524_v14 }
 0x5af   :  { %2152 = vmatmul.mubr.msk.f32.gmra.mrb[14].mxu0 %vm92_vm0, %v900_v25 }
 0x672   :  { %v807_v33 = vpop.f32.mrb[8].mxu0 }
 0x673   :  { %v811_v34 = vadd.f32 %v807_v33, %v737_v32  ;;  %v2125_v35 = vpop.f32.mrb[9].mxu0  ;;  %v1702_v33 = vld [vmem:[%s2910_s7] sm:$0xff] }
 0x675   :  { %v812_v36 = vmax.f32 %v811_v34, 0.0  ;;  %v1703_v34 = vld [vmem:[%s2910_s7 + $0x8] sm:$0xff] }
 0x676   :  { %v2377_v35 = vpack.c.bf16 %v1703_v34, %v1702_v33 }
 0x677   :  { %813 = vst.msk [vmem:[#allocation4] sm:$0xff] %vm92_vm0, %v812_v36  ;;  %814 = vst.msk [vmem:[#allocation2 + $0x30] sm:$0xff] %vm92_vm0, %v812_v36 }
 0x67a   :  { %v2147_v38 = vpop.f32.mrb[10].mxu0 }
 0x67b   :  { %v1014_v39 = vadd.f32 %v2147_v38, %v1887_v37  ;;  %v1008_v40 = vpop.f32.mrb[11].mxu0 }
 0x67c   :  { %v1009_v41 = vadd.f32 %v1887_v37, %v1008_v40 }
 0x67d   :  { %1048 = vst.msk [vmem:[#allocation3 + $0x8] sm:$0xff] %vm92_vm0, %v1014_v39 }
 0x67e   :  { %1047 = vst.msk [vmem:[#allocation3] sm:$0xff] %vm92_vm0, %v1009_v41  ;;  %v2150_v42 = vpop.f32.mrb[12].mxu0  ;;  %v815_v43 = vld [vmem:[#allocation4] sm:$0xff]  ;;  %v901_v44 = vld [vmem:[#allocation2 + $0x30] sm:$0xff] }
 0x67f   :  { %v1024_v45 = vadd.f32 %v2150_v42, %v1887_v37  ;;  %v1018_v46 = vpop.f32.mrb[13].mxu0  ;;  %2135 = vmatmul.mubr.msk.f32.vlgmr.msra.gmra.mrb[12].mxu1 %vm92_vm0, %v815_v43  ;;  %2154 = vmatprep.mubr.msk.f32.mxu0 %vm92_vm0, %v901_v44 }
 0x680   :  { %v1019_v47 = vadd.f32 %v1887_v37, %v1018_v46  ;;  %2331 = vmatpush3.bf16.msra.mxu1 %v2765_v28  ;;  %2165 = vmatprep.mubr.msk.f32.mxu1 %vm2525_vm1, %v2523_v0 }
 0x681   :  { %1050 = vst.msk [vmem:[#allocation3 + $0x18] sm:$0xff] %vm92_vm0, %v1024_v45  ;;  %2332 = vmatprep.subr.bf16.mxu1 %v2524_v14 }
 0x682   :  { %1049 = vst.msk [vmem:[#allocation3 + $0x10] sm:$0xff] %vm92_vm0, %v1019_v47  ;;  %v2153_v48 = vpop.f32.mrb[14].mxu0 }
 0x683   :  { %v1034_v49 = vadd.f32 %v2153_v48, %v1887_v37  ;;  %v1028_v50 = vpop.f32.mrb[15].mxu0 }
 0x684   :  { %v1029_v51 = vadd.f32 %v1887_v37, %v1028_v50  ;;  %2334 = vmatpush3.bf16.msra.mxu1 %v2769_v31  ;;  %v1136_v6 = vld [vmem:[#allocation3 + $0x8] sm:$0xff] }
 0x685   :  { %1052 = vst.msk [vmem:[#allocation3 + $0x28] sm:$0xff] %vm92_vm0, %v1034_v49  ;;  %2335 = vmatprep.subr.bf16.mxu1 %v2524_v14  ;;  %v1056_v58 = vld [vmem:[#allocation3] sm:$0xff] }
 0x686   :  { %1051 = vst.msk [vmem:[#allocation3 + $0x20] sm:$0xff] %vm92_vm0, %v1029_v51 }
 0x687   :  { %2166 = vmatmul.mubr.msk.f32.vlgmr.msra.gmra.mrb[14].mxu1 %vm92_vm0, %v1055_v52  ;;  %v1904_v52 = vld [vmem:[%s2911_s8] ss:$0 sm:$0xff]  ;;  %s2526_s8 = smov [#allocation14]  }
 0x688   :  { %2337 = vmatpush3.bf16.msra.mxu1 %v2765_v28  ;;  %2176 = vmatprep.mubr.msk.f32.mxu1 %vm2525_vm1, %v2523_v0  ;;  %v1296_v20 = vld [vmem:[#allocation3 + $0x18] sm:$0xff]  ;;  %s1856_s2 = sshll.u32 %s2526_s8, 4  ;;  %s1857_s2 = int_to_ptr.vmem [resolvable:$true] %s1856_s2 }
 0x689   :  { %2338 = vmatprep.subr.bf16.mxu1 %v2524_v14  ;;  %v1216_v12 = vld [vmem:[#allocation3 + $0x10] sm:$0xff]  ;;  %s2487_s10 = scalar_lea.vmem %s1857_s2, 1024  ;;  %p2492_p5 = scmp.lt.s32.totalorder %s1857_s2, %s1857_s2 }
 0x68a   :  { %p2488_p4 = scmp.ne.s32.totalorder %s1857_s2, %s2487_s10  ;;  %p2493_p6 = scmp.lt.s32.totalorder %s2487_s10, %s2487_s10 }
 0x68c   :  { %2340 = vmatpush3.bf16.msra.mxu1 %v2769_v31  ;;  %v1456_v36 = vld [vmem:[#allocation3 + $0x28] sm:$0xff]  ;;  %p2494_p7 = por %p2493_p6, %p2492_p5 }
 0x68d   :  { %2347 = vmatprep.subr.bf16.mxu1 %v2524_v14  ;;  %v1376_v25 = vld [vmem:[#allocation3 + $0x20] sm:$0xff] }
 0x68e   :  { %p2495_p8 = pnand %p2494_p7, %p2488_p4 }
 0x752   :  { %v887_v54 = vpop.f32.mrb[12].mxu1 }
 0x753   :  { %v891_v55 = vadd.f32 %v887_v54, %v817_v53  ;;  %v2136_v56 = vpop.f32.mrb[13].mxu1 }
 0x755   :  { %v892_v57 = vmax.f32 %v891_v55, 0.0 }
 0x757   :  { %893 = vst.msk [vmem:[#allocation4] sm:$0xff] %vm92_vm0, %v892_v57  ;;  %894 = vst.msk [vmem:[#allocation2 + $0x38] sm:$0xff] %vm92_vm0, %v892_v57 }
 0x75a   :  { %v1126_v59 = vpop.f32.mrb[14].mxu1 }
 0x75b   :  { %v1130_v60 = vadd.f32 %v1126_v59, %v1056_v58  ;;  %v2167_v61 = vpop.f32.mrb[15].mxu1 }
 0x75d   :  { %v1131_v62 = vmax.f32 %v1130_v60, 0.0 }
 0x75e   :  { %v902_v63 = vld [vmem:[#allocation2 + $0x38] sm:$0xff] }
 0x75f   :  { %1132 = vst.msk [vmem:[#allocation5] sm:$0xff] %vm92_vm0, %v1131_v62  ;;  %1133 = vst.msk [vmem:[#allocation3] sm:$0xff] %vm92_vm0, %v1131_v62  ;;  %2155 = vmatmul.mubr.msk.f32.gmra.mrb[16].mxu0 %vm92_vm0, %v902_v63 }
 0x760   :  { %2187 = vmatprep.mubr.msk.f32.mxu0 %vm2525_vm1, %v2523_v0 }
 0x766   :  { %v1134_v1 = vld [vmem:[#allocation5] sm:$0xff]  ;;  %v1694_v41 = vld [vmem:[#allocation3] sm:$0xff] }
 0x767   :  { %2177 = vmatmul.mubr.msk.f32.vlgmr.msra.gmra.mrb[16].mxu1 %vm92_vm0, %v1134_v1 }
 0x768   :  { %2349 = vmatpush3.bf16.msra.mxu1 %v2765_v28  ;;  %2198 = vmatprep.mubr.msk.f32.mxu1 %vm2525_vm1, %v2523_v0 }
 0x769   :  { %2350 = vmatprep.subr.bf16.mxu1 %v2524_v14 }
 0x76c   :  { %2352 = vmatpush3.bf16.msra.mxu1 %v2769_v31 }
 0x76d   :  { %2359 = vmatprep.subr.bf16.mxu1 %v2524_v14 }
 0x832   :  { %v2156_v2 = vpop.f32.mrb[16].mxu0 }
 0x833   :  { %v1044_v3 = vadd.f32 %v2156_v2, %v1887_v37  ;;  %v1038_v4 = vpop.f32.mrb[17].mxu0 }
 0x834   :  { %v1039_v5 = vadd.f32 %v1887_v37, %v1038_v4 }
 0x835   :  { %1054 = vst.msk [vmem:[#allocation3 + $0x38] sm:$0xff] %vm92_vm0, %v1044_v3 }
 0x836   :  { %1053 = vst.msk [vmem:[#allocation3 + $0x30] sm:$0xff] %vm92_vm0, %v1039_v5 }
 0x83a   :  { %v1206_v7 = vpop.f32.mrb[16].mxu1 }
 0x83b   :  { %v1210_v8 = vadd.f32 %v1206_v7, %v1136_v6  ;;  %v2178_v9 = vpop.f32.mrb[17].mxu1 }
 0x83c   :  { %v1616_v4 = vld [vmem:[#allocation3 + $0x38] sm:$0xff] }
 0x83d   :  { %v1211_v10 = vmax.f32 %v1210_v8, 0.0  ;;  %v1536_v47 = vld [vmem:[#allocation3 + $0x30] sm:$0xff] }
 0x83f   :  { %1212 = vst.msk [vmem:[#allocation5] sm:$0xff] %vm92_vm0, %v1211_v10  ;;  %1213 = vst.msk [vmem:[#allocation3 + $0x8] sm:$0xff] %vm92_vm0, %v1211_v10 }
 0x846   :  { %v1214_v11 = vld [vmem:[#allocation5] sm:$0xff] }
 0x847   :  { %2188 = vmatmul.mubr.msk.f32.vlgmr.msra.gmra.mrb[18].mxu0 %vm92_vm0, %v1214_v11  ;;  %v1695_v42 = vld [vmem:[#allocation3 + $0x8] sm:$0xff] }
 0x848   :  { %2355 = vmatpush3.bf16.msra.mxu0 %v2765_v28  ;;  %2209 = vmatprep.mubr.msk.f32.mxu0 %vm2525_vm1, %v2523_v0 }
 0x849   :  { %2356 = vmatprep.subr.bf16.mxu0 %v2524_v14 }
 0x84c   :  { %2358 = vmatpush3.bf16.msra.mxu0 %v2769_v31 }
 0x84d   :  { %2365 = vmatprep.subr.bf16.mxu0 %v2524_v14 }
 0x91a   :  { %v1286_v15 = vpop.f32.mrb[18].mxu0 }
 0x91b   :  { %v1290_v16 = vadd.f32 %v1286_v15, %v1216_v12  ;;  %v2189_v13 = vpop.f32.mrb[19].mxu0 }
 0x91d   :  { %v1291_v17 = vmax.f32 %v1290_v16, 0.0 }
 0x91f   :  { %1292 = vst.msk [vmem:[#allocation5] sm:$0xff] %vm92_vm0, %v1291_v17  ;;  %1293 = vst.msk [vmem:[#allocation3 + $0x10] sm:$0xff] %vm92_vm0, %v1291_v17 }
 0x926   :  { %v1294_v18 = vld [vmem:[#allocation5] sm:$0xff]  ;;  %v1696_v43 = vld [vmem:[#allocation3 + $0x10] sm:$0xff] }
 0x927   :  { %2199 = vmatmul.mubr.msk.f32.vlgmr.msra.gmra.mrb[18].mxu1 %vm92_vm0, %v1294_v18 }
 0x928   :  { %2361 = vmatpush3.bf16.msra.mxu1 %v2765_v28  ;;  %2220 = vmatprep.mubr.msk.f32.mxu1 %vm2525_vm1, %v2523_v0 }
 0x929   :  { %2362 = vmatprep.subr.bf16.mxu1 %v2524_v14 }
 0x92c   :  { %2364 = vmatpush3.bf16.msra.mxu1 %v2769_v31 }
 0x92d   :  { %2371 = vmatprep.subr.bf16.mxu1 %v2524_v14 }
 0x9fa   :  { %v1366_v19 = vpop.f32.mrb[18].mxu1 }
 0x9fb   :  { %v1370_v21 = vadd.f32 %v1366_v19, %v1296_v20  ;;  %v2200_v22 = vpop.f32.mrb[19].mxu1 }
 0x9fd   :  { %v1371_v23 = vmax.f32 %v1370_v21, 0.0 }
 0x9ff   :  { %1372 = vst.msk [vmem:[#allocation5] sm:$0xff] %vm92_vm0, %v1371_v23  ;;  %1373 = vst.msk [vmem:[#allocation3 + $0x18] sm:$0xff] %vm92_vm0, %v1371_v23 }
 0xa06   :  { %v1374_v24 = vld [vmem:[#allocation5] sm:$0xff]  ;;  %v1697_v44 = vld [vmem:[#allocation3 + $0x18] sm:$0xff] }
 0xa07   :  { %2210 = vmatmul.mubr.msk.f32.vlgmr.msra.gmra.mrb[20].mxu0 %vm92_vm0, %v1374_v24 }
 0xa08   :  { %2367 = vmatpush3.bf16.msra.mxu0 %v2765_v28  ;;  %2231 = vmatprep.mubr.msk.f32.mxu0 %vm2525_vm1, %v2523_v0 }
 0xa09   :  { %2368 = vmatprep.subr.bf16.mxu0 %v2524_v14 }
 0xa0c   :  { %2370 = vmatpush3.bf16.msra.mxu0 %v2769_v31 }
 0xa0d   :  { %2378 = vmatprep.subr.bf16.mxu0 %v2377_v35 }
 0xada   :  { %v1446_v26 = vpop.f32.mrb[20].mxu0 }
 0xadb   :  { %v1450_v27 = vadd.f32 %v1446_v26, %v1376_v25  ;;  %v2211_v29 = vpop.f32.mrb[21].mxu0 }
 0xadd   :  { %v1451_v30 = vmax.f32 %v1450_v27, 0.0 }
 0xadf   :  { %1452 = vst.msk [vmem:[#allocation5] sm:$0xff] %vm92_vm0, %v1451_v30  ;;  %1453 = vst.msk [vmem:[#allocation3 + $0x20] sm:$0xff] %vm92_vm0, %v1451_v30 }
 0xae6   :  { %v1454_v32 = vld [vmem:[#allocation5] sm:$0xff]  ;;  %v1698_v45 = vld [vmem:[#allocation3 + $0x20] sm:$0xff] }
 0xae7   :  { %2221 = vmatmul.mubr.msk.f32.vlgmr.msra.gmra.mrb[20].mxu1 %vm92_vm0, %v1454_v32 }
 0xae8   :  { %2373 = vmatpush3.bf16.msra.mxu1 %v2765_v28  ;;  %2242 = vmatprep.mubr.msk.f32.mxu1 %vm2525_vm1, %v2523_v0  ;;  %v1704_v0 = vld [vmem:[%s2910_s7 + $0x10] sm:$0xff] }
 0xae9   :  { %2374 = vmatprep.subr.bf16.mxu1 %v2524_v14  ;;  %v1705_v14 = vld [vmem:[%s2910_s7 + $0x18] sm:$0xff] }
 0xaec   :  { %2376 = vmatpush3.bf16.msra.mxu1 %v2769_v31  ;;  %v2381_v31 = vpack.c.bf16 %v1705_v14, %v1704_v0 }
 0xbba   :  { %v1526_v37 = vpop.f32.mrb[20].mxu1 }
 0xbbb   :  { %v1530_v28 = vadd.f32 %v1526_v37, %v1456_v36  ;;  %v2222_v38 = vpop.f32.mrb[21].mxu1 }
 0xbbd   :  { %v1531_v39 = vmax.f32 %v1530_v28, 0.0 }
 0xbbf   :  { %1532 = vst.msk [vmem:[#allocation5] sm:$0xff] %vm92_vm0, %v1531_v39  ;;  %1533 = vst.msk [vmem:[#allocation3 + $0x28] sm:$0xff] %vm92_vm0, %v1531_v39 }
 0xbc6   :  { %v1534_v40 = vld [vmem:[#allocation5] sm:$0xff] }
 0xbc7   :  { %2232 = vmatmul.mubr.msk.f32.vlgmr.msra.gmra.mrb[22].mxu0 %vm92_vm0, %v1534_v40  ;;  %v1699_v46 = vld [vmem:[#allocation3 + $0x28] sm:$0xff] }
 0xbc8   :  { %2380 = vmatpush3.bf16.msra.mxu0 %v2377_v35  ;;  %2253 = vmatprep.mubr.msk.f32.mxu0 %vm92_vm0, %v1694_v41 }
 0xbc9   :  { %2382 = vmatprep.subr.bf16.mxu0 %v2381_v31 }
 0xbcc   :  { %2384 = vmatpush3.bf16.msra.mxu0 %v2381_v31 }
 0xbcf   :  { %2254 = vmatmul.mubr.msk.f32.vlgmr.msra.gmra.mrb[24].mxu0 %vm92_vm0, %v1695_v42 }
 0xbd0   :  { %2256 = vmatprep.mubr.msk.f32.mxu0 %vm92_vm0, %v1696_v43 }
 0xbd3   :  { %2257 = vmatmul.mubr.msk.f32.gmra.mrb[26].mxu0 %vm92_vm0, %v1697_v44 }
 0xbd4   :  { %2259 = vmatprep.mubr.msk.f32.mxu0 %vm92_vm0, %v1698_v45 }
 0xbd7   :  { %2260 = vmatmul.mubr.msk.f32.gmra.mrb[28].mxu0 %vm92_vm0, %v1699_v46 }
 0xc9a   :  { %v1606_v48 = vpop.f32.mrb[22].mxu0 }
 0xc9b   :  { %v1610_v49 = vadd.f32 %v1606_v48, %v1536_v47  ;;  %v2233_v50 = vpop.f32.mrb[23].mxu0 }
 0xc9d   :  { %v1611_v51 = vmax.f32 %v1610_v49, 0.0 }
 0xc9f   :  { %1612 = vst.msk [vmem:[#allocation5] sm:$0xff] %vm92_vm0, %v1611_v51  ;;  %1613 = vst.msk [vmem:[#allocation3 + $0x30] sm:$0xff] %vm92_vm0, %v1611_v51 }
 0xca2   :  { %v2255_v53 = vpop.f32.mrb[24].mxu0 }
 0xca3   :  { %v1809_v54 = vadd.f32 %v2255_v53, %v1904_v52  ;;  %v1803_v55 = vpop.f32.mrb[25].mxu0 }
 0xca4   :  { %v1804_v56 = vadd.f32 %v1904_v52, %v1803_v55 }
 0xca5   :  { %1844 = vst.msk [vmem:[#allocation14 + $0x8] sm:$0xff] %vm1842_vm2, %v1809_v54 }
 0xca6   :  { %1843 = vst.msk [vmem:[#allocation14] sm:$0xff] %vm1842_vm2, %v1804_v56  ;;  %v2258_v57 = vpop.f32.mrb[26].mxu0  ;;  %v1614_v58 = vld [vmem:[#allocation5] sm:$0xff]  ;;  %v1700_v59 = vld [vmem:[#allocation3 + $0x30] sm:$0xff] }
 0xca7   :  { %v1819_v60 = vadd.f32 %v2258_v57, %v1904_v52  ;;  %v1813_v61 = vpop.f32.mrb[27].mxu0  ;;  %2243 = vmatmul.mubr.msk.f32.vlgmr.msra.gmra.mrb[22].mxu1 %vm92_vm0, %v1614_v58  ;;  %2262 = vmatprep.mubr.msk.f32.mxu0 %vm92_vm0, %v1700_v59 }
 0xca8   :  { %v1814_v62 = vadd.f32 %v1904_v52, %v1813_v61 }
 0xca9   :  { %1846 = vst.msk [vmem:[#allocation14 + $0x18] sm:$0xff] %vm1842_vm2, %v1819_v60 }
 0xcaa   :  { %1845 = vst.msk [vmem:[#allocation14 + $0x10] sm:$0xff] %vm1842_vm2, %v1814_v62  ;;  %v2261_v63 = vpop.f32.mrb[28].mxu0 }
 0xcab   :  { %v1829_v1 = vadd.f32 %v2261_v63, %v1904_v52  ;;  %v1823_v2 = vpop.f32.mrb[29].mxu0 }
 0xcac   :  { %v1824_v3 = vadd.f32 %v1904_v52, %v1823_v2 }
 0xcad   :  { %1848 = vst.msk [vmem:[#allocation14 + $0x28] sm:$0xff] %vm1842_vm2, %v1829_v1 }
 0xcae   :  { %1847 = vst.msk [vmem:[#allocation14 + $0x20] sm:$0xff] %vm1842_vm2, %v1824_v3 }
 0xd7a   :  { %v1686_v5 = vpop.f32.mrb[22].mxu1 }
 0xd7b   :  { %v1690_v6 = vadd.f32 %v1686_v5, %v1616_v4  ;;  %v2244_v7 = vpop.f32.mrb[23].mxu1 }
 0xd7d   :  { %v1691_v8 = vmax.f32 %v1690_v6, 0.0 }
 0xd7f   :  { %1692 = vst.msk [vmem:[#allocation5] sm:$0xff] %vm92_vm0, %v1691_v8  ;;  %1693 = vst.msk [vmem:[#allocation3 + $0x38] sm:$0xff] %vm92_vm0, %v1691_v8 }
 0xd86   :  { %v1701_v9 = vld [vmem:[#allocation3 + $0x38] sm:$0xff] }
 0xd87   :  { %2263 = vmatmul.mubr.msk.f32.gmra.mrb[30].mxu0 %vm92_vm0, %v1701_v9 }
 0xe5a   :  { %v2264_v10 = vpop.f32.mrb[30].mxu0 }
 0xe5b   :  { %v1839_v11 = vadd.f32 %v2264_v10, %v1904_v52  ;;  %v1833_v12 = vpop.f32.mrb[31].mxu0 }
 0xe5c   :  { %v1834_v15 = vadd.f32 %v1904_v52, %v1833_v12 }
 0xe5d   :  { %1850 = vst.msk [vmem:[#allocation14 + $0x38] sm:$0xff] %vm1842_vm2, %v1839_v11 }
 0xe5e   :  { %1849 = vst.msk [vmem:[#allocation14 + $0x30] sm:$0xff] %vm1842_vm2, %v1834_v15 }
 0xe5f   :  { %2498 = shalt.err (!%p2495_p8)
}
 0xe60   :  { %s2499_s15 = scalar_lea.hbm %s2912_s9, 1024 }
 0xe61   :  { %p2500_p9 = scmp.ne.s32.totalorder %s2912_s9, %s2499_s15  ;;  %p2503_p10 = scmp.lt.u32.totalorder %s2499_s15, %s2912_s9 }
 0xe63   :  { %p2505_p11 = pnand %p2503_p10, %p2500_p9 }
 0xe65   :  { %2508 = shalt.err (!%p2505_p11)
}
 0xe66   :  { %1862 = dma.vmem_to_hbm [thread:$0]  %s1857_s2, 1024, %s2912_s9, [#allocation8], %s2519_s21, %s2519_s21, %s2520_s22  }
 0xe67   :  { %2515 = dma.done.wait [#allocation8], 1024  }
 0xe68   :  { %2516 = vsyncadd [#allocation8], 4294966272 }
 0xe69   :  { %1866 = vsyncpa [#allocation7], 1 }
 0xe6a   :  { %1867 = vsyncpa [#allocation10], 1 }
 0xe6b   :  { %1868 = vsyncpa [#allocation13], 1 }
 0xe6c   :  { %1869 = vsyncpa [#allocation8], 1 }

// kernel: tpu_custom_call.1
= control target key start
LH: loop header
LB: loop body
LE: loop exit
PB: predicated region body
PF: predicated region fallthrough
CT: control target
= control target key end

     0   :  { %14 = vsyncpa [#allocation7], 0  ;;  %s2903_s0 = inlined_call_operand.hbm [shape: f32[8,8,32], index: 0, kind: input, shape index: {}]   ;;  %s2904_s1 = inlined_call_operand.vmem [shape: f32[32,32], index: 1, kind: input, shape index: {}]   ;;  %s2905_s2 = inlined_call_operand.hbm [shape: f32[32,32], index: 2, kind: input, shape index: {}]   ;;  %s2906_s3 = inlined_call_operand.vmem [shape: f32[1,32], index: 3, kind: input, shape index: {}]   ;;  %s2907_s4 = inlined_call_operand.hbm [shape: f32[32,32], index: 4, kind: input, shape index: {}]   ;;  %s2908_s5 = inlined_call_operand.hbm [shape: f32[32,32], index: 5, kind: input, shape index: {}]   ;;  %s2909_s6 = inlined_call_operand.vmem [shape: f32[1,32], index: 6, kind: input, shape index: {}]   ;;  %s2910_s7 = inlined_call_operand.vmem [shape: f32[32,8], index: 7, kind: input, shape index: {}]   ;;  %s2911_s8 = inlined_call_operand.vmem [shape: f32[1,8], index: 8, kind: input, shape index: {}]   ;;  %s2912_s9 = inlined_call_operand.hbm [shape: f32[8,8,8], index: 9, kind: output, shape index: {}]  }
   0x1   :  { %15 = vsyncpa [#allocation10], 0 }
   0x2   :  { %16 = vsyncpa [#allocation13], 0 }
   0x3   :  { %17 = vsyncpa [#allocation8], 0  ;;  %s2517_s30 = smov [#allocation9]   ;;  %s2518_s11 = smov [#allocation6]  }
   0x4   :  { %s37_s10 = sshll.u32 %s2517_s30, 4  ;;  %s23_s12 = sshll.u32 %s2518_s11, 4  ;;  %s38_s10 = int_to_ptr.vmem [resolvable:$true] %s37_s10  ;;  %s2577_s12 = int_to_ptr.vmem [resolvable:$true] %s23_s12 }
   0x5   :  { %s2399_s15 = scalar_lea.hbm %s2905_s2, 512 }
   0x6   :  { %p2400_p0 = scmp.ne.s32.totalorder %s2905_s2, %s2399_s15  ;;  %p2403_p1 = scmp.lt.u32.totalorder %s2399_s15, %s2905_s2 }
   0x8   :  { %p2405_p2 = pnand %p2403_p1, %p2400_p0 }
   0xa   :  { %2408 = shalt.err (!%p2405_p2)
}
   0xb   :  { %s2409_s20 = scalar_lea.vmem %s38_s10, 512  ;;  %p2414_p4 = scmp.lt.s32.totalorder %s38_s10, %s38_s10 }
   0xc   :  { %p2410_p3 = scmp.ne.s32.totalorder %s38_s10, %s2409_s20  ;;  %p2415_p5 = scmp.lt.s32.totalorder %s2409_s20, %s2409_s20 }
   0xe   :  { %p2416_p6 = por %p2415_p5, %p2414_p4 }
  0x10   :  { %p2417_p7 = pnand %p2416_p6, %p2410_p3 }
  0x12   :  { %2420 = shalt.err (!%p2417_p7)
}
  0x13   :  { %s2519_s21 = smov 128   ;;  %s2520_s22 = smov 8  }
  0x14   :  { %43 = dma.hbm_to_vmem [thread:$0]  %s2905_s2, 512, %s38_s10, [#allocation10], %s2519_s21, %s2519_s21, %s2520_s22  }
  0x15   :  { %s2421_s27 = scalar_lea.hbm %s2903_s0, 1024 }
  0x16   :  { %p2422_p8 = scmp.ne.s32.totalorder %s2903_s0, %s2421_s27  ;;  %p2425_p9 = scmp.lt.u32.totalorder %s2421_s27, %s2903_s0 }
  0x18   :  { %p2427_p10 = pnand %p2425_p9, %p2422_p8 }
  0x1a   :  { %2430 = shalt.err (!%p2427_p10)
}
  0x1b   :  { %s2431_s13 = scalar_lea.vmem %s2577_s12, 1024  ;;  %p2436_p12 = scmp.lt.s32.totalorder %s2577_s12, %s2577_s12 }
  0x1c   :  { %p2432_p11 = scmp.ne.s32.totalorder %s2577_s12, %s2431_s13  ;;  %p2437_p13 = scmp.lt.s32.totalorder %s2431_s13, %s2431_s13 }
  0x1e   :  { %p2438_p0 = por %p2437_p13, %p2436_p12 }
  0x20   :  { %p2439_p1 = pnand %p2438_p0, %p2432_p11 }
  0x22   :  { %2442 = shalt.err (!%p2439_p1)
}
  0x23   :  { %29 = dma.hbm_to_vmem [thread:$0]  %s2903_s0, 1024, %s2577_s12, [#allocation7], %s2519_s21, %s2519_s21, %s2520_s22  }
  0x24   :  { %s2521_s14 = smov [#allocation11]   ;;  %s2522_s16 = smov [#allocation12]  }
  0x25   :  { %s51_s15 = sshll.u32 %s2521_s14, 4  ;;  %s63_s17 = sshll.u32 %s2522_s16, 4  ;;  %s52_s15 = int_to_ptr.vmem [resolvable:$true] %s51_s15  ;;  %s2614_s17 = int_to_ptr.vmem [resolvable:$true] %s63_s17 }
  0x26   :  { %s2443_s20 = scalar_lea.hbm %s2907_s4, 512 }
  0x27   :  { %p2444_p2 = scmp.ne.s32.totalorder %s2907_s4, %s2443_s20  ;;  %p2447_p3 = scmp.lt.u32.totalorder %s2443_s20, %s2907_s4 }
  0x29   :  { %p2449_p4 = pnand %p2447_p3, %p2444_p2 }
  0x2b   :  { %2452 = shalt.err (!%p2449_p4)
}
  0x2c   :  { %s2453_s0 = scalar_lea.vmem %s52_s15, 512  ;;  %p2458_p6 = scmp.lt.s32.totalorder %s52_s15, %s52_s15 }
  0x2d   :  { %p2454_p5 = scmp.ne.s32.totalorder %s52_s15, %s2453_s0  ;;  %p2459_p7 = scmp.lt.s32.totalorder %s2453_s0, %s2453_s0 }
  0x2f   :  { %p2460_p8 = por %p2459_p7, %p2458_p6 }
  0x31   :  { %p2461_p9 = pnand %p2460_p8, %p2454_p5 }
  0x33   :  { %2464 = shalt.err (!%p2461_p9)
}
  0x34   :  { %57 = dma.hbm_to_vmem [thread:$0]  %s2907_s4, 512, %s52_s15, [#allocation10], %s2519_s21, %s2519_s21, %s2520_s22  }
  0x35   :  { %s2465_s30 = scalar_lea.hbm %s2908_s5, 512 }
  0x36   :  { %p2466_p10 = scmp.ne.s32.totalorder %s2908_s5, %s2465_s30  ;;  %p2469_p11 = scmp.lt.u32.totalorder %s2465_s30, %s2908_s5 }
  0x38   :  { %p2471_p12 = pnand %p2469_p11, %p2466_p10 }
  0x3a   :  { %2474 = shalt.err (!%p2471_p12)
}
  0x3b   :  { %s2475_s14 = scalar_lea.vmem %s2614_s17, 512  ;;  %p2480_p0 = scmp.lt.s32.totalorder %s2614_s17, %s2614_s17 }
  0x3c   :  { %p2476_p13 = scmp.ne.s32.totalorder %s2614_s17, %s2475_s14  ;;  %p2481_p1 = scmp.lt.s32.totalorder %s2475_s14, %s2475_s14 }
  0x3e   :  { %p2482_p2 = por %p2481_p1, %p2480_p0 }
  0x40   :  { %p2483_p3 = pnand %p2482_p2, %p2476_p13 }
  0x42   :  { %2486 = shalt.err (!%p2483_p3)
}
  0x43   :  { %69 = dma.hbm_to_vmem [thread:$0]  %s2908_s5, 512, %s2614_s17, [#allocation13], %s2519_s21, %s2519_s21, %s2520_s22  }
  0x44   :  { %2509 = dma.done.wait [#allocation7], 1024  }
  0x45   :  { %2510 = vsyncadd [#allocation7], 4294966272 }
  0x46   :  { %2511 = dma.done.wait [#allocation10], 1024  }
  0x47   :  { %2512 = vsyncadd [#allocation10], 4294966272 }
  0x48   :  { %2513 = dma.done.wait [#allocation13], 512  }
  0x49   :  { %2514 = vsyncadd [#allocation13], 4294966784  ;;  %vm92_vm0 = vcmask 261120   ;;  %v2523_v0 = vmov 0.0   ;;  %v103_v1 = vld [vmem:[%s2904_s1] sm:$0xff]  ;;  %v104_v2 = vld [vmem:[%s2904_s1 + $0x8] sm:$0xff] }
  0x4a   :  { %93 = vst.msk [vmem:[#allocation4] sm:$0xff] %vm92_vm0, %v2523_v0  ;;  %94 = vst.msk [vmem:[#allocation5] sm:$0xff] %vm92_vm0, %v2523_v0  ;;  %v105_v3 = vld [vmem:[%s2904_s1 + $0x10] sm:$0xff]  ;;  %v2265_v4 = vpack.c.bf16 %v104_v2, %v103_v1  ;;  %v106_v5 = vld [vmem:[%s2904_s1 + $0x18] sm:$0xff]  ;;  %v2524_v14 = vmov 0.0|0.0   ;;  %vm2525_vm1 = vmmov 0  }
  0x4b   :  { %v95_v6 = vld [vmem:[#allocation6] sm:$0xff]  ;;  %v2269_v7 = vpack.c.bf16 %v106_v5, %v105_v3  ;;  %v108_v10 = vld [vmem:[#allocation9 + $0x8] sm:$0xff]  ;;  %v101_v15 = vld [vmem:[#allocation6 + $0x30] sm:$0xff]  ;;  %vm1842_vm2 = vcmask 64512  }
  0x4c   :  { %2037 = vmatprep.mubr.msk.f32.mxu0 %vm92_vm0, %v95_v6  ;;  %2266 = vmatprep.subr.bf16.mxu0 %v2265_v4  ;;  %v99_v8 = vld [vmem:[#allocation6 + $0x20] sm:$0xff]  ;;  %v96_v11 = vld [vmem:[#allocation6 + $0x8] sm:$0xff]  ;;  %v109_v16 = vld [vmem:[#allocation9 + $0x10] sm:$0xff] }
  0x4d   :  { %2385 = vmatprep.subr.bf16.mxu1 %v2265_v4  ;;  %2268 = vmatpush3.bf16.msra.mxu0 %v2265_v4  ;;  %v107_v9 = vld [vmem:[#allocation9] sm:$0xff]  ;;  %v100_v12 = vld [vmem:[#allocation6 + $0x28] sm:$0xff]  ;;  %v110_v17 = vld [vmem:[#allocation9 + $0x18] sm:$0xff] }
  0x4e   :  { %2387 = vmatpush3.bf16.msra.mxu1 %v2265_v4  ;;  %2270 = vmatprep.subr.bf16.mxu0 %v2269_v7  ;;  %v2669_v13 = vpack.c.bf16 %v108_v10, %v107_v9  ;;  %v102_v18 = vld [vmem:[#allocation6 + $0x38] sm:$0xff]  ;;  %v2677_v19 = vpack.c.bf16 %v110_v17, %v109_v16  ;;  %v97_v21 = vld [vmem:[#allocation6 + $0x10] sm:$0xff] }
  0x4f   :  { %2386 = vmatprep.subr.bf16.mxu1 %v2269_v7  ;;  %2043 = vmatprep.mubr.msk.f32.mxu1 %vm92_vm0, %v99_v8  ;;  %v1870_v22 = vld [vmem:[%s2906_s3] ss:$0 sm:$0xff]  ;;  %v98_v41 = vld [vmem:[#allocation6 + $0x18] sm:$0xff]  ;;  %v904_v8 = vld [vmem:[#allocation11 + $0x8] sm:$0xff] }
  0x50   :  { %v906_v17 = vld [vmem:[#allocation11 + $0x18] sm:$0xff] }
  0x51   :  { %2272 = vmatpush3.bf16.msra.mxu0 %v2269_v7  ;;  %v256_v20 = vld [vmem:[#allocation4] sm:$0xff] }
  0x52   :  { %2388 = vmatpush3.bf16.msra.mxu1 %v2269_v7  ;;  %2285 = vmatprep.subr.bf16.mxu0 %v2524_v14  ;;  %v903_v7 = vld [vmem:[#allocation11] sm:$0xff] }
  0x53   :  { %2273 = vmatprep.subr.bf16.mxu1 %v2524_v14  ;;  %v2321_v9 = vpack.c.bf16 %v904_v8, %v903_v7 }
  0x54   :  { %2038 = vmatmul.mubr.msk.f32.vlgmr.msra.gmra.mrb[0].mxu0 %vm92_vm0, %v96_v11 }
  0x55   :  { %2044 = vmatmul.mubr.msk.f32.vlgmr.msra.gmra.mrb[0].mxu1 %vm92_vm0, %v100_v12  ;;  %2287 = vmatpush3.bf16.msra.mxu0 %v2669_v13 }
  0x56   :  { %2275 = vmatpush3.bf16.msra.mxu1 %v2669_v13  ;;  %2046 = vmatprep.mubr.msk.f32.mxu1 %vm92_vm0, %v101_v15 }
  0x57   :  { %2276 = vmatprep.subr.bf16.mxu1 %v2524_v14  ;;  %2288 = vmatprep.subr.bf16.mxu0 %v2524_v14 }
  0x58   :  { %2040 = vmatprep.mubr.msk.f32.mxu0 %vm92_vm0, %v97_v21 }
  0x59   :  { %2047 = vmatmul.mubr.msk.f32.gmra.mrb[2].mxu1 %vm92_vm0, %v102_v18  ;;  %2290 = vmatpush3.bf16.msra.mxu0 %v2677_v19 }
  0x5a   :  { %2278 = vmatpush3.bf16.msra.mxu1 %v2677_v19  ;;  %2057 = vmatprep.mubr.msk.f32.mxu1 %vm2525_vm1, %v2523_v0 }
  0x5b   :  { %2279 = vmatprep.subr.bf16.mxu1 %v2524_v14  ;;  %2297 = vmatprep.subr.bf16.mxu0 %v2524_v14 }
  0x5c   :  { %2041 = vmatmul.mubr.msk.f32.gmra.mrb[2].mxu0 %vm92_vm0, %v98_v41 }
  0x5d   :  { %2058 = vmatmul.mubr.msk.f32.vlgmr.msra.gmra.mrb[4].mxu1 %vm92_vm0, %v256_v20  ;;  %2079 = vmatprep.mubr.msk.f32.mxu0 %vm2525_vm1, %v2523_v0 }
  0x5e   :  { %2281 = vmatpush3.bf16.msra.mxu1 %v2669_v13  ;;  %2068 = vmatprep.mubr.msk.f32.mxu1 %vm2525_vm1, %v2523_v0 }
  0x5f   :  { %2282 = vmatprep.subr.bf16.mxu1 %v2524_v14 }
  0x62   :  { %2284 = vmatpush3.bf16.msra.mxu1 %v2677_v19 }
  0x63   :  { %2291 = vmatprep.subr.bf16.mxu1 %v2524_v14 }
 0x127   :  { %v2039_v23 = vpop.f32.mrb[0].mxu0 }
 0x128   :  { %v2045_v24 = vpop.f32.mrb[0].mxu1  ;;  %v215_v25 = vadd.f32 %v2039_v23, %v1870_v22  ;;  %v209_v26 = vpop.f32.mrb[1].mxu0 }
 0x129   :  { %v235_v27 = vadd.f32 %v2045_v24, %v1870_v22  ;;  %v229_v28 = vpop.f32.mrb[1].mxu1  ;;  %v210_v29 = vadd.f32 %v1870_v22, %v209_v26  ;;  %v907_v26 = vld [vmem:[#allocation12] sm:$0xff] }
 0x12a   :  { %v230_v30 = vadd.f32 %v1870_v22, %v229_v28  ;;  %249 = vst.msk [vmem:[#allocation2 + $0x8] sm:$0xff] %vm92_vm0, %v215_v25 }
 0x12b   :  { %253 = vst.msk [vmem:[#allocation2 + $0x28] sm:$0xff] %vm92_vm0, %v235_v27  ;;  %248 = vst.msk [vmem:[#allocation2] sm:$0xff] %vm92_vm0, %v210_v29  ;;  %v908_v27 = vld [vmem:[#allocation12 + $0x8] sm:$0xff]  ;;  %v909_v29 = vld [vmem:[#allocation12 + $0x10] sm:$0xff] }
 0x12c   :  { %252 = vst.msk [vmem:[#allocation2 + $0x20] sm:$0xff] %vm92_vm0, %v230_v30  ;;  %v2048_v31 = vpop.f32.mrb[2].mxu1  ;;  %v2765_v28 = vpack.c.bf16 %v908_v27, %v907_v26  ;;  %v910_v30 = vld [vmem:[#allocation12 + $0x18] sm:$0xff] }
 0x12d   :  { %v245_v32 = vadd.f32 %v2048_v31, %v1870_v22  ;;  %v239_v33 = vpop.f32.mrb[3].mxu1  ;;  %v2769_v31 = vpack.c.bf16 %v910_v30, %v909_v29 }
 0x12e   :  { %v240_v34 = vadd.f32 %v1870_v22, %v239_v33 }
 0x12f   :  { %255 = vst.msk [vmem:[#allocation2 + $0x38] sm:$0xff] %vm92_vm0, %v245_v32  ;;  %v2042_v48 = vpop.f32.mrb[2].mxu0 }
 0x130   :  { %254 = vst.msk [vmem:[#allocation2 + $0x30] sm:$0xff] %vm92_vm0, %v240_v34  ;;  %v327_v35 = vpop.f32.mrb[4].mxu1  ;;  %v225_v49 = vadd.f32 %v2042_v48, %v1870_v22  ;;  %v219_v50 = vpop.f32.mrb[3].mxu0 }
 0x131   :  { %v2059_v36 = vpop.f32.mrb[5].mxu1  ;;  %v337_v42 = vld [vmem:[#allocation2 + $0x8] sm:$0xff]  ;;  %v220_v51 = vadd.f32 %v1870_v22, %v219_v50 }
 0x132   :  { %v257_v37 = vld [vmem:[#allocation2] sm:$0xff]  ;;  %251 = vst.msk [vmem:[#allocation2 + $0x18] sm:$0xff] %vm92_vm0, %v225_v49  ;;  %v657_v10 = vld [vmem:[#allocation2 + $0x28] sm:$0xff] }
 0x133   :  { %v331_v38 = vadd.f32 %v327_v35, %v257_v37  ;;  %250 = vst.msk [vmem:[#allocation2 + $0x10] sm:$0xff] %vm92_vm0, %v220_v51  ;;  %v577_v1 = vld [vmem:[#allocation2 + $0x20] sm:$0xff] }
 0x134   :  { %v1887_v37 = vld [vmem:[%s2909_s6] ss:$0 sm:$0xff] }
 0x135   :  { %v332_v39 = vmax.f32 %v331_v38, 0.0 }
 0x137   :  { %333 = vst.msk [vmem:[#allocation4] sm:$0xff] %vm92_vm0, %v332_v39  ;;  %334 = vst.msk [vmem:[#allocation2] sm:$0xff] %vm92_vm0, %v332_v39  ;;  %v737_v32 = vld [vmem:[#allocation2 + $0x30] sm:$0xff] }
 0x139   :  { %v497_v58 = vld [vmem:[#allocation2 + $0x18] sm:$0xff] }
 0x13a   :  { %v417_v52 = vld [vmem:[#allocation2 + $0x10] sm:$0xff] }
 0x13e   :  { %v335_v40 = vld [vmem:[#allocation4] sm:$0xff] }
 0x13f   :  { %2069 = vmatmul.mubr.msk.f32.vlgmr.msra.gmra.mrb[6].mxu1 %vm92_vm0, %v335_v40 }
 0x140   :  { %2293 = vmatpush3.bf16.msra.mxu1 %v2669_v13  ;;  %2090 = vmatprep.mubr.msk.f32.mxu1 %vm2525_vm1, %v2523_v0 }
 0x141   :  { %2294 = vmatprep.subr.bf16.mxu1 %v2524_v14 }
 0x144   :  { %2296 = vmatpush3.bf16.msra.mxu1 %v2677_v19 }
 0x145   :  { %2303 = vmatprep.subr.bf16.mxu1 %v2524_v14 }
 0x212   :  { %v407_v43 = vpop.f32.mrb[6].mxu1 }
 0x213   :  { %v411_v44 = vadd.f32 %v407_v43, %v337_v42  ;;  %v2070_v45 = vpop.f32.mrb[7].mxu1 }
 0x215   :  { %v412_v46 = vmax.f32 %v411_v44, 0.0 }
 0x217   :  { %413 = vst.msk [vmem:[#allocation4] sm:$0xff] %vm92_vm0, %v412_v46  ;;  %414 = vst.msk [vmem:[#allocation2 + $0x8] sm:$0xff] %vm92_vm0, %v412_v46 }
 0x21e   :  { %v415_v47 = vld [vmem:[#allocation4] sm:$0xff]  ;;  %v896_v21 = vld [vmem:[#allocation2 + $0x8] sm:$0xff] }
 0x21f   :  { %2080 = vmatmul.mubr.msk.f32.vlgmr.msra.gmra.mrb[4].mxu0 %vm92_vm0, %v415_v47 }
 0x220   :  { %2299 = vmatpush3.bf16.msra.mxu0 %v2669_v13  ;;  %2101 = vmatprep.mubr.msk.f32.mxu0 %vm2525_vm1, %v2523_v0 }
 0x221   :  { %2300 = vmatprep.subr.bf16.mxu0 %v2524_v14 }
 0x224   :  { %2302 = vmatpush3.bf16.msra.mxu0 %v2677_v19 }
 0x225   :  { %2309 = vmatprep.subr.bf16.mxu0 %v2524_v14 }
 0x2f2   :  { %v487_v53 = vpop.f32.mrb[4].mxu0 }
 0x2f3   :  { %v491_v54 = vadd.f32 %v487_v53, %v417_v52  ;;  %v2081_v55 = vpop.f32.mrb[5].mxu0  ;;  %v1055_v52 = vld [vmem:[#allocation5] sm:$0xff]  ;;  %v817_v53 = vld [vmem:[#allocation2 + $0x38] sm:$0xff] }
 0x2f5   :  { %v492_v56 = vmax.f32 %v491_v54, 0.0 }
 0x2f7   :  { %493 = vst.msk [vmem:[#allocation4] sm:$0xff] %vm92_vm0, %v492_v56  ;;  %494 = vst.msk [vmem:[#allocation2 + $0x10] sm:$0xff] %vm92_vm0, %v492_v56 }
 0x2fe   :  { %v495_v57 = vld [vmem:[#allocation4] sm:$0xff]  ;;  %v897_v22 = vld [vmem:[#allocation2 + $0x10] sm:$0xff] }
 0x2ff   :  { %2091 = vmatmul.mubr.msk.f32.vlgmr.msra.gmra.mrb[8].mxu1 %vm92_vm0, %v495_v57 }
 0x300   :  { %2305 = vmatpush3.bf16.msra.mxu1 %v2669_v13  ;;  %2112 = vmatprep.mubr.msk.f32.mxu1 %vm2525_vm1, %v2523_v0 }
 0x301   :  { %2306 = vmatprep.subr.bf16.mxu1 %v2524_v14 }
 0x304   :  { %2308 = vmatpush3.bf16.msra.mxu1 %v2677_v19 }
 0x305   :  { %2315 = vmatprep.subr.bf16.mxu1 %v2524_v14 }
 0x3d2   :  { %v567_v59 = vpop.f32.mrb[8].mxu1 }
 0x3d3   :  { %v571_v60 = vadd.f32 %v567_v59, %v497_v58  ;;  %v2092_v61 = vpop.f32.mrb[9].mxu1 }
 0x3d5   :  { %v572_v62 = vmax.f32 %v571_v60, 0.0 }
 0x3d7   :  { %573 = vst.msk [vmem:[#allocation4] sm:$0xff] %vm92_vm0, %v572_v62  ;;  %574 = vst.msk [vmem:[#allocation2 + $0x18] sm:$0xff] %vm92_vm0, %v572_v62 }
 0x3de   :  { %v575_v63 = vld [vmem:[#allocation4] sm:$0xff]  ;;  %v898_v23 = vld [vmem:[#allocation2 + $0x18] sm:$0xff] }
 0x3df   :  { %2102 = vmatmul.mubr.msk.f32.vlgmr.msra.gmra.mrb[6].mxu0 %vm92_vm0, %v575_v63 }
 0x3e0   :  { %2311 = vmatpush3.bf16.msra.mxu0 %v2669_v13  ;;  %2123 = vmatprep.mubr.msk.f32.mxu0 %vm2525_vm1, %v2523_v0 }
 0x3e1   :  { %2312 = vmatprep.subr.bf16.mxu0 %v2524_v14 }
 0x3e4   :  { %2314 = vmatpush3.bf16.msra.mxu0 %v2677_v19 }
 0x3e5   :  { %2322 = vmatprep.subr.bf16.mxu0 %v2321_v9 }
 0x4b2   :  { %v647_v2 = vpop.f32.mrb[6].mxu0 }
 0x4b3   :  { %v651_v3 = vadd.f32 %v647_v2, %v577_v1  ;;  %v2103_v4 = vpop.f32.mrb[7].mxu0 }
 0x4b5   :  { %v652_v5 = vmax.f32 %v651_v3, 0.0 }
 0x4b7   :  { %653 = vst.msk [vmem:[#allocation4] sm:$0xff] %vm92_vm0, %v652_v5  ;;  %654 = vst.msk [vmem:[#allocation2 + $0x20] sm:$0xff] %vm92_vm0, %v652_v5 }
 0x4be   :  { %v655_v6 = vld [vmem:[#allocation4] sm:$0xff] }
 0x4bf   :  { %2113 = vmatmul.mubr.msk.f32.vlgmr.msra.gmra.mrb[10].mxu1 %vm92_vm0, %v655_v6  ;;  %v899_v24 = vld [vmem:[#allocation2 + $0x20] sm:$0xff] }
 0x4c0   :  { %2317 = vmatpush3.bf16.msra.mxu1 %v2669_v13  ;;  %2134 = vmatprep.mubr.msk.f32.mxu1 %vm2525_vm1, %v2523_v0  ;;  %v905_v13 = vld [vmem:[#allocation11 + $0x10] sm:$0xff] }
 0x4c1   :  { %2318 = vmatprep.subr.bf16.mxu1 %v2524_v14  ;;  %v2325_v18 = vpack.c.bf16 %v906_v17, %v905_v13 }
 0x4c4   :  { %2320 = vmatpush3.bf16.msra.mxu1 %v2677_v19  ;;  %v895_v19 = vld [vmem:[#allocation2] sm:$0xff] }
 0x4c5   :  { %2329 = vmatprep.subr.bf16.mxu1 %v2524_v14 }
 0x592   :  { %v727_v11 = vpop.f32.mrb[10].mxu1 }
 0x593   :  { %v731_v12 = vadd.f32 %v727_v11, %v657_v10  ;;  %v2114_v15 = vpop.f32.mrb[11].mxu1 }
 0x595   :  { %v732_v16 = vmax.f32 %v731_v12, 0.0 }
 0x597   :  { %733 = vst.msk [vmem:[#allocation4] sm:$0xff] %vm92_vm0, %v732_v16  ;;  %734 = vst.msk [vmem:[#allocation2 + $0x28] sm:$0xff] %vm92_vm0, %v732_v16 }
 0x59e   :  { %v735_v20 = vld [vmem:[#allocation4] sm:$0xff]  ;;  %v900_v25 = vld [vmem:[#allocation2 + $0x28] sm:$0xff] }
 0x59f   :  { %2124 = vmatmul.mubr.msk.f32.vlgmr.msra.gmra.mrb[8].mxu0 %vm92_vm0, %v735_v20 }
 0x5a0   :  { %2324 = vmatpush3.bf16.msra.mxu0 %v2321_v9  ;;  %2145 = vmatprep.mubr.msk.f32.mxu0 %vm92_vm0, %v895_v19 }
 0x5a1   :  { %2326 = vmatprep.subr.bf16.mxu0 %v2325_v18 }
 0x5a4   :  { %2328 = vmatpush3.bf16.msra.mxu0 %v2325_v18 }
 0x5a5   :  { %2341 = vmatprep.subr.bf16.mxu0 %v2524_v14 }
 0x5a7   :  { %2146 = vmatmul.mubr.msk.f32.vlgmr.msra.gmra.mrb[10].mxu0 %vm92_vm0, %v896_v21 }
 0x5a8   :  { %2148 = vmatprep.mubr.msk.f32.mxu0 %vm92_vm0, %v897_v22  ;;  %2343 = vmatpush3.bf16.msra.mxu0 %v2765_v28 }
 0x5a9   :  { %2344 = vmatprep.subr.bf16.mxu0 %v2524_v14 }
 0x5ab   :  { %2149 = vmatmul.mubr.msk.f32.gmra.mrb[12].mxu0 %vm92_vm0, %v898_v23 }
 0x5ac   :  { %2151 = vmatprep.mubr.msk.f32.mxu0 %vm92_vm0, %v899_v24  ;;  %2346 = vmatpush3.bf16.msra.mxu0 %v2769_v31 }
 0x5ad   :  { %2353 = vmatprep.subr.bf16.mxu0 %v2524_v14 }
 0x5af   :  { %2152 = vmatmul.mubr.msk.f32.gmra.mrb[14].mxu0 %vm92_vm0, %v900_v25 }
 0x672   :  { %v807_v33 = vpop.f32.mrb[8].mxu0 }
 0x673   :  { %v811_v34 = vadd.f32 %v807_v33, %v737_v32  ;;  %v2125_v35 = vpop.f32.mrb[9].mxu0  ;;  %v1702_v33 = vld [vmem:[%s2910_s7] sm:$0xff] }
 0x675   :  { %v812_v36 = vmax.f32 %v811_v34, 0.0  ;;  %v1703_v34 = vld [vmem:[%s2910_s7 + $0x8] sm:$0xff] }
 0x676   :  { %v2377_v35 = vpack.c.bf16 %v1703_v34, %v1702_v33 }
 0x677   :  { %813 = vst.msk [vmem:[#allocation4] sm:$0xff] %vm92_vm0, %v812_v36  ;;  %814 = vst.msk [vmem:[#allocation2 + $0x30] sm:$0xff] %vm92_vm0, %v812_v36 }
 0x67a   :  { %v2147_v38 = vpop.f32.mrb[10].mxu0 }
 0x67b   :  { %v1014_v39 = vadd.f32 %v2147_v38, %v1887_v37  ;;  %v1008_v40 = vpop.f32.mrb[11].mxu0 }
 0x67c   :  { %v1009_v41 = vadd.f32 %v1887_v37, %v1008_v40 }
 0x67d   :  { %1048 = vst.msk [vmem:[#allocation3 + $0x8] sm:$0xff] %vm92_vm0, %v1014_v39 }
 0x67e   :  { %1047 = vst.msk [vmem:[#allocation3] sm:$0xff] %vm92_vm0, %v1009_v41  ;;  %v2150_v42 = vpop.f32.mrb[12].mxu0  ;;  %v815_v43 = vld [vmem:[#allocation4] sm:$0xff]  ;;  %v901_v44 = vld [vmem:[#allocation2 + $0x30] sm:$0xff] }
 0x67f   :  { %v1024_v45 = vadd.f32 %v2150_v42, %v1887_v37  ;;  %v1018_v46 = vpop.f32.mrb[13].mxu0  ;;  %2135 = vmatmul.mubr.msk.f32.vlgmr.msra.gmra.mrb[12].mxu1 %vm92_vm0, %v815_v43  ;;  %2154 = vmatprep.mubr.msk.f32.mxu0 %vm92_vm0, %v901_v44 }
 0x680   :  { %v1019_v47 = vadd.f32 %v1887_v37, %v1018_v46  ;;  %2331 = vmatpush3.bf16.msra.mxu1 %v2765_v28  ;;  %2165 = vmatprep.mubr.msk.f32.mxu1 %vm2525_vm1, %v2523_v0 }
 0x681   :  { %1050 = vst.msk [vmem:[#allocation3 + $0x18] sm:$0xff] %vm92_vm0, %v1024_v45  ;;  %2332 = vmatprep.subr.bf16.mxu1 %v2524_v14 }
 0x682   :  { %1049 = vst.msk [vmem:[#allocation3 + $0x10] sm:$0xff] %vm92_vm0, %v1019_v47  ;;  %v2153_v48 = vpop.f32.mrb[14].mxu0 }
 0x683   :  { %v1034_v49 = vadd.f32 %v2153_v48, %v1887_v37  ;;  %v1028_v50 = vpop.f32.mrb[15].mxu0 }
 0x684   :  { %v1029_v51 = vadd.f32 %v1887_v37, %v1028_v50  ;;  %2334 = vmatpush3.bf16.msra.mxu1 %v2769_v31  ;;  %v1136_v6 = vld [vmem:[#allocation3 + $0x8] sm:$0xff] }
 0x685   :  { %1052 = vst.msk [vmem:[#allocation3 + $0x28] sm:$0xff] %vm92_vm0, %v1034_v49  ;;  %2335 = vmatprep.subr.bf16.mxu1 %v2524_v14  ;;  %v1056_v58 = vld [vmem:[#allocation3] sm:$0xff] }
 0x686   :  { %1051 = vst.msk [vmem:[#allocation3 + $0x20] sm:$0xff] %vm92_vm0, %v1029_v51 }
 0x687   :  { %2166 = vmatmul.mubr.msk.f32.vlgmr.msra.gmra.mrb[14].mxu1 %vm92_vm0, %v1055_v52  ;;  %v1904_v52 = vld [vmem:[%s2911_s8] ss:$0 sm:$0xff]  ;;  %s2526_s8 = smov [#allocation14]  }
 0x688   :  { %2337 = vmatpush3.bf16.msra.mxu1 %v2765_v28  ;;  %2176 = vmatprep.mubr.msk.f32.mxu1 %vm2525_vm1, %v2523_v0  ;;  %v1296_v20 = vld [vmem:[#allocation3 + $0x18] sm:$0xff]  ;;  %s1856_s2 = sshll.u32 %s2526_s8, 4  ;;  %s1857_s2 = int_to_ptr.vmem [resolvable:$true] %s1856_s2 }
 0x689   :  { %2338 = vmatprep.subr.bf16.mxu1 %v2524_v14  ;;  %v1216_v12 = vld [vmem:[#allocation3 + $0x10] sm:$0xff]  ;;  %s2487_s10 = scalar_lea.vmem %s1857_s2, 1024  ;;  %p2492_p5 = scmp.lt.s32.totalorder %s1857_s2, %s1857_s2 }
 0x68a   :  { %p2488_p4 = scmp.ne.s32.totalorder %s1857_s2, %s2487_s10  ;;  %p2493_p6 = scmp.lt.s32.totalorder %s2487_s10, %s2487_s10 }
 0x68c   :  { %2340 = vmatpush3.bf16.msra.mxu1 %v2769_v31  ;;  %v1456_v36 = vld [vmem:[#allocation3 + $0x28] sm:$0xff]  ;;  %p2494_p7 = por %p2493_p6, %p2492_p5 }
 0x68d   :  { %2347 = vmatprep.subr.bf16.mxu1 %v2524_v14  ;;  %v1376_v25 = vld [vmem:[#allocation3 + $0x20] sm:$0xff] }
 0x68e   :  { %p2495_p8 = pnand %p2494_p7, %p2488_p4 }
 0x752   :  { %v887_v54 = vpop.f32.mrb[12].mxu1 }
 0x753   :  { %v891_v55 = vadd.f32 %v887_v54, %v817_v53  ;;  %v2136_v56 = vpop.f32.mrb[13].mxu1 }
 0x755   :  { %v892_v57 = vmax.f32 %v891_v55, 0.0 }
 0x757   :  { %893 = vst.msk [vmem:[#allocation4] sm:$0xff] %vm92_vm0, %v892_v57  ;;  %894 = vst.msk [vmem:[#allocation2 + $0x38] sm:$0xff] %vm92_vm0, %v892_v57 }
 0x75a   :  { %v1126_v59 = vpop.f32.mrb[14].mxu1 }
 0x75b   :  { %v1130_v60 = vadd.f32 %v1126_v59, %v1056_v58  ;;  %v2167_v61 = vpop.f32.mrb[15].mxu1 }
 0x75d   :  { %v1131_v62 = vmax.f32 %v1130_v60, 0.0 }
 0x75e   :  { %v902_v63 = vld [vmem:[#allocation2 + $0x38] sm:$0xff] }
 0x75f   :  { %1132 = vst.msk [vmem:[#allocation5] sm:$0xff] %vm92_vm0, %v1131_v62  ;;  %1133 = vst.msk [vmem:[#allocation3] sm:$0xff] %vm92_vm0, %v1131_v62  ;;  %2155 = vmatmul.mubr.msk.f32.gmra.mrb[16].mxu0 %vm92_vm0, %v902_v63 }
 0x760   :  { %2187 = vmatprep.mubr.msk.f32.mxu0 %vm2525_vm1, %v2523_v0 }
 0x766   :  { %v1134_v1 = vld [vmem:[#allocation5] sm:$0xff]  ;;  %v1694_v41 = vld [vmem:[#allocation3] sm:$0xff] }
 0x767   :  { %2177 = vmatmul.mubr.msk.f32.vlgmr.msra.gmra.mrb[16].mxu1 %vm92_vm0, %v1134_v1 }
 0x768   :  { %2349 = vmatpush3.bf16.msra.mxu1 %v2765_v28  ;;  %2198 = vmatprep.mubr.msk.f32.mxu1 %vm2525_vm1, %v2523_v0 }
 0x769   :  { %2350 = vmatprep.subr.bf16.mxu1 %v2524_v14 }
 0x76c   :  { %2352 = vmatpush3.bf16.msra.mxu1 %v2769_v31 }
 0x76d   :  { %2359 = vmatprep.subr.bf16.mxu1 %v2524_v14 }
 0x832   :  { %v2156_v2 = vpop.f32.mrb[16].mxu0 }
 0x833   :  { %v1044_v3 = vadd.f32 %v2156_v2, %v1887_v37  ;;  %v1038_v4 = vpop.f32.mrb[17].mxu0 }
 0x834   :  { %v1039_v5 = vadd.f32 %v1887_v37, %v1038_v4 }
 0x835   :  { %1054 = vst.msk [vmem:[#allocation3 + $0x38] sm:$0xff] %vm92_vm0, %v1044_v3 }
 0x836   :  { %1053 = vst.msk [vmem:[#allocation3 + $0x30] sm:$0xff] %vm92_vm0, %v1039_v5 }
 0x83a   :  { %v1206_v7 = vpop.f32.mrb[16].mxu1 }
 0x83b   :  { %v1210_v8 = vadd.f32 %v1206_v7, %v1136_v6  ;;  %v2178_v9 = vpop.f32.mrb[17].mxu1 }
 0x83c   :  { %v1616_v4 = vld [vmem:[#allocation3 + $0x38] sm:$0xff] }
 0x83d   :  { %v1211_v10 = vmax.f32 %v1210_v8, 0.0  ;;  %v1536_v47 = vld [vmem:[#allocation3 + $0x30] sm:$0xff] }
 0x83f   :  { %1212 = vst.msk [vmem:[#allocation5] sm:$0xff] %vm92_vm0, %v1211_v10  ;;  %1213 = vst.msk [vmem:[#allocation3 + $0x8] sm:$0xff] %vm92_vm0, %v1211_v10 }
 0x846   :  { %v1214_v11 = vld [vmem:[#allocation5] sm:$0xff] }
 0x847   :  { %2188 = vmatmul.mubr.msk.f32.vlgmr.msra.gmra.mrb[18].mxu0 %vm92_vm0, %v1214_v11  ;;  %v1695_v42 = vld [vmem:[#allocation3 + $0x8] sm:$0xff] }
 0x848   :  { %2355 = vmatpush3.bf16.msra.mxu0 %v2765_v28  ;;  %2209 = vmatprep.mubr.msk.f32.mxu0 %vm2525_vm1, %v2523_v0 }
 0x849   :  { %2356 = vmatprep.subr.bf16.mxu0 %v2524_v14 }
 0x84c   :  { %2358 = vmatpush3.bf16.msra.mxu0 %v2769_v31 }
 0x84d   :  { %2365 = vmatprep.subr.bf16.mxu0 %v2524_v14 }
 0x91a   :  { %v1286_v15 = vpop.f32.mrb[18].mxu0 }
 0x91b   :  { %v1290_v16 = vadd.f32 %v1286_v15, %v1216_v12  ;;  %v2189_v13 = vpop.f32.mrb[19].mxu0 }
 0x91d   :  { %v1291_v17 = vmax.f32 %v1290_v16, 0.0 }
 0x91f   :  { %1292 = vst.msk [vmem:[#allocation5] sm:$0xff] %vm92_vm0, %v1291_v17  ;;  %1293 = vst.msk [vmem:[#allocation3 + $0x10] sm:$0xff] %vm92_vm0, %v1291_v17 }
 0x926   :  { %v1294_v18 = vld [vmem:[#allocation5] sm:$0xff]  ;;  %v1696_v43 = vld [vmem:[#allocation3 + $0x10] sm:$0xff] }
 0x927   :  { %2199 = vmatmul.mubr.msk.f32.vlgmr.msra.gmra.mrb[18].mxu1 %vm92_vm0, %v1294_v18 }
 0x928   :  { %2361 = vmatpush3.bf16.msra.mxu1 %v2765_v28  ;;  %2220 = vmatprep.mubr.msk.f32.mxu1 %vm2525_vm1, %v2523_v0 }
 0x929   :  { %2362 = vmatprep.subr.bf16.mxu1 %v2524_v14 }
 0x92c   :  { %2364 = vmatpush3.bf16.msra.mxu1 %v2769_v31 }
 0x92d   :  { %2371 = vmatprep.subr.bf16.mxu1 %v2524_v14 }
 0x9fa   :  { %v1366_v19 = vpop.f32.mrb[18].mxu1 }
 0x9fb   :  { %v1370_v21 = vadd.f32 %v1366_v19, %v1296_v20  ;;  %v2200_v22 = vpop.f32.mrb[19].mxu1 }
 0x9fd   :  { %v1371_v23 = vmax.f32 %v1370_v21, 0.0 }
 0x9ff   :  { %1372 = vst.msk [vmem:[#allocation5] sm:$0xff] %vm92_vm0, %v1371_v23  ;;  %1373 = vst.msk [vmem:[#allocation3 + $0x18] sm:$0xff] %vm92_vm0, %v1371_v23 }
 0xa06   :  { %v1374_v24 = vld [vmem:[#allocation5] sm:$0xff]  ;;  %v1697_v44 = vld [vmem:[#allocation3 + $0x18] sm:$0xff] }
 0xa07   :  { %2210 = vmatmul.mubr.msk.f32.vlgmr.msra.gmra.mrb[20].mxu0 %vm92_vm0, %v1374_v24 }
 0xa08   :  { %2367 = vmatpush3.bf16.msra.mxu0 %v2765_v28  ;;  %2231 = vmatprep.mubr.msk.f32.mxu0 %vm2525_vm1, %v2523_v0 }
 0xa09   :  { %2368 = vmatprep.subr.bf16.mxu0 %v2524_v14 }
 0xa0c   :  { %2370 = vmatpush3.bf16.msra.mxu0 %v2769_v31 }
 0xa0d   :  { %2378 = vmatprep.subr.bf16.mxu0 %v2377_v35 }
 0xada   :  { %v1446_v26 = vpop.f32.mrb[20].mxu0 }
 0xadb   :  { %v1450_v27 = vadd.f32 %v1446_v26, %v1376_v25  ;;  %v2211_v29 = vpop.f32.mrb[21].mxu0 }
 0xadd   :  { %v1451_v30 = vmax.f32 %v1450_v27, 0.0 }
 0xadf   :  { %1452 = vst.msk [vmem:[#allocation5] sm:$0xff] %vm92_vm0, %v1451_v30  ;;  %1453 = vst.msk [vmem:[#allocation3 + $0x20] sm:$0xff] %vm92_vm0, %v1451_v30 }
 0xae6   :  { %v1454_v32 = vld [vmem:[#allocation5] sm:$0xff]  ;;  %v1698_v45 = vld [vmem:[#allocation3 + $0x20] sm:$0xff] }
 0xae7   :  { %2221 = vmatmul.mubr.msk.f32.vlgmr.msra.gmra.mrb[20].mxu1 %vm92_vm0, %v1454_v32 }
 0xae8   :  { %2373 = vmatpush3.bf16.msra.mxu1 %v2765_v28  ;;  %2242 = vmatprep.mubr.msk.f32.mxu1 %vm2525_vm1, %v2523_v0  ;;  %v1704_v0 = vld [vmem:[%s2910_s7 + $0x10] sm:$0xff] }
 0xae9   :  { %2374 = vmatprep.subr.bf16.mxu1 %v2524_v14  ;;  %v1705_v14 = vld [vmem:[%s2910_s7 + $0x18] sm:$0xff] }
 0xaec   :  { %2376 = vmatpush3.bf16.msra.mxu1 %v2769_v31  ;;  %v2381_v31 = vpack.c.bf16 %v1705_v14, %v1704_v0 }
 0xbba   :  { %v1526_v37 = vpop.f32.mrb[20].mxu1 }
 0xbbb   :  { %v1530_v28 = vadd.f32 %v1526_v37, %v1456_v36  ;;  %v2222_v38 = vpop.f32.mrb[21].mxu1 }
 0xbbd   :  { %v1531_v39 = vmax.f32 %v1530_v28, 0.0 }
 0xbbf   :  { %1532 = vst.msk [vmem:[#allocation5] sm:$0xff] %vm92_vm0, %v1531_v39  ;;  %1533 = vst.msk [vmem:[#allocation3 + $0x28] sm:$0xff] %vm92_vm0, %v1531_v39 }
 0xbc6   :  { %v1534_v40 = vld [vmem:[#allocation5] sm:$0xff] }
 0xbc7   :  { %2232 = vmatmul.mubr.msk.f32.vlgmr.msra.gmra.mrb[22].mxu0 %vm92_vm0, %v1534_v40  ;;  %v1699_v46 = vld [vmem:[#allocation3 + $0x28] sm:$0xff] }
 0xbc8   :  { %2380 = vmatpush3.bf16.msra.mxu0 %v2377_v35  ;;  %2253 = vmatprep.mubr.msk.f32.mxu0 %vm92_vm0, %v1694_v41 }
 0xbc9   :  { %2382 = vmatprep.subr.bf16.mxu0 %v2381_v31 }
 0xbcc   :  { %2384 = vmatpush3.bf16.msra.mxu0 %v2381_v31 }
 0xbcf   :  { %2254 = vmatmul.mubr.msk.f32.vlgmr.msra.gmra.mrb[24].mxu0 %vm92_vm0, %v1695_v42 }
 0xbd0   :  { %2256 = vmatprep.mubr.msk.f32.mxu0 %vm92_vm0, %v1696_v43 }
 0xbd3   :  { %2257 = vmatmul.mubr.msk.f32.gmra.mrb[26].mxu0 %vm92_vm0, %v1697_v44 }
 0xbd4   :  { %2259 = vmatprep.mubr.msk.f32.mxu0 %vm92_vm0, %v1698_v45 }
 0xbd7   :  { %2260 = vmatmul.mubr.msk.f32.gmra.mrb[28].mxu0 %vm92_vm0, %v1699_v46 }
 0xc9a   :  { %v1606_v48 = vpop.f32.mrb[22].mxu0 }
 0xc9b   :  { %v1610_v49 = vadd.f32 %v1606_v48, %v1536_v47  ;;  %v2233_v50 = vpop.f32.mrb[23].mxu0 }
 0xc9d   :  { %v1611_v51 = vmax.f32 %v1610_v49, 0.0 }
 0xc9f   :  { %1612 = vst.msk [vmem:[#allocation5] sm:$0xff] %vm92_vm0, %v1611_v51  ;;  %1613 = vst.msk [vmem:[#allocation3 + $0x30] sm:$0xff] %vm92_vm0, %v1611_v51 }
 0xca2   :  { %v2255_v53 = vpop.f32.mrb[24].mxu0 }
 0xca3   :  { %v1809_v54 = vadd.f32 %v2255_v53, %v1904_v52  ;;  %v1803_v55 = vpop.f32.mrb[25].mxu0 }
 0xca4   :  { %v1804_v56 = vadd.f32 %v1904_v52, %v1803_v55 }
 0xca5   :  { %1844 = vst.msk [vmem:[#allocation14 + $0x8] sm:$0xff] %vm1842_vm2, %v1809_v54 }
 0xca6   :  { %1843 = vst.msk [vmem:[#allocation14] sm:$0xff] %vm1842_vm2, %v1804_v56  ;;  %v2258_v57 = vpop.f32.mrb[26].mxu0  ;;  %v1614_v58 = vld [vmem:[#allocation5] sm:$0xff]  ;;  %v1700_v59 = vld [vmem:[#allocation3 + $0x30] sm:$0xff] }
 0xca7   :  { %v1819_v60 = vadd.f32 %v2258_v57, %v1904_v52  ;;  %v1813_v61 = vpop.f32.mrb[27].mxu0  ;;  %2243 = vmatmul.mubr.msk.f32.vlgmr.msra.gmra.mrb[22].mxu1 %vm92_vm0, %v1614_v58  ;;  %2262 = vmatprep.mubr.msk.f32.mxu0 %vm92_vm0, %v1700_v59 }
 0xca8   :  { %v1814_v62 = vadd.f32 %v1904_v52, %v1813_v61 }
 0xca9   :  { %1846 = vst.msk [vmem:[#allocation14 + $0x18] sm:$0xff] %vm1842_vm2, %v1819_v60 }
 0xcaa   :  { %1845 = vst.msk [vmem:[#allocation14 + $0x10] sm:$0xff] %vm1842_vm2, %v1814_v62  ;;  %v2261_v63 = vpop.f32.mrb[28].mxu0 }
 0xcab   :  { %v1829_v1 = vadd.f32 %v2261_v63, %v1904_v52  ;;  %v1823_v2 = vpop.f32.mrb[29].mxu0 }
 0xcac   :  { %v1824_v3 = vadd.f32 %v1904_v52, %v1823_v2 }
 0xcad   :  { %1848 = vst.msk [vmem:[#allocation14 + $0x28] sm:$0xff] %vm1842_vm2, %v1829_v1 }
 0xcae   :  { %1847 = vst.msk [vmem:[#allocation14 + $0x20] sm:$0xff] %vm1842_vm2, %v1824_v3 }
 0xd7a   :  { %v1686_v5 = vpop.f32.mrb[22].mxu1 }
 0xd7b   :  { %v1690_v6 = vadd.f32 %v1686_v5, %v1616_v4  ;;  %v2244_v7 = vpop.f32.mrb[23].mxu1 }
 0xd7d   :  { %v1691_v8 = vmax.f32 %v1690_v6, 0.0 }
 0xd7f   :  { %1692 = vst.msk [vmem:[#allocation5] sm:$0xff] %vm92_vm0, %v1691_v8  ;;  %1693 = vst.msk [vmem:[#allocation3 + $0x38] sm:$0xff] %vm92_vm0, %v1691_v8 }
 0xd86   :  { %v1701_v9 = vld [vmem:[#allocation3 + $0x38] sm:$0xff] }
 0xd87   :  { %2263 = vmatmul.mubr.msk.f32.gmra.mrb[30].mxu0 %vm92_vm0, %v1701_v9 }
 0xe5a   :  { %v2264_v10 = vpop.f32.mrb[30].mxu0 }
 0xe5b   :  { %v1839_v11 = vadd.f32 %v2264_v10, %v1904_v52  ;;  %v1833_v12 = vpop.f32.mrb[31].mxu0 }
 0xe5c   :  { %v1834_v15 = vadd.f32 %v1904_v52, %v1833_v12 }
 0xe5d   :  { %1850 = vst.msk [vmem:[#allocation14 + $0x38] sm:$0xff] %vm1842_vm2, %v1839_v11 }
 0xe5e   :  { %1849 = vst.msk [vmem:[#allocation14 + $0x30] sm:$0xff] %vm1842_vm2, %v1834_v15 }
 0xe5f   :  { %2498 = shalt.err (!%p2495_p8)
}
 0xe60   :  { %s2499_s15 = scalar_lea.hbm %s2912_s9, 1024 }
 0xe61   :  { %p2500_p9 = scmp.ne.s32.totalorder %s2912_s9, %s2499_s15  ;;  %p2503_p10 = scmp.lt.u32.totalorder %s2499_s15, %s2912_s9 }
 0xe63   :  { %p2505_p11 = pnand %p2503_p10, %p2500_p9 }
 0xe65   :  { %2508 = shalt.err (!%p2505_p11)
}
 0xe66   :  { %1862 = dma.vmem_to_hbm [thread:$0]  %s1857_s2, 1024, %s2912_s9, [#allocation8], %s2519_s21, %s2519_s21, %s2520_s22  }
 0xe67   :  { %2515 = dma.done.wait [#allocation8], 1024  }
 0xe68   :  { %2516 = vsyncadd [#allocation8], 4294966272 }
 0xe69   :  { %1866 = vsyncpa [#allocation7], 1 }
 0xe6a   :  { %1867 = vsyncpa [#allocation10], 1 }
 0xe6b   :  { %1868 = vsyncpa [#allocation13], 1 }
 0xe6c   :  { %1869 = vsyncpa [#allocation8], 1 }

</bundles_post_ra>
